<compile_context>
chip_gen: v7x
topology: tpu7x:2x2x1
jax: 0.10.0
libtpu: 0.0.40
codegen_flags: <defaults>
</compile_context>

<pallas_src>
import math

import jax
import jax.numpy as jnp
from jax.experimental import pallas as pl
from jax.experimental.pallas import tpu as pltpu

# ----------------------------- small ViT-like config -----------------------------
HIDDEN = 32          # config.hidden_size
NUM_HEADS = 4        # config.transformer['num_heads']
MLP_DIM = 64         # config.transformer['mlp_dim']
NUM_LAYERS = 2       # config.transformer['num_layers']  (=> 1 regular Block + part_layer Block)
IMG_SIZE = 16
PATCH = 4            # config.patches['size'], split='non-overlap'
IN_CH = 3
LN_EPS = 1e-6
N_PATCHES = (IMG_SIZE // PATCH) ** 2
SEQ = N_PATCHES + 1
HEAD_DIM = HIDDEN // NUM_HEADS
GCN_HID = 512
LMAP_PAD = 128       # lane-dense padding for the attention-row output
MXU_DT = jnp.bfloat16  # MXU operand dtype (f32 accumulate); elementwise math stays f32


# ================================ shared helpers ================================

def _mdot(a, b):
    """MXU matmul: bf16 operands, f32 accumulation."""
    return jnp.dot(a.astype(MXU_DT), b.astype(MXU_DT),
                   preferred_element_type=jnp.float32)


def _layer_norm(v, w, b):
    mu = jnp.mean(v, axis=-1, keepdims=True)
    var = jnp.mean(jnp.square(v - mu), axis=-1, keepdims=True)
    return (v - mu) * jax.lax.rsqrt(var + LN_EPS) * w + b


def _choose_block(B, target=8):
    """Largest divisor of B that is <= target while (when possible) keeping >=2 grid steps
    so both v7x TensorCores get work; larger B gets real batching per grid step."""
    cands = [d for d in range(1, min(B, target) + 1) if B % d == 0]
    good = [d for d in cands if B // d >= 2]
    return max(good) if good else max(cands)


# ================================ Pallas kernels ================================

def _encoder_kernel(patches_ref, add_ref, w_emb_ref,
                    w_qkv_ref, b_qkv_ref, w_out_ref, vec_ref,
                    w_fc1_ref, b_fc1_ref, w_fc2_ref,
                    out_ref, lmap_ref):
    """Fused: patch-embedding matmul + NUM_LAYERS pre-LN transformer Blocks.

    Weights stay resident in VMEM across the (batch-block) grid. QKV is one fused
    (S,D)@(D,3D) matmul per layer; heads are static lane slices of its output; the output
    projection is one (S,D)@(D,D) matmul on the reassembled context. Only the part layer's
    attention-prob row p[0, :] per head is emitted, lane-padded to 128 (dense stores).
    """
    Bb = patches_ref.shape[0]
    nh, hd, S, D = NUM_HEADS, HEAD_DIM, SEQ, HIDDEN
    scale = 1.0 / math.sqrt(hd)
    add = add_ref[...]                                           # cls/pos/conv-bias additive term

    for bi in range(Bb):                                         # static unroll over batched images
        # ---- Embedding: row 0 of patches is zero; add carries cls+pos / conv_bias+pos ----
        x = _mdot(patches_ref[bi], w_emb_ref[...]) + add         # (S, D)
        # dropout: identity (inference)

        part_row = None
        for l in range(NUM_LAYERS):                              # tiny static trip count -> unrolled
            vec = vec_ref[l]                                     # (6, D)
            ln1w, ln1b, bo = vec[0:1], vec[1:2], vec[2:3]
            ln2w, ln2b, b2 = vec[3:4], vec[4:5], vec[5:6]

            # -------- attention: fused QKV projection, one MXU push with N = 3D --------
            xn = _layer_norm(x, ln1w, ln1b)                      # (S, D)
            qkv = _mdot(xn, w_qkv_ref[l]) + b_qkv_ref[l]         # (S, 3D)

            ctx_heads = []
            rows = []
            for h in range(nh):                                  # per-head scores / context
                qh = qkv[:, h * hd:(h + 1) * hd]
                kh = qkv[:, D + h * hd:D + (h + 1) * hd]
                vh = qkv[:, 2 * D + h * hd:2 * D + (h + 1) * hd]
                s = jnp.einsum('ie,je->ij', qh, kh,
                               preferred_element_type=jnp.float32) * scale   # (S, S)
                m = jnp.max(s, axis=-1, keepdims=True)
                e = jnp.exp(s - m)
                p = e / jnp.sum(e, axis=-1, keepdims=True)       # attention probs (f32)
                rows.append(p[0:1, :])                           # query row 0 (CLS token)
                ctx_heads.append(jnp.dot(p, vh, preferred_element_type=jnp.float32))
            ctx = jnp.concatenate(ctx_heads, axis=-1)            # (S, nh*hd) = (S, D)

            # -------- fused output projection: single K=32 matmul --------
            x = x + _mdot(ctx, w_out_ref[l]) + bo

            # -------- MLP --------
            xm = _layer_norm(x, ln2w, ln2b)
            h1 = _mdot(xm, w_fc1_ref[l]) + b_fc1_ref[l]
            # TODO(synk): PyTorch F.gelu is exact (erf); tanh approximation used (Mosaic-safe).
            g = 0.5 * h1 * (1.0 + jnp.tanh(0.7978845608028654 *
                                           (h1 + 0.044715 * h1 * h1 * h1)))
            x = x + _mdot(g, w_fc2_ref[l]) + b2

            part_row = jnp.concatenate(rows, axis=0)             # (nh, S): this layer's row-0 probs

        out_ref[bi] = x                                          # states after the part layer
        lmap_ref[bi] = jnp.concatenate(                          # lane-dense padded store
            [part_row, jnp.zeros((nh, LMAP_PAD - S), jnp.float32)], axis=-1)


def encoder_fused(patches_p, emb_add, w_emb, packed, bblk):
    B = patches_p.shape[0]
    Cpp = patches_p.shape[-1]
    S, D, M, nh, L = SEQ, HIDDEN, MLP_DIM, NUM_HEADS, NUM_LAYERS
    w_qkv, b_qkv, w_out, vec_d, w_fc1, b_fc1, w_fc2 = packed

    in_specs = [
        pl.BlockSpec((bblk, S, Cpp), lambda b: (b, 0, 0)),       # batch-block of (padded) patches
        pl.BlockSpec((S, D), lambda b: (0, 0)),                  # cls/pos/conv-bias additive term
        pl.BlockSpec((Cpp, D), lambda b: (0, 0)),                # patch-embedding weight (bf16)
        pl.BlockSpec((L, D, 3 * D), lambda b: (0, 0, 0)),        # fused QKV weight (bf16)
        pl.BlockSpec((L, 1, 3 * D), lambda b: (0, 0, 0)),
        pl.BlockSpec((L, D, D), lambda b: (0, 0, 0)),            # output-projection weight (bf16)
        pl.BlockSpec((L, 6, D), lambda b: (0, 0, 0)),
        pl.BlockSpec((L, D, M), lambda b: (0, 0, 0)),
        pl.BlockSpec((L, 1, M), lambda b: (0, 0, 0)),
        pl.BlockSpec((L, M, D), lambda b: (0, 0, 0)),
    ]
    out_specs = (pl.BlockSpec((bblk, S, D), lambda b: (b, 0, 0)),
                 pl.BlockSpec((bblk, nh, LMAP_PAD), lambda b: (b, 0, 0)))
    out_shape = (jax.ShapeDtypeStruct((B, S, D), jnp.float32),
                 jax.ShapeDtypeStruct((B, nh, LMAP_PAD), jnp.float32))
    return pl.pallas_call(
        _encoder_kernel,
        grid=(B // bblk,),
        in_specs=in_specs,
        out_specs=out_specs,
        out_shape=out_shape,
        compiler_params=pltpu.CompilerParams(dimension_semantics=("parallel",)),
    )(patches_p, emb_add, w_emb, w_qkv, b_qkv, w_out, vec_d, w_fc1, b_fc1, w_fc2)


def _gcn_struct_kernel(idx_ref, coord_ref, adj_ref, hs_ref, w1_ref, w2_ref, pn_ref,
                       out_ref, g2_scratch):
    """Fused Part_Structure tail: 2-layer GCN + anchor-row add into CLS + part_norm."""
    Bb = coord_ref.shape[0]
    base = pl.program_id(0) * Bb
    w1 = w1_ref[...]                                             # (2, GCN_HID), used on the VPU

    for bi in range(Bb):
        coord = coord_ref[bi]                                    # (HW, 2)
        adj = adj_ref[bi]                                        # (HW, HW)

        # GraphConvolution 1: K=2 contraction done as two broadcast-FMAs (no MXU pass)
        s1 = coord[:, 0:1] * w1[0:1, :] + coord[:, 1:2] * w1[1:2, :]   # (HW, GCN_HID)
        g1 = _mdot(adj, s1)
        g1 = jnp.maximum(g1, 0.0)          # LeakyReLU(0.2) followed by ReLU == ReLU
        # TODO(synk): reference applies F.dropout(p=0.1, training default=True) here even in eval;
        #             treated as identity.

        # GraphConvolution 2 (K=512 matmul is the substantial one)
        s2 = _mdot(g1, w2_ref[...])                              # (HW, D)
        g2 = _mdot(adj, s2)
        g2 = jnp.where(g2 > 0, g2, 0.2 * g2)

        # anchor row via dynamic sublane read (index prefetched into SMEM)
        g2_scratch[...] = g2
        anchor = idx_ref[base + bi]
        sel = g2_scratch[pl.ds(anchor, 1), :]                    # (1, D)

        hs = hs_ref[bi]                                          # (S, D)
        row_ids = jax.lax.broadcasted_iota(jnp.int32, hs.shape, 0)
        hs = jnp.where(row_ids == 0, hs + sel, hs)               # add anchor row to CLS token

        # part_norm (LayerNorm, eps=1e-6)
        mu = jnp.mean(hs, axis=-1, keepdims=True)
        var = jnp.mean(jnp.square(hs - mu), axis=-1, keepdims=True)
        out_ref[bi] = (hs - mu) * jax.lax.rsqrt(var + LN_EPS) * pn_ref[0:1] + pn_ref[1:2]


def gcn_structure_norm(idx, coord, adj, part_states, gcn_w1, gcn_w2, pn, bblk):
    B, S, D = part_states.shape
    HW = adj.shape[-1]
    grid_spec = pltpu.PrefetchScalarGridSpec(
        num_scalar_prefetch=1,                       # anchor indices -> SMEM
        grid=(B // bblk,),
        in_specs=[
            pl.BlockSpec((bblk, HW, 2), lambda b, idx: (b, 0, 0)),
            pl.BlockSpec((bblk, HW, HW), lambda b, idx: (b, 0, 0)),
            pl.BlockSpec((bblk, S, D), lambda b, idx: (b, 0, 0)),
            pl.BlockSpec(gcn_w1.shape, lambda b, idx: (0, 0)),
            pl.BlockSpec(gcn_w2.shape, lambda b, idx: (0, 0)),
            pl.BlockSpec((2, D), lambda b, idx: (0, 0)),
        ],
        out_specs=pl.BlockSpec((bblk, S, D), lambda b, idx: (b, 0, 0)),
        scratch_shapes=[pltpu.VMEM((HW, D), jnp.float32)],       # g2 staging for the anchor read
    )
    return pl.pallas_call(
        _gcn_struct_kernel,
        grid_spec=grid_spec,
        out_shape=jax.ShapeDtypeStruct((B, S, D), jnp.float32),
        compiler_params=pltpu.CompilerParams(dimension_semantics=("parallel",)),
    )(idx, coord, adj, part_states, gcn_w1, gcn_w2, pn)


# ============================ plain-JAX glue (small ops) ============================

def extract_patches(x):
    """Conv2d(kernel=stride=PATCH) == patch extraction + matmul (matmul runs in the kernel)."""
    B, C, H, W = x.shape
    Hg, Wg = H // PATCH, W // PATCH
    return (x.reshape(B, C, Hg, PATCH, Wg, PATCH)
              .transpose(0, 2, 4, 1, 3, 5)
              .reshape(B, Hg * Wg, C * PATCH * PATCH))


def pack_layer_params(layers):
    """Stack per-layer params into contiguous slabs; matmul weights are stored bf16."""
    D, M = HIDDEN, MLP_DIM
    w_qkv = jnp.stack([jnp.concatenate([p['wq'], p['wk'], p['wv']], axis=1)
                       for p in layers]).astype(MXU_DT)                    # (L, D, 3D)
    b_qkv = jnp.stack([jnp.concatenate([p['bq'], p['bk'], p['bv']]).reshape(1, 3 * D)
                       for p in layers])                                   # (L, 1, 3D)
    w_out = jnp.stack([p['wo'] for p in layers]).astype(MXU_DT)            # (L, D, D)
    vec_d = jnp.stack([jnp.stack([p['ln1_w'], p['ln1_b'], p['bo'],
                                  p['ln2_w'], p['ln2_b'], p['b2']]) for p in layers])
    w_fc1 = jnp.stack([p['w1'] for p in layers]).astype(MXU_DT)
    b_fc1 = jnp.stack([p['b1'].reshape(1, M) for p in layers])
    w_fc2 = jnp.stack([p['w2'] for p in layers]).astype(MXU_DT)
    return w_qkv, b_qkv, w_out, vec_d, w_fc1, b_fc1, w_fc2


def relative_coord_predictor(x):
    """x: (N, C, H, W) attention map. Mirrors RelativeCoordPredictor.forward (plain JAX glue)."""
    N, C, H, W = x.shape
    mask = jnp.sum(x, axis=1).reshape(N, H * W)
    thresholds = jnp.mean(mask, axis=1, keepdims=True)
    binary_mask = (mask > thresholds).astype(jnp.float32)               # (N, HW)
    binary_mask_2d = binary_mask.reshape(N, H, W)
    masked_x = x * binary_mask_2d[:, None]
    masked_x = masked_x.reshape(N, C, H * W).transpose(0, 2, 1)         # (N, HW, C)
    reduced_x_max_index = jnp.argmax(jnp.mean(masked_x, axis=-1), axis=-1)   # (N,)
    ii, jj = jnp.meshgrid(jnp.arange(H), jnp.arange(W), indexing='ij')
    basic_label = jnp.stack([ii, jj], axis=-1).astype(jnp.float32)      # (H, W, 2)
    label = jnp.broadcast_to(basic_label.reshape(1, H * W, 2), (N, H * W, 2))
    basic_anchor = label[jnp.arange(N), reduced_x_max_index]            # (N, 2)
    relative_coord = (label - basic_anchor[:, None, :]) / H
    relative_dist = jnp.sqrt(jnp.sum(relative_coord ** 2, axis=-1))
    relative_angle = jnp.arctan2(relative_coord[:, :, 1], relative_coord[:, :, 0])
    relative_angle = (relative_angle / jnp.pi + 1.0) / 2.0
    relative_dist = relative_dist * binary_mask
    relative_angle = relative_angle * binary_mask
    relative_coord_total = jnp.concatenate(
        [relative_dist[..., None], relative_angle[..., None]], axis=-1)      # (N, HW, 2)
    pw = jnp.mean(masked_x, axis=-1)                                    # (N, HW)
    position_weight = pw[:, :, None] * pw[:, None, :]                   # (N, HW, HW)
    return relative_coord_total, basic_anchor, position_weight, reduced_x_max_index


# ================================= forward pass =================================

@jax.jit
def transformer_forward(x, params):
    B = x.shape[0]
    D = HIDDEN
    bblk = _choose_block(B)

    # -------- Embeddings glue: patch extraction; fold cls/pos/conv-bias into one add --------
    patches = extract_patches(x)                                            # (B, NP, C*P*P)
    Cpp = patches.shape[-1]
    patches_p = jnp.concatenate(
        [jnp.zeros((B, 1, Cpp), jnp.float32), patches], axis=1)             # (B, S, Cpp)
    w_emb = params['conv_w'].reshape(D, Cpp).T.astype(MXU_DT)               # (Cpp, D)
    emb_add = (jnp.concatenate(
        [params['cls_token'].reshape(1, D),
         jnp.broadcast_to(params['conv_b'].reshape(1, D), (N_PATCHES, D))], axis=0)
        + params['pos_emb'][0])                                             # (S, D)

    packed = pack_layer_params(list(params['layers']) + [params['part_layer']])

    # -------- Fused encoder: embedding matmul + all Blocks + part Block (Pallas) --------
    part_states, lmap = encoder_fused(patches_p, emb_add, w_emb, packed, bblk)

    # -------- Part_Attention: last_map[:, :, 0, 1:] -> attention map --------
    Hg = int(N_PATCHES ** 0.5)
    a_map = lmap[:, :, 1:SEQ].reshape(B, NUM_HEADS, Hg, Hg)

    # -------- Part_Structure: relative coords (glue) + fused GCN / anchor-add / part_norm --------
    coord, anchor, pos_w, _ = relative_coord_predictor(a_map)
    idx = (anchor[:, 0] * Hg + anchor[:, 1]).astype(jnp.int32)              # (B,)
    pn = jnp.stack([params['pn_w'], params['pn_b']])                        # (2, D)
    part_encoded = gcn_structure_norm(idx, coord, pos_w, part_states,
                                      params['gcn_w1'],
                                      params['gcn_w2'].astype(MXU_DT), pn, bblk)

    hid_ori = []   # `i > 8` branch of the reference never fires with NUM_LAYERS=2 (dead code)
    return part_encoded, hid_ori


# ================================ parameter init ================================

def init_params(key):
    keys = iter(jax.random.split(key, 64))
    D, M = HIDDEN, MLP_DIM

    def rnd(shape, scale=0.02):
        return scale * jax.random.normal(next(keys), shape, jnp.float32)

    def block_params():
        return {
            'ln1_w': jnp.ones((D,), jnp.float32), 'ln1_b': jnp.zeros((D,), jnp.float32),
            'wq': rnd((D, D)), 'bq': jnp.zeros((D,), jnp.float32),
            'wk': rnd((D, D)), 'bk': jnp.zeros((D,), jnp.float32),
            'wv': rnd((D, D)), 'bv': jnp.zeros((D,), jnp.float32),
            'wo': rnd((D, D)), 'bo': jnp.zeros((D,), jnp.float32),
            'ln2_w': jnp.ones((D,), jnp.float32), 'ln2_b': jnp.zeros((D,), jnp.float32),
            'w1': rnd((D, M)), 'b1': 1e-6 * jax.random.normal(next(keys), (M,), jnp.float32),
            'w2': rnd((M, D)), 'b2': 1e-6 * jax.random.normal(next(keys), (D,), jnp.float32),
        }

    stdv1 = 1.0 / math.sqrt(GCN_HID)
    stdv2 = 1.0 / math.sqrt(D)
    return {
        'conv_w': rnd((D, IN_CH, PATCH, PATCH), 0.1),
        'conv_b': jnp.zeros((D,), jnp.float32),
        'cls_token': rnd((1, 1, D)),
        'struc_token': rnd((1, 1, D)),     # kept for parity; unused downstream (as in reference)
        'pos_emb': rnd((1, SEQ, D)),
        'layers': [block_params() for _ in range(NUM_LAYERS - 1)],
        'part_layer': block_params(),
        'pn_w': jnp.ones((D,), jnp.float32),
        'pn_b': jnp.zeros((D,), jnp.float32),
        'gcn_w1': jax.random.uniform(next(keys), (2, GCN_HID), jnp.float32, -stdv1, stdv1),
        'gcn_w2': jax.random.uniform(next(keys), (GCN_HID, D), jnp.float32, -stdv2, stdv2),
    }


# ====================================== main ======================================

if __name__ == "__main__":
    key = jax.random.PRNGKey(0)
    k_x, k_p = jax.random.split(key)
    x = jax.random.normal(k_x, (2, IN_CH, IMG_SIZE, IMG_SIZE), jnp.float32)   # NCHW
    params = init_params(k_p)

    part_encoded, hid = transformer_forward(x, params)
    part_encoded = jax.block_until_ready(part_encoded)

    assert part_encoded.shape == (2, SEQ, HIDDEN)
    assert isinstance(hid, list)
    print("KERNEL_OK")
</pallas_src>

<mosaic_0001>
module attributes {stable_mosaic.version = 11 : i64} {
  func.func @_encoder_kernel(%arg0: i32, %arg1: memref<1x17x48xf32, #tpu.memory_space<vmem>>, %arg2: memref<17x32xf32, #tpu.memory_space<vmem>>, %arg3: memref<48x32xbf16, #tpu.memory_space<vmem>>, %arg4: memref<2x32x96xbf16, #tpu.memory_space<vmem>>, %arg5: memref<2x1x96xf32, #tpu.memory_space<vmem>>, %arg6: memref<2x32x32xbf16, #tpu.memory_space<vmem>>, %arg7: memref<2x6x32xf32, #tpu.memory_space<vmem>>, %arg8: memref<2x32x64xbf16, #tpu.memory_space<vmem>>, %arg9: memref<2x1x64xf32, #tpu.memory_space<vmem>>, %arg10: memref<2x64x32xbf16, #tpu.memory_space<vmem>>, %arg11: memref<1x17x32xf32, #tpu.memory_space<vmem>>, %arg12: memref<1x4x128xf32, #tpu.memory_space<vmem>>) attributes {dimension_semantics = [#tpu.dimension_semantics<parallel>], iteration_bounds = array<i64: 2>, scalar_prefetch = 0 : i64, scratch_operands = 0 : i64, tpu.core_type = #tpu.core_type<tc>, window_params = [{transform_indices = @transform_0, window_bounds = array<i64: 1, 17, 48>}, {pipeline_mode = #tpu.pipeline_mode<synchronous>, transform_indices = @transform_1, window_bounds = array<i64: 17, 32>}, {pipeline_mode = #tpu.pipeline_mode<synchronous>, transform_indices = @transform_2, window_bounds = array<i64: 48, 32>}, {pipeline_mode = #tpu.pipeline_mode<synchronous>, transform_indices = @transform_3, window_bounds = array<i64: 2, 32, 96>}, {pipeline_mode = #tpu.pipeline_mode<synchronous>, transform_indices = @transform_4, window_bounds = array<i64: 2, 1, 96>}, {pipeline_mode = #tpu.pipeline_mode<synchronous>, transform_indices = @transform_5, window_bounds = array<i64: 2, 32, 32>}, {pipeline_mode = #tpu.pipeline_mode<synchronous>, transform_indices = @transform_6, window_bounds = array<i64: 2, 6, 32>}, {pipeline_mode = #tpu.pipeline_mode<synchronous>, transform_indices = @transform_7, window_bounds = array<i64: 2, 32, 64>}, {pipeline_mode = #tpu.pipeline_mode<synchronous>, transform_indices = @transform_8, window_bounds = array<i64: 2, 1, 64>}, {pipeline_mode = #tpu.pipeline_mode<synchronous>, transform_indices = @transform_9, window_bounds = array<i64: 2, 64, 32>}, {transform_indices = @transform_10, window_bounds = array<i64: 1, 17, 32>}, {transform_indices = @transform_11, window_bounds = array<i64: 1, 4, 128>}]} {
    %c0 = arith.constant 0 : index
    %c0_0 = arith.constant 0 : index
    %0 = vector.load %arg2[%c0, %c0_0] : memref<17x32xf32, #tpu.memory_space<vmem>>, vector<17x32xf32>
    %c0_1 = arith.constant 0 : index
    %c0_2 = arith.constant 0 : index
    %c0_3 = arith.constant 0 : index
    %1 = vector.load %arg1[%c0_1, %c0_2, %c0_3] : memref<1x17x48xf32, #tpu.memory_space<vmem>>, vector<1x17x48xf32>
    %2 = vector.shape_cast %1 : vector<1x17x48xf32> to vector<17x48xf32>
    %c0_4 = arith.constant 0 : index
    %c0_5 = arith.constant 0 : index
    %3 = vector.load %arg3[%c0_4, %c0_5] : memref<48x32xbf16, #tpu.memory_space<vmem>>, vector<48x32xbf16>
    %4 = arith.truncf %2 : vector<17x48xf32> to vector<17x48xbf16>
    %cst = arith.constant dense<0.000000e+00> : vector<17x32xf32>
    %5 = tpu.matmul %4, %3, %cst {dimension_numbers = #tpu.dot_dimension_numbers<[1], [0], [0], [1], [0, 0, 1, 1], [], []>} : vector<17x48xbf16>, vector<48x32xbf16>, vector<17x32xf32> -> vector<17x32xf32>
    %6 = arith.addf %5, %0 : vector<17x32xf32>
    %c0_6 = arith.constant 0 : index
    %c0_7 = arith.constant 0 : index
    %c0_8 = arith.constant 0 : index
    %7 = vector.load %arg7[%c0_6, %c0_7, %c0_8] : memref<2x6x32xf32, #tpu.memory_space<vmem>>, vector<1x6x32xf32>
    %8 = vector.shape_cast %7 : vector<1x6x32xf32> to vector<6x32xf32>
    %9 = vector.extract_strided_slice %8 {offsets = [0, 0], sizes = [1, 32], strides = [1, 1]} : vector<6x32xf32> to vector<1x32xf32>
    %10 = vector.extract_strided_slice %8 {offsets = [1, 0], sizes = [1, 32], strides = [1, 1]} : vector<6x32xf32> to vector<1x32xf32>
    %11 = vector.extract_strided_slice %8 {offsets = [2, 0], sizes = [1, 32], strides = [1, 1]} : vector<6x32xf32> to vector<1x32xf32>
    %12 = vector.extract_strided_slice %8 {offsets = [3, 0], sizes = [1, 32], strides = [1, 1]} : vector<6x32xf32> to vector<1x32xf32>
    %13 = vector.extract_strided_slice %8 {offsets = [4, 0], sizes = [1, 32], strides = [1, 1]} : vector<6x32xf32> to vector<1x32xf32>
    %14 = vector.extract_strided_slice %8 {offsets = [5, 0], sizes = [1, 32], strides = [1, 1]} : vector<6x32xf32> to vector<1x32xf32>
    %cst_9 = arith.constant dense<0.000000e+00> : vector<17xf32>
    %15 = vector.multi_reduction <add>, %6, %cst_9 [1] : vector<17x32xf32> to vector<17xf32>
    %16 = vector.shape_cast %15 : vector<17xf32> to vector<17x1xf32>
    %cst_10 = arith.constant 3.200000e+01 : f32
    %17 = vector.broadcast %cst_10 : f32 to vector<17x1xf32>
    %18 = arith.divf %16, %17 : vector<17x1xf32>
    %19 = vector.broadcast %18 : vector<17x1xf32> to vector<17x32xf32>
    %20 = arith.subf %6, %19 : vector<17x32xf32>
    %21 = arith.mulf %20, %20 : vector<17x32xf32>
    %cst_11 = arith.constant dense<0.000000e+00> : vector<17xf32>
    %22 = vector.multi_reduction <add>, %21, %cst_11 [1] : vector<17x32xf32> to vector<17xf32>
    %23 = vector.shape_cast %22 : vector<17xf32> to vector<17x1xf32>
    %cst_12 = arith.constant 3.200000e+01 : f32
    %24 = vector.broadcast %cst_12 : f32 to vector<17x1xf32>
    %25 = arith.divf %23, %24 : vector<17x1xf32>
    %26 = vector.broadcast %18 : vector<17x1xf32> to vector<17x32xf32>
    %27 = arith.subf %6, %26 : vector<17x32xf32>
    %cst_13 = arith.constant 9.99999997E-7 : f32
    %28 = vector.broadcast %cst_13 : f32 to vector<17x1xf32>
    %29 = arith.addf %25, %28 : vector<17x1xf32>
    %30 = math.rsqrt %29 : vector<17x1xf32>
    %31 = vector.broadcast %30 : vector<17x1xf32> to vector<17x32xf32>
    %32 = arith.mulf %27, %31 : vector<17x32xf32>
    %33 = vector.broadcast %9 : vector<1x32xf32> to vector<17x32xf32>
    %34 = arith.mulf %32, %33 : vector<17x32xf32>
    %35 = vector.broadcast %10 : vector<1x32xf32> to vector<17x32xf32>
    %36 = arith.addf %34, %35 : vector<17x32xf32>
    %c0_14 = arith.constant 0 : index
    %c0_15 = arith.constant 0 : index
    %c0_16 = arith.constant 0 : index
    %37 = vector.load %arg4[%c0_14, %c0_15, %c0_16] : memref<2x32x96xbf16, #tpu.memory_space<vmem>>, vector<1x32x96xbf16>
    %38 = vector.shape_cast %37 : vector<1x32x96xbf16> to vector<32x96xbf16>
    %39 = arith.truncf %36 : vector<17x32xf32> to vector<17x32xbf16>
    %cst_17 = arith.constant dense<0.000000e+00> : vector<17x96xf32>
    %40 = tpu.matmul %39, %38, %cst_17 {dimension_numbers = #tpu.dot_dimension_numbers<[1], [0], [0], [1], [0, 0, 1, 1], [], []>} : vector<17x32xbf16>, vector<32x96xbf16>, vector<17x96xf32> -> vector<17x96xf32>
    %c0_18 = arith.constant 0 : index
    %c0_19 = arith.constant 0 : index
    %c0_20 = arith.constant 0 : index
    %41 = vector.load %arg5[%c0_18, %c0_19, %c0_20] : memref<2x1x96xf32, #tpu.memory_space<vmem>>, vector<1x1x96xf32>
    %42 = vector.shape_cast %41 : vector<1x1x96xf32> to vector<1x96xf32>
    %43 = vector.broadcast %42 : vector<1x96xf32> to vector<17x96xf32>
    %44 = arith.addf %40, %43 : vector<17x96xf32>
    %45 = vector.extract_strided_slice %44 {offsets = [0, 0], sizes = [17, 8], strides = [1, 1]} : vector<17x96xf32> to vector<17x8xf32>
    %46 = vector.extract_strided_slice %44 {offsets = [0, 32], sizes = [17, 8], strides = [1, 1]} : vector<17x96xf32> to vector<17x8xf32>
    %47 = vector.extract_strided_slice %44 {offsets = [0, 64], sizes = [17, 8], strides = [1, 1]} : vector<17x96xf32> to vector<17x8xf32>
    "tpu.trace_start"() <{level = 10 : i32, message = "ie,je->ij"}> : () -> ()
    %cst_21 = arith.constant dense<0.000000e+00> : vector<17x17xf32>
    %48 = tpu.matmul %45, %46, %cst_21 {dimension_numbers = #tpu.dot_dimension_numbers<[1], [1], [0], [0], [0, 0, 1, 0], [], []>} : vector<17x8xf32>, vector<17x8xf32>, vector<17x17xf32> -> vector<17x17xf32>
    "tpu.trace_stop"() : () -> ()
    %cst_22 = arith.constant 0.353553385 : f32
    %49 = vector.broadcast %cst_22 : f32 to vector<17x17xf32>
    %50 = arith.mulf %48, %49 : vector<17x17xf32>
    %cst_23 = arith.constant dense<0xFF800000> : vector<17xf32>
    %51 = vector.multi_reduction <maximumf>, %50, %cst_23 [1] : vector<17x17xf32> to vector<17xf32>
    %52 = vector.shape_cast %51 : vector<17xf32> to vector<17x1xf32>
    %53 = vector.broadcast %52 : vector<17x1xf32> to vector<17x17xf32>
    %54 = arith.subf %50, %53 : vector<17x17xf32>
    %55 = math.exp %54 : vector<17x17xf32>
    %cst_24 = arith.constant dense<0.000000e+00> : vector<17xf32>
    %56 = vector.multi_reduction <add>, %55, %cst_24 [1] : vector<17x17xf32> to vector<17xf32>
    %57 = vector.shape_cast %56 : vector<17xf32> to vector<17x1xf32>
    %58 = vector.broadcast %57 : vector<17x1xf32> to vector<17x17xf32>
    %59 = arith.divf %55, %58 : vector<17x17xf32>
    %cst_25 = arith.constant dense<0.000000e+00> : vector<17x8xf32>
    %60 = tpu.matmul %59, %47, %cst_25 {dimension_numbers = #tpu.dot_dimension_numbers<[1], [0], [0], [1], [0, 0, 1, 1], [], []>} : vector<17x17xf32>, vector<17x8xf32>, vector<17x8xf32> -> vector<17x8xf32>
    %61 = vector.extract_strided_slice %44 {offsets = [0, 8], sizes = [17, 8], strides = [1, 1]} : vector<17x96xf32> to vector<17x8xf32>
    %62 = vector.extract_strided_slice %44 {offsets = [0, 40], sizes = [17, 8], strides = [1, 1]} : vector<17x96xf32> to vector<17x8xf32>
    %63 = vector.extract_strided_slice %44 {offsets = [0, 72], sizes = [17, 8], strides = [1, 1]} : vector<17x96xf32> to vector<17x8xf32>
    "tpu.trace_start"() <{level = 10 : i32, message = "ie,je->ij"}> : () -> ()
    %cst_26 = arith.constant dense<0.000000e+00> : vector<17x17xf32>
    %64 = tpu.matmul %61, %62, %cst_26 {dimension_numbers = #tpu.dot_dimension_numbers<[1], [1], [0], [0], [0, 0, 1, 0], [], []>} : vector<17x8xf32>, vector<17x8xf32>, vector<17x17xf32> -> vector<17x17xf32>
    "tpu.trace_stop"() : () -> ()
    %cst_27 = arith.constant 0.353553385 : f32
    %65 = vector.broadcast %cst_27 : f32 to vector<17x17xf32>
    %66 = arith.mulf %64, %65 : vector<17x17xf32>
    %cst_28 = arith.constant dense<0xFF800000> : vector<17xf32>
    %67 = vector.multi_reduction <maximumf>, %66, %cst_28 [1] : vector<17x17xf32> to vector<17xf32>
    %68 = vector.shape_cast %67 : vector<17xf32> to vector<17x1xf32>
    %69 = vector.broadcast %68 : vector<17x1xf32> to vector<17x17xf32>
    %70 = arith.subf %66, %69 : vector<17x17xf32>
    %71 = math.exp %70 : vector<17x17xf32>
    %cst_29 = arith.constant dense<0.000000e+00> : vector<17xf32>
    %72 = vector.multi_reduction <add>, %71, %cst_29 [1] : vector<17x17xf32> to vector<17xf32>
    %73 = vector.shape_cast %72 : vector<17xf32> to vector<17x1xf32>
    %74 = vector.broadcast %73 : vector<17x1xf32> to vector<17x17xf32>
    %75 = arith.divf %71, %74 : vector<17x17xf32>
    %cst_30 = arith.constant dense<0.000000e+00> : vector<17x8xf32>
    %76 = tpu.matmul %75, %63, %cst_30 {dimension_numbers = #tpu.dot_dimension_numbers<[1], [0], [0], [1], [0, 0, 1, 1], [], []>} : vector<17x17xf32>, vector<17x8xf32>, vector<17x8xf32> -> vector<17x8xf32>
    %77 = vector.extract_strided_slice %44 {offsets = [0, 16], sizes = [17, 8], strides = [1, 1]} : vector<17x96xf32> to vector<17x8xf32>
    %78 = vector.extract_strided_slice %44 {offsets = [0, 48], sizes = [17, 8], strides = [1, 1]} : vector<17x96xf32> to vector<17x8xf32>
    %79 = vector.extract_strided_slice %44 {offsets = [0, 80], sizes = [17, 8], strides = [1, 1]} : vector<17x96xf32> to vector<17x8xf32>
    "tpu.trace_start"() <{level = 10 : i32, message = "ie,je->ij"}> : () -> ()
    %cst_31 = arith.constant dense<0.000000e+00> : vector<17x17xf32>
    %80 = tpu.matmul %77, %78, %cst_31 {dimension_numbers = #tpu.dot_dimension_numbers<[1], [1], [0], [0], [0, 0, 1, 0], [], []>} : vector<17x8xf32>, vector<17x8xf32>, vector<17x17xf32> -> vector<17x17xf32>
    "tpu.trace_stop"() : () -> ()
    %cst_32 = arith.constant 0.353553385 : f32
    %81 = vector.broadcast %cst_32 : f32 to vector<17x17xf32>
    %82 = arith.mulf %80, %81 : vector<17x17xf32>
    %cst_33 = arith.constant dense<0xFF800000> : vector<17xf32>
    %83 = vector.multi_reduction <maximumf>, %82, %cst_33 [1] : vector<17x17xf32> to vector<17xf32>
    %84 = vector.shape_cast %83 : vector<17xf32> to vector<17x1xf32>
    %85 = vector.broadcast %84 : vector<17x1xf32> to vector<17x17xf32>
    %86 = arith.subf %82, %85 : vector<17x17xf32>
    %87 = math.exp %86 : vector<17x17xf32>
    %cst_34 = arith.constant dense<0.000000e+00> : vector<17xf32>
    %88 = vector.multi_reduction <add>, %87, %cst_34 [1] : vector<17x17xf32> to vector<17xf32>
    %89 = vector.shape_cast %88 : vector<17xf32> to vector<17x1xf32>
    %90 = vector.broadcast %89 : vector<17x1xf32> to vector<17x17xf32>
    %91 = arith.divf %87, %90 : vector<17x17xf32>
    %cst_35 = arith.constant dense<0.000000e+00> : vector<17x8xf32>
    %92 = tpu.matmul %91, %79, %cst_35 {dimension_numbers = #tpu.dot_dimension_numbers<[1], [0], [0], [1], [0, 0, 1, 1], [], []>} : vector<17x17xf32>, vector<17x8xf32>, vector<17x8xf32> -> vector<17x8xf32>
    %93 = vector.extract_strided_slice %44 {offsets = [0, 24], sizes = [17, 8], strides = [1, 1]} : vector<17x96xf32> to vector<17x8xf32>
    %94 = vector.extract_strided_slice %44 {offsets = [0, 56], sizes = [17, 8], strides = [1, 1]} : vector<17x96xf32> to vector<17x8xf32>
    %95 = vector.extract_strided_slice %44 {offsets = [0, 88], sizes = [17, 8], strides = [1, 1]} : vector<17x96xf32> to vector<17x8xf32>
    "tpu.trace_start"() <{level = 10 : i32, message = "ie,je->ij"}> : () -> ()
    %cst_36 = arith.constant dense<0.000000e+00> : vector<17x17xf32>
    %96 = tpu.matmul %93, %94, %cst_36 {dimension_numbers = #tpu.dot_dimension_numbers<[1], [1], [0], [0], [0, 0, 1, 0], [], []>} : vector<17x8xf32>, vector<17x8xf32>, vector<17x17xf32> -> vector<17x17xf32>
    "tpu.trace_stop"() : () -> ()
    %cst_37 = arith.constant 0.353553385 : f32
    %97 = vector.broadcast %cst_37 : f32 to vector<17x17xf32>
    %98 = arith.mulf %96, %97 : vector<17x17xf32>
    %cst_38 = arith.constant dense<0xFF800000> : vector<17xf32>
    %99 = vector.multi_reduction <maximumf>, %98, %cst_38 [1] : vector<17x17xf32> to vector<17xf32>
    %100 = vector.shape_cast %99 : vector<17xf32> to vector<17x1xf32>
    %101 = vector.broadcast %100 : vector<17x1xf32> to vector<17x17xf32>
    %102 = arith.subf %98, %101 : vector<17x17xf32>
    %103 = math.exp %102 : vector<17x17xf32>
    %cst_39 = arith.constant dense<0.000000e+00> : vector<17xf32>
    %104 = vector.multi_reduction <add>, %103, %cst_39 [1] : vector<17x17xf32> to vector<17xf32>
    %105 = vector.shape_cast %104 : vector<17xf32> to vector<17x1xf32>
    %106 = vector.broadcast %105 : vector<17x1xf32> to vector<17x17xf32>
    %107 = arith.divf %103, %106 : vector<17x17xf32>
    %cst_40 = arith.constant dense<0.000000e+00> : vector<17x8xf32>
    %108 = tpu.matmul %107, %95, %cst_40 {dimension_numbers = #tpu.dot_dimension_numbers<[1], [0], [0], [1], [0, 0, 1, 1], [], []>} : vector<17x17xf32>, vector<17x8xf32>, vector<17x8xf32> -> vector<17x8xf32>
    %109 = tpu.concatenate %60, %76, %92, %108 in 1 : vector<17x8xf32>, vector<17x8xf32>, vector<17x8xf32>, vector<17x8xf32> -> vector<17x32xf32>
    %c0_41 = arith.constant 0 : index
    %c0_42 = arith.constant 0 : index
    %c0_43 = arith.constant 0 : index
    %110 = vector.load %arg6[%c0_41, %c0_42, %c0_43] : memref<2x32x32xbf16, #tpu.memory_space<vmem>>, vector<1x32x32xbf16>
    %111 = vector.shape_cast %110 : vector<1x32x32xbf16> to vector<32x32xbf16>
    %112 = arith.truncf %109 : vector<17x32xf32> to vector<17x32xbf16>
    %cst_44 = arith.constant dense<0.000000e+00> : vector<17x32xf32>
    %113 = tpu.matmul %112, %111, %cst_44 {dimension_numbers = #tpu.dot_dimension_numbers<[1], [0], [0], [1], [0, 0, 1, 1], [], []>} : vector<17x32xbf16>, vector<32x32xbf16>, vector<17x32xf32> -> vector<17x32xf32>
    %114 = arith.addf %6, %113 : vector<17x32xf32>
    %115 = vector.broadcast %11 : vector<1x32xf32> to vector<17x32xf32>
    %116 = arith.addf %114, %115 : vector<17x32xf32>
    %cst_45 = arith.constant dense<0.000000e+00> : vector<17xf32>
    %117 = vector.multi_reduction <add>, %116, %cst_45 [1] : vector<17x32xf32> to vector<17xf32>
    %118 = vector.shape_cast %117 : vector<17xf32> to vector<17x1xf32>
    %cst_46 = arith.constant 3.200000e+01 : f32
    %119 = vector.broadcast %cst_46 : f32 to vector<17x1xf32>
    %120 = arith.divf %118, %119 : vector<17x1xf32>
    %121 = vector.broadcast %120 : vector<17x1xf32> to vector<17x32xf32>
    %122 = arith.subf %116, %121 : vector<17x32xf32>
    %123 = arith.mulf %122, %122 : vector<17x32xf32>
    %cst_47 = arith.constant dense<0.000000e+00> : vector<17xf32>
    %124 = vector.multi_reduction <add>, %123, %cst_47 [1] : vector<17x32xf32> to vector<17xf32>
    %125 = vector.shape_cast %124 : vector<17xf32> to vector<17x1xf32>
    %cst_48 = arith.constant 3.200000e+01 : f32
    %126 = vector.broadcast %cst_48 : f32 to vector<17x1xf32>
    %127 = arith.divf %125, %126 : vector<17x1xf32>
    %128 = vector.broadcast %120 : vector<17x1xf32> to vector<17x32xf32>
    %129 = arith.subf %116, %128 : vector<17x32xf32>
    %cst_49 = arith.constant 9.99999997E-7 : f32
    %130 = vector.broadcast %cst_49 : f32 to vector<17x1xf32>
    %131 = arith.addf %127, %130 : vector<17x1xf32>
    %132 = math.rsqrt %131 : vector<17x1xf32>
    %133 = vector.broadcast %132 : vector<17x1xf32> to vector<17x32xf32>
    %134 = arith.mulf %129, %133 : vector<17x32xf32>
    %135 = vector.broadcast %12 : vector<1x32xf32> to vector<17x32xf32>
    %136 = arith.mulf %134, %135 : vector<17x32xf32>
    %137 = vector.broadcast %13 : vector<1x32xf32> to vector<17x32xf32>
    %138 = arith.addf %136, %137 : vector<17x32xf32>
    %c0_50 = arith.constant 0 : index
    %c0_51 = arith.constant 0 : index
    %c0_52 = arith.constant 0 : index
    %139 = vector.load %arg8[%c0_50, %c0_51, %c0_52] : memref<2x32x64xbf16, #tpu.memory_space<vmem>>, vector<1x32x64xbf16>
    %140 = vector.shape_cast %139 : vector<1x32x64xbf16> to vector<32x64xbf16>
    %141 = arith.truncf %138 : vector<17x32xf32> to vector<17x32xbf16>
    %cst_53 = arith.constant dense<0.000000e+00> : vector<17x64xf32>
    %142 = tpu.matmul %141, %140, %cst_53 {dimension_numbers = #tpu.dot_dimension_numbers<[1], [0], [0], [1], [0, 0, 1, 1], [], []>} : vector<17x32xbf16>, vector<32x64xbf16>, vector<17x64xf32> -> vector<17x64xf32>
    %c0_54 = arith.constant 0 : index
    %c0_55 = arith.constant 0 : index
    %c0_56 = arith.constant 0 : index
    %143 = vector.load %arg9[%c0_54, %c0_55, %c0_56] : memref<2x1x64xf32, #tpu.memory_space<vmem>>, vector<1x1x64xf32>
    %144 = vector.shape_cast %143 : vector<1x1x64xf32> to vector<1x64xf32>
    %145 = vector.broadcast %144 : vector<1x64xf32> to vector<17x64xf32>
    %146 = arith.addf %142, %145 : vector<17x64xf32>
    %cst_57 = arith.constant 5.000000e-01 : f32
    %147 = vector.broadcast %cst_57 : f32 to vector<17x64xf32>
    %148 = arith.mulf %147, %146 : vector<17x64xf32>
    %cst_58 = arith.constant 4.471500e-02 : f32
    %149 = vector.broadcast %cst_58 : f32 to vector<17x64xf32>
    %150 = arith.mulf %149, %146 : vector<17x64xf32>
    %151 = arith.mulf %150, %146 : vector<17x64xf32>
    %152 = arith.mulf %151, %146 : vector<17x64xf32>
    %153 = arith.addf %146, %152 : vector<17x64xf32>
    %cst_59 = arith.constant 0.797884583 : f32
    %154 = vector.broadcast %cst_59 : f32 to vector<17x64xf32>
    %155 = arith.mulf %154, %153 : vector<17x64xf32>
    %156 = math.tanh %155 : vector<17x64xf32>
    %cst_60 = arith.constant 1.000000e+00 : f32
    %157 = vector.broadcast %cst_60 : f32 to vector<17x64xf32>
    %158 = arith.addf %157, %156 : vector<17x64xf32>
    %159 = arith.mulf %148, %158 : vector<17x64xf32>
    %c0_61 = arith.constant 0 : index
    %c0_62 = arith.constant 0 : index
    %c0_63 = arith.constant 0 : index
    %160 = vector.load %arg10[%c0_61, %c0_62, %c0_63] : memref<2x64x32xbf16, #tpu.memory_space<vmem>>, vector<1x64x32xbf16>
    %161 = vector.shape_cast %160 : vector<1x64x32xbf16> to vector<64x32xbf16>
    %162 = arith.truncf %159 : vector<17x64xf32> to vector<17x64xbf16>
    %cst_64 = arith.constant dense<0.000000e+00> : vector<17x32xf32>
    %163 = tpu.matmul %162, %161, %cst_64 {dimension_numbers = #tpu.dot_dimension_numbers<[1], [0], [0], [1], [0, 0, 1, 1], [], []>} : vector<17x64xbf16>, vector<64x32xbf16>, vector<17x32xf32> -> vector<17x32xf32>
    %164 = arith.addf %116, %163 : vector<17x32xf32>
    %165 = vector.broadcast %14 : vector<1x32xf32> to vector<17x32xf32>
    %166 = arith.addf %164, %165 : vector<17x32xf32>
    %c1 = arith.constant 1 : index
    %c0_65 = arith.constant 0 : index
    %c0_66 = arith.constant 0 : index
    %167 = vector.load %arg7[%c1, %c0_65, %c0_66] : memref<2x6x32xf32, #tpu.memory_space<vmem>>, vector<1x6x32xf32>
    %168 = vector.shape_cast %167 : vector<1x6x32xf32> to vector<6x32xf32>
    %169 = vector.extract_strided_slice %168 {offsets = [0, 0], sizes = [1, 32], strides = [1, 1]} : vector<6x32xf32> to vector<1x32xf32>
    %170 = vector.extract_strided_slice %168 {offsets = [1, 0], sizes = [1, 32], strides = [1, 1]} : vector<6x32xf32> to vector<1x32xf32>
    %171 = vector.extract_strided_slice %168 {offsets = [2, 0], sizes = [1, 32], strides = [1, 1]} : vector<6x32xf32> to vector<1x32xf32>
    %172 = vector.extract_strided_slice %168 {offsets = [3, 0], sizes = [1, 32], strides = [1, 1]} : vector<6x32xf32> to vector<1x32xf32>
    %173 = vector.extract_strided_slice %168 {offsets = [4, 0], sizes = [1, 32], strides = [1, 1]} : vector<6x32xf32> to vector<1x32xf32>
    %174 = vector.extract_strided_slice %168 {offsets = [5, 0], sizes = [1, 32], strides = [1, 1]} : vector<6x32xf32> to vector<1x32xf32>
    %cst_67 = arith.constant dense<0.000000e+00> : vector<17xf32>
    %175 = vector.multi_reduction <add>, %166, %cst_67 [1] : vector<17x32xf32> to vector<17xf32>
    %176 = vector.shape_cast %175 : vector<17xf32> to vector<17x1xf32>
    %cst_68 = arith.constant 3.200000e+01 : f32
    %177 = vector.broadcast %cst_68 : f32 to vector<17x1xf32>
    %178 = arith.divf %176, %177 : vector<17x1xf32>
    %179 = vector.broadcast %178 : vector<17x1xf32> to vector<17x32xf32>
    %180 = arith.subf %166, %179 : vector<17x32xf32>
    %181 = arith.mulf %180, %180 : vector<17x32xf32>
    %cst_69 = arith.constant dense<0.000000e+00> : vector<17xf32>
    %182 = vector.multi_reduction <add>, %181, %cst_69 [1] : vector<17x32xf32> to vector<17xf32>
    %183 = vector.shape_cast %182 : vector<17xf32> to vector<17x1xf32>
    %cst_70 = arith.constant 3.200000e+01 : f32
    %184 = vector.broadcast %cst_70 : f32 to vector<17x1xf32>
    %185 = arith.divf %183, %184 : vector<17x1xf32>
    %186 = vector.broadcast %178 : vector<17x1xf32> to vector<17x32xf32>
    %187 = arith.subf %166, %186 : vector<17x32xf32>
    %cst_71 = arith.constant 9.99999997E-7 : f32
    %188 = vector.broadcast %cst_71 : f32 to vector<17x1xf32>
    %189 = arith.addf %185, %188 : vector<17x1xf32>
    %190 = math.rsqrt %189 : vector<17x1xf32>
    %191 = vector.broadcast %190 : vector<17x1xf32> to vector<17x32xf32>
    %192 = arith.mulf %187, %191 : vector<17x32xf32>
    %193 = vector.broadcast %169 : vector<1x32xf32> to vector<17x32xf32>
    %194 = arith.mulf %192, %193 : vector<17x32xf32>
    %195 = vector.broadcast %170 : vector<1x32xf32> to vector<17x32xf32>
    %196 = arith.addf %194, %195 : vector<17x32xf32>
    %c1_72 = arith.constant 1 : index
    %c0_73 = arith.constant 0 : index
    %c0_74 = arith.constant 0 : index
    %197 = vector.load %arg4[%c1_72, %c0_73, %c0_74] : memref<2x32x96xbf16, #tpu.memory_space<vmem>>, vector<1x32x96xbf16>
    %198 = vector.shape_cast %197 : vector<1x32x96xbf16> to vector<32x96xbf16>
    %199 = arith.truncf %196 : vector<17x32xf32> to vector<17x32xbf16>
    %cst_75 = arith.constant dense<0.000000e+00> : vector<17x96xf32>
    %200 = tpu.matmul %199, %198, %cst_75 {dimension_numbers = #tpu.dot_dimension_numbers<[1], [0], [0], [1], [0, 0, 1, 1], [], []>} : vector<17x32xbf16>, vector<32x96xbf16>, vector<17x96xf32> -> vector<17x96xf32>
    %c1_76 = arith.constant 1 : index
    %c0_77 = arith.constant 0 : index
    %c0_78 = arith.constant 0 : index
    %201 = vector.load %arg5[%c1_76, %c0_77, %c0_78] : memref<2x1x96xf32, #tpu.memory_space<vmem>>, vector<1x1x96xf32>
    %202 = vector.shape_cast %201 : vector<1x1x96xf32> to vector<1x96xf32>
    %203 = vector.broadcast %202 : vector<1x96xf32> to vector<17x96xf32>
    %204 = arith.addf %200, %203 : vector<17x96xf32>
    %205 = vector.extract_strided_slice %204 {offsets = [0, 0], sizes = [17, 8], strides = [1, 1]} : vector<17x96xf32> to vector<17x8xf32>
    %206 = vector.extract_strided_slice %204 {offsets = [0, 32], sizes = [17, 8], strides = [1, 1]} : vector<17x96xf32> to vector<17x8xf32>
    %207 = vector.extract_strided_slice %204 {offsets = [0, 64], sizes = [17, 8], strides = [1, 1]} : vector<17x96xf32> to vector<17x8xf32>
    "tpu.trace_start"() <{level = 10 : i32, message = "ie,je->ij"}> : () -> ()
    %cst_79 = arith.constant dense<0.000000e+00> : vector<17x17xf32>
    %208 = tpu.matmul %205, %206, %cst_79 {dimension_numbers = #tpu.dot_dimension_numbers<[1], [1], [0], [0], [0, 0, 1, 0], [], []>} : vector<17x8xf32>, vector<17x8xf32>, vector<17x17xf32> -> vector<17x17xf32>
    "tpu.trace_stop"() : () -> ()
    %cst_80 = arith.constant 0.353553385 : f32
    %209 = vector.broadcast %cst_80 : f32 to vector<17x17xf32>
    %210 = arith.mulf %208, %209 : vector<17x17xf32>
    %cst_81 = arith.constant dense<0xFF800000> : vector<17xf32>
    %211 = vector.multi_reduction <maximumf>, %210, %cst_81 [1] : vector<17x17xf32> to vector<17xf32>
    %212 = vector.shape_cast %211 : vector<17xf32> to vector<17x1xf32>
    %213 = vector.broadcast %212 : vector<17x1xf32> to vector<17x17xf32>
    %214 = arith.subf %210, %213 : vector<17x17xf32>
    %215 = math.exp %214 : vector<17x17xf32>
    %cst_82 = arith.constant dense<0.000000e+00> : vector<17xf32>
    %216 = vector.multi_reduction <add>, %215, %cst_82 [1] : vector<17x17xf32> to vector<17xf32>
    %217 = vector.shape_cast %216 : vector<17xf32> to vector<17x1xf32>
    %218 = vector.broadcast %217 : vector<17x1xf32> to vector<17x17xf32>
    %219 = arith.divf %215, %218 : vector<17x17xf32>
    %220 = vector.extract_strided_slice %219 {offsets = [0, 0], sizes = [1, 17], strides = [1, 1]} : vector<17x17xf32> to vector<1x17xf32>
    %cst_83 = arith.constant dense<0.000000e+00> : vector<17x8xf32>
    %221 = tpu.matmul %219, %207, %cst_83 {dimension_numbers = #tpu.dot_dimension_numbers<[1], [0], [0], [1], [0, 0, 1, 1], [], []>} : vector<17x17xf32>, vector<17x8xf32>, vector<17x8xf32> -> vector<17x8xf32>
    %222 = vector.extract_strided_slice %204 {offsets = [0, 8], sizes = [17, 8], strides = [1, 1]} : vector<17x96xf32> to vector<17x8xf32>
    %223 = vector.extract_strided_slice %204 {offsets = [0, 40], sizes = [17, 8], strides = [1, 1]} : vector<17x96xf32> to vector<17x8xf32>
    %224 = vector.extract_strided_slice %204 {offsets = [0, 72], sizes = [17, 8], strides = [1, 1]} : vector<17x96xf32> to vector<17x8xf32>
    "tpu.trace_start"() <{level = 10 : i32, message = "ie,je->ij"}> : () -> ()
    %cst_84 = arith.constant dense<0.000000e+00> : vector<17x17xf32>
    %225 = tpu.matmul %222, %223, %cst_84 {dimension_numbers = #tpu.dot_dimension_numbers<[1], [1], [0], [0], [0, 0, 1, 0], [], []>} : vector<17x8xf32>, vector<17x8xf32>, vector<17x17xf32> -> vector<17x17xf32>
    "tpu.trace_stop"() : () -> ()
    %cst_85 = arith.constant 0.353553385 : f32
    %226 = vector.broadcast %cst_85 : f32 to vector<17x17xf32>
    %227 = arith.mulf %225, %226 : vector<17x17xf32>
    %cst_86 = arith.constant dense<0xFF800000> : vector<17xf32>
    %228 = vector.multi_reduction <maximumf>, %227, %cst_86 [1] : vector<17x17xf32> to vector<17xf32>
    %229 = vector.shape_cast %228 : vector<17xf32> to vector<17x1xf32>
    %230 = vector.broadcast %229 : vector<17x1xf32> to vector<17x17xf32>
    %231 = arith.subf %227, %230 : vector<17x17xf32>
    %232 = math.exp %231 : vector<17x17xf32>
    %cst_87 = arith.constant dense<0.000000e+00> : vector<17xf32>
    %233 = vector.multi_reduction <add>, %232, %cst_87 [1] : vector<17x17xf32> to vector<17xf32>
    %234 = vector.shape_cast %233 : vector<17xf32> to vector<17x1xf32>
    %235 = vector.broadcast %234 : vector<17x1xf32> to vector<17x17xf32>
    %236 = arith.divf %232, %235 : vector<17x17xf32>
    %237 = vector.extract_strided_slice %236 {offsets = [0, 0], sizes = [1, 17], strides = [1, 1]} : vector<17x17xf32> to vector<1x17xf32>
    %cst_88 = arith.constant dense<0.000000e+00> : vector<17x8xf32>
    %238 = tpu.matmul %236, %224, %cst_88 {dimension_numbers = #tpu.dot_dimension_numbers<[1], [0], [0], [1], [0, 0, 1, 1], [], []>} : vector<17x17xf32>, vector<17x8xf32>, vector<17x8xf32> -> vector<17x8xf32>
    %239 = vector.extract_strided_slice %204 {offsets = [0, 16], sizes = [17, 8], strides = [1, 1]} : vector<17x96xf32> to vector<17x8xf32>
    %240 = vector.extract_strided_slice %204 {offsets = [0, 48], sizes = [17, 8], strides = [1, 1]} : vector<17x96xf32> to vector<17x8xf32>
    %241 = vector.extract_strided_slice %204 {offsets = [0, 80], sizes = [17, 8], strides = [1, 1]} : vector<17x96xf32> to vector<17x8xf32>
    "tpu.trace_start"() <{level = 10 : i32, message = "ie,je->ij"}> : () -> ()
    %cst_89 = arith.constant dense<0.000000e+00> : vector<17x17xf32>
    %242 = tpu.matmul %239, %240, %cst_89 {dimension_numbers = #tpu.dot_dimension_numbers<[1], [1], [0], [0], [0, 0, 1, 0], [], []>} : vector<17x8xf32>, vector<17x8xf32>, vector<17x17xf32> -> vector<17x17xf32>
    "tpu.trace_stop"() : () -> ()
    %cst_90 = arith.constant 0.353553385 : f32
    %243 = vector.broadcast %cst_90 : f32 to vector<17x17xf32>
    %244 = arith.mulf %242, %243 : vector<17x17xf32>
    %cst_91 = arith.constant dense<0xFF800000> : vector<17xf32>
    %245 = vector.multi_reduction <maximumf>, %244, %cst_91 [1] : vector<17x17xf32> to vector<17xf32>
    %246 = vector.shape_cast %245 : vector<17xf32> to vector<17x1xf32>
    %247 = vector.broadcast %246 : vector<17x1xf32> to vector<17x17xf32>
    %248 = arith.subf %244, %247 : vector<17x17xf32>
    %249 = math.exp %248 : vector<17x17xf32>
    %cst_92 = arith.constant dense<0.000000e+00> : vector<17xf32>
    %250 = vector.multi_reduction <add>, %249, %cst_92 [1] : vector<17x17xf32> to vector<17xf32>
    %251 = vector.shape_cast %250 : vector<17xf32> to vector<17x1xf32>
    %252 = vector.broadcast %251 : vector<17x1xf32> to vector<17x17xf32>
    %253 = arith.divf %249, %252 : vector<17x17xf32>
    %254 = vector.extract_strided_slice %253 {offsets = [0, 0], sizes = [1, 17], strides = [1, 1]} : vector<17x17xf32> to vector<1x17xf32>
    %cst_93 = arith.constant dense<0.000000e+00> : vector<17x8xf32>
    %255 = tpu.matmul %253, %241, %cst_93 {dimension_numbers = #tpu.dot_dimension_numbers<[1], [0], [0], [1], [0, 0, 1, 1], [], []>} : vector<17x17xf32>, vector<17x8xf32>, vector<17x8xf32> -> vector<17x8xf32>
    %256 = vector.extract_strided_slice %204 {offsets = [0, 24], sizes = [17, 8], strides = [1, 1]} : vector<17x96xf32> to vector<17x8xf32>
    %257 = vector.extract_strided_slice %204 {offsets = [0, 56], sizes = [17, 8], strides = [1, 1]} : vector<17x96xf32> to vector<17x8xf32>
    %258 = vector.extract_strided_slice %204 {offsets = [0, 88], sizes = [17, 8], strides = [1, 1]} : vector<17x96xf32> to vector<17x8xf32>
    "tpu.trace_start"() <{level = 10 : i32, message = "ie,je->ij"}> : () -> ()
    %cst_94 = arith.constant dense<0.000000e+00> : vector<17x17xf32>
    %259 = tpu.matmul %256, %257, %cst_94 {dimension_numbers = #tpu.dot_dimension_numbers<[1], [1], [0], [0], [0, 0, 1, 0], [], []>} : vector<17x8xf32>, vector<17x8xf32>, vector<17x17xf32> -> vector<17x17xf32>
    "tpu.trace_stop"() : () -> ()
    %cst_95 = arith.constant 0.353553385 : f32
    %260 = vector.broadcast %cst_95 : f32 to vector<17x17xf32>
    %261 = arith.mulf %259, %260 : vector<17x17xf32>
    %cst_96 = arith.constant dense<0xFF800000> : vector<17xf32>
    %262 = vector.multi_reduction <maximumf>, %261, %cst_96 [1] : vector<17x17xf32> to vector<17xf32>
    %263 = vector.shape_cast %262 : vector<17xf32> to vector<17x1xf32>
    %264 = vector.broadcast %263 : vector<17x1xf32> to vector<17x17xf32>
    %265 = arith.subf %261, %264 : vector<17x17xf32>
    %266 = math.exp %265 : vector<17x17xf32>
    %cst_97 = arith.constant dense<0.000000e+00> : vector<17xf32>
    %267 = vector.multi_reduction <add>, %266, %cst_97 [1] : vector<17x17xf32> to vector<17xf32>
    %268 = vector.shape_cast %267 : vector<17xf32> to vector<17x1xf32>
    %269 = vector.broadcast %268 : vector<17x1xf32> to vector<17x17xf32>
    %270 = arith.divf %266, %269 : vector<17x17xf32>
    %271 = vector.extract_strided_slice %270 {offsets = [0, 0], sizes = [1, 17], strides = [1, 1]} : vector<17x17xf32> to vector<1x17xf32>
    %cst_98 = arith.constant dense<0.000000e+00> : vector<17x8xf32>
    %272 = tpu.matmul %270, %258, %cst_98 {dimension_numbers = #tpu.dot_dimension_numbers<[1], [0], [0], [1], [0, 0, 1, 1], [], []>} : vector<17x17xf32>, vector<17x8xf32>, vector<17x8xf32> -> vector<17x8xf32>
    %273 = tpu.concatenate %221, %238, %255, %272 in 1 : vector<17x8xf32>, vector<17x8xf32>, vector<17x8xf32>, vector<17x8xf32> -> vector<17x32xf32>
    %c1_99 = arith.constant 1 : index
    %c0_100 = arith.constant 0 : index
    %c0_101 = arith.constant 0 : index
    %274 = vector.load %arg6[%c1_99, %c0_100, %c0_101] : memref<2x32x32xbf16, #tpu.memory_space<vmem>>, vector<1x32x32xbf16>
    %275 = vector.shape_cast %274 : vector<1x32x32xbf16> to vector<32x32xbf16>
    %276 = arith.truncf %273 : vector<17x32xf32> to vector<17x32xbf16>
    %cst_102 = arith.constant dense<0.000000e+00> : vector<17x32xf32>
    %277 = tpu.matmul %276, %275, %cst_102 {dimension_numbers = #tpu.dot_dimension_numbers<[1], [0], [0], [1], [0, 0, 1, 1], [], []>} : vector<17x32xbf16>, vector<32x32xbf16>, vector<17x32xf32> -> vector<17x32xf32>
    %278 = arith.addf %166, %277 : vector<17x32xf32>
    %279 = vector.broadcast %171 : vector<1x32xf32> to vector<17x32xf32>
    %280 = arith.addf %278, %279 : vector<17x32xf32>
    %cst_103 = arith.constant dense<0.000000e+00> : vector<17xf32>
    %281 = vector.multi_reduction <add>, %280, %cst_103 [1] : vector<17x32xf32> to vector<17xf32>
    %282 = vector.shape_cast %281 : vector<17xf32> to vector<17x1xf32>
    %cst_104 = arith.constant 3.200000e+01 : f32
    %283 = vector.broadcast %cst_104 : f32 to vector<17x1xf32>
    %284 = arith.divf %282, %283 : vector<17x1xf32>
    %285 = vector.broadcast %284 : vector<17x1xf32> to vector<17x32xf32>
    %286 = arith.subf %280, %285 : vector<17x32xf32>
    %287 = arith.mulf %286, %286 : vector<17x32xf32>
    %cst_105 = arith.constant dense<0.000000e+00> : vector<17xf32>
    %288 = vector.multi_reduction <add>, %287, %cst_105 [1] : vector<17x32xf32> to vector<17xf32>
    %289 = vector.shape_cast %288 : vector<17xf32> to vector<17x1xf32>
    %cst_106 = arith.constant 3.200000e+01 : f32
    %290 = vector.broadcast %cst_106 : f32 to vector<17x1xf32>
    %291 = arith.divf %289, %290 : vector<17x1xf32>
    %292 = vector.broadcast %284 : vector<17x1xf32> to vector<17x32xf32>
    %293 = arith.subf %280, %292 : vector<17x32xf32>
    %cst_107 = arith.constant 9.99999997E-7 : f32
    %294 = vector.broadcast %cst_107 : f32 to vector<17x1xf32>
    %295 = arith.addf %291, %294 : vector<17x1xf32>
    %296 = math.rsqrt %295 : vector<17x1xf32>
    %297 = vector.broadcast %296 : vector<17x1xf32> to vector<17x32xf32>
    %298 = arith.mulf %293, %297 : vector<17x32xf32>
    %299 = vector.broadcast %172 : vector<1x32xf32> to vector<17x32xf32>
    %300 = arith.mulf %298, %299 : vector<17x32xf32>
    %301 = vector.broadcast %173 : vector<1x32xf32> to vector<17x32xf32>
    %302 = arith.addf %300, %301 : vector<17x32xf32>
    %c1_108 = arith.constant 1 : index
    %c0_109 = arith.constant 0 : index
    %c0_110 = arith.constant 0 : index
    %303 = vector.load %arg8[%c1_108, %c0_109, %c0_110] : memref<2x32x64xbf16, #tpu.memory_space<vmem>>, vector<1x32x64xbf16>
    %304 = vector.shape_cast %303 : vector<1x32x64xbf16> to vector<32x64xbf16>
    %305 = arith.truncf %302 : vector<17x32xf32> to vector<17x32xbf16>
    %cst_111 = arith.constant dense<0.000000e+00> : vector<17x64xf32>
    %306 = tpu.matmul %305, %304, %cst_111 {dimension_numbers = #tpu.dot_dimension_numbers<[1], [0], [0], [1], [0, 0, 1, 1], [], []>} : vector<17x32xbf16>, vector<32x64xbf16>, vector<17x64xf32> -> vector<17x64xf32>
    %c1_112 = arith.constant 1 : index
    %c0_113 = arith.constant 0 : index
    %c0_114 = arith.constant 0 : index
    %307 = vector.load %arg9[%c1_112, %c0_113, %c0_114] : memref<2x1x64xf32, #tpu.memory_space<vmem>>, vector<1x1x64xf32>
    %308 = vector.shape_cast %307 : vector<1x1x64xf32> to vector<1x64xf32>
    %309 = vector.broadcast %308 : vector<1x64xf32> to vector<17x64xf32>
    %310 = arith.addf %306, %309 : vector<17x64xf32>
    %cst_115 = arith.constant 5.000000e-01 : f32
    %311 = vector.broadcast %cst_115 : f32 to vector<17x64xf32>
    %312 = arith.mulf %311, %310 : vector<17x64xf32>
    %cst_116 = arith.constant 4.471500e-02 : f32
    %313 = vector.broadcast %cst_116 : f32 to vector<17x64xf32>
    %314 = arith.mulf %313, %310 : vector<17x64xf32>
    %315 = arith.mulf %314, %310 : vector<17x64xf32>
    %316 = arith.mulf %315, %310 : vector<17x64xf32>
    %317 = arith.addf %310, %316 : vector<17x64xf32>
    %cst_117 = arith.constant 0.797884583 : f32
    %318 = vector.broadcast %cst_117 : f32 to vector<17x64xf32>
    %319 = arith.mulf %318, %317 : vector<17x64xf32>
    %320 = math.tanh %319 : vector<17x64xf32>
    %cst_118 = arith.constant 1.000000e+00 : f32
    %321 = vector.broadcast %cst_118 : f32 to vector<17x64xf32>
    %322 = arith.addf %321, %320 : vector<17x64xf32>
    %323 = arith.mulf %312, %322 : vector<17x64xf32>
    %c1_119 = arith.constant 1 : index
    %c0_120 = arith.constant 0 : index
    %c0_121 = arith.constant 0 : index
    %324 = vector.load %arg10[%c1_119, %c0_120, %c0_121] : memref<2x64x32xbf16, #tpu.memory_space<vmem>>, vector<1x64x32xbf16>
    %325 = vector.shape_cast %324 : vector<1x64x32xbf16> to vector<64x32xbf16>
    %326 = arith.truncf %323 : vector<17x64xf32> to vector<17x64xbf16>
    %cst_122 = arith.constant dense<0.000000e+00> : vector<17x32xf32>
    %327 = tpu.matmul %326, %325, %cst_122 {dimension_numbers = #tpu.dot_dimension_numbers<[1], [0], [0], [1], [0, 0, 1, 1], [], []>} : vector<17x64xbf16>, vector<64x32xbf16>, vector<17x32xf32> -> vector<17x32xf32>
    %328 = arith.addf %280, %327 : vector<17x32xf32>
    %329 = vector.broadcast %174 : vector<1x32xf32> to vector<17x32xf32>
    %330 = arith.addf %328, %329 : vector<17x32xf32>
    %331 = tpu.concatenate %220, %237, %254, %271 in 0 : vector<1x17xf32>, vector<1x17xf32>, vector<1x17xf32>, vector<1x17xf32> -> vector<4x17xf32>
    %c0_123 = arith.constant 0 : index
    %c0_124 = arith.constant 0 : index
    %c0_125 = arith.constant 0 : index
    %332 = vector.load %arg11[%c0_123, %c0_124, %c0_125] : memref<1x17x32xf32, #tpu.memory_space<vmem>>, vector<1x17x32xf32>
    %333 = vector.shape_cast %332 : vector<1x17x32xf32> to vector<17x32xf32>
    %334 = vector.shape_cast %330 : vector<17x32xf32> to vector<1x17x32xf32>
    tpu.vector_store %arg11[%c0_123, %c0_124, %c0_125], %334 {strides = array<i32>} : memref<1x17x32xf32, #tpu.memory_space<vmem>>, vector<1x17x32xf32>,
    %cst_126 = arith.constant 0.000000e+00 : f32
    %335 = vector.broadcast %cst_126 : f32 to vector<4x111xf32>
    %336 = tpu.concatenate %331, %335 in 1 : vector<4x17xf32>, vector<4x111xf32> -> vector<4x128xf32>
    %c0_127 = arith.constant 0 : index
    %c0_128 = arith.constant 0 : index
    %c0_129 = arith.constant 0 : index
    %337 = vector.load %arg12[%c0_127, %c0_128, %c0_129] : memref<1x4x128xf32, #tpu.memory_space<vmem>>, vector<1x4x128xf32>
    %338 = vector.shape_cast %337 : vector<1x4x128xf32> to vector<4x128xf32>
    %339 = vector.shape_cast %336 : vector<4x128xf32> to vector<1x4x128xf32>
    tpu.vector_store %arg12[%c0_127, %c0_128, %c0_129], %339 {strides = array<i32>} : memref<1x4x128xf32, #tpu.memory_space<vmem>>, vector<1x4x128xf32>,
    return
  }
  func.func @transform_0(%arg0: i32) -> (i32, i32, i32) {
    %c0_i32 = arith.constant 0 : i32
    %c0_i32_0 = arith.constant 0 : i32
    %c0_i32_1 = arith.constant 0 : i32
    return %arg0, %c0_i32, %c0_i32_0 : i32, i32, i32
  }
  func.func @transform_1(%arg0: i32) -> (i32, i32) {
    %c0_i32 = arith.constant 0 : i32
    %c0_i32_0 = arith.constant 0 : i32
    %c0_i32_1 = arith.constant 0 : i32
    return %c0_i32, %c0_i32_0 : i32, i32
  }
  func.func @transform_2(%arg0: i32) -> (i32, i32) {
    %c0_i32 = arith.constant 0 : i32
    %c0_i32_0 = arith.constant 0 : i32
    %c0_i32_1 = arith.constant 0 : i32
    return %c0_i32, %c0_i32_0 : i32, i32
  }
  func.func @transform_3(%arg0: i32) -> (i32, i32, i32) {
    %c0_i32 = arith.constant 0 : i32
    %c0_i32_0 = arith.constant 0 : i32
    %c0_i32_1 = arith.constant 0 : i32
    %c0_i32_2 = arith.constant 0 : i32
    return %c0_i32, %c0_i32_0, %c0_i32_1 : i32, i32, i32
  }
  func.func @transform_4(%arg0: i32) -> (i32, i32, i32) {
    %c0_i32 = arith.constant 0 : i32
    %c0_i32_0 = arith.constant 0 : i32
    %c0_i32_1 = arith.constant 0 : i32
    %c0_i32_2 = arith.constant 0 : i32
    return %c0_i32, %c0_i32_0, %c0_i32_1 : i32, i32, i32
  }
  func.func @transform_5(%arg0: i32) -> (i32, i32, i32) {
    %c0_i32 = arith.constant 0 : i32
    %c0_i32_0 = arith.constant 0 : i32
    %c0_i32_1 = arith.constant 0 : i32
    %c0_i32_2 = arith.constant 0 : i32
    return %c0_i32, %c0_i32_0, %c0_i32_1 : i32, i32, i32
  }
  func.func @transform_6(%arg0: i32) -> (i32, i32, i32) {
    %c0_i32 = arith.constant 0 : i32
    %c0_i32_0 = arith.constant 0 : i32
    %c0_i32_1 = arith.constant 0 : i32
    %c0_i32_2 = arith.constant 0 : i32
    return %c0_i32, %c0_i32_0, %c0_i32_1 : i32, i32, i32
  }
  func.func @transform_7(%arg0: i32) -> (i32, i32, i32) {
    %c0_i32 = arith.constant 0 : i32
    %c0_i32_0 = arith.constant 0 : i32
    %c0_i32_1 = arith.constant 0 : i32
    %c0_i32_2 = arith.constant 0 : i32
    return %c0_i32, %c0_i32_0, %c0_i32_1 : i32, i32, i32
  }
  func.func @transform_8(%arg0: i32) -> (i32, i32, i32) {
    %c0_i32 = arith.constant 0 : i32
    %c0_i32_0 = arith.constant 0 : i32
    %c0_i32_1 = arith.constant 0 : i32
    %c0_i32_2 = arith.constant 0 : i32
    return %c0_i32, %c0_i32_0, %c0_i32_1 : i32, i32, i32
  }
  func.func @transform_9(%arg0: i32) -> (i32, i32, i32) {
    %c0_i32 = arith.constant 0 : i32
    %c0_i32_0 = arith.constant 0 : i32
    %c0_i32_1 = arith.constant 0 : i32
    %c0_i32_2 = arith.constant 0 : i32
    return %c0_i32, %c0_i32_0, %c0_i32_1 : i32, i32, i32
  }
  func.func @transform_10(%arg0: i32) -> (i32, i32, i32) {
    %c0_i32 = arith.constant 0 : i32
    %c0_i32_0 = arith.constant 0 : i32
    %c0_i32_1 = arith.constant 0 : i32
    return %arg0, %c0_i32, %c0_i32_0 : i32, i32, i32
  }
  func.func @transform_11(%arg0: i32) -> (i32, i32, i32) {
    %c0_i32 = arith.constant 0 : i32
    %c0_i32_0 = arith.constant 0 : i32
    %c0_i32_1 = arith.constant 0 : i32
    return %arg0, %c0_i32, %c0_i32_0 : i32, i32, i32
  }
}

module attributes {stable_mosaic.version = 11 : i64} {
  func.func @_gcn_struct_kernel(%arg0: i32, %arg1: memref<2xi32, #tpu.memory_space<smem>>, %arg2: memref<1x16x2xf32, #tpu.memory_space<vmem>>, %arg3: memref<1x16x16xf32, #tpu.memory_space<vmem>>, %arg4: memref<1x17x32xf32, #tpu.memory_space<vmem>>, %arg5: memref<2x512xf32, #tpu.memory_space<vmem>>, %arg6: memref<512x32xbf16, #tpu.memory_space<vmem>>, %arg7: memref<2x32xf32, #tpu.memory_space<vmem>>, %arg8: memref<1x17x32xf32, #tpu.memory_space<vmem>>, %arg9: memref<16x32xf32, #tpu.memory_space<vmem>>) attributes {dimension_semantics = [#tpu.dimension_semantics<parallel>], iteration_bounds = array<i64: 2>, scalar_prefetch = 1 : i64, scratch_operands = 1 : i64, tpu.core_type = #tpu.core_type<tc>, window_params = [{transform_indices = @transform_0, window_bounds = array<i64: 1, 16, 2>}, {transform_indices = @transform_1, window_bounds = array<i64: 1, 16, 16>}, {transform_indices = @transform_2, window_bounds = array<i64: 1, 17, 32>}, {pipeline_mode = #tpu.pipeline_mode<synchronous>, transform_indices = @transform_3, window_bounds = array<i64: 2, 512>}, {pipeline_mode = #tpu.pipeline_mode<synchronous>, transform_indices = @transform_4, window_bounds = array<i64: 512, 32>}, {pipeline_mode = #tpu.pipeline_mode<synchronous>, transform_indices = @transform_5, window_bounds = array<i64: 2, 32>}, {transform_indices = @transform_6, window_bounds = array<i64: 1, 17, 32>}]} {
    %c1_i32 = arith.constant 1 : i32
    %0 = arith.muli %arg0, %c1_i32 : i32
    %c0 = arith.constant 0 : index
    %c0_0 = arith.constant 0 : index
    %1 = vector.load %arg5[%c0, %c0_0] : memref<2x512xf32, #tpu.memory_space<vmem>>, vector<2x512xf32>
    %c0_1 = arith.constant 0 : index
    %c0_2 = arith.constant 0 : index
    %c0_3 = arith.constant 0 : index
    %2 = vector.load %arg2[%c0_1, %c0_2, %c0_3] : memref<1x16x2xf32, #tpu.memory_space<vmem>>, vector<1x16x2xf32>
    %3 = vector.shape_cast %2 : vector<1x16x2xf32> to vector<16x2xf32>
    %c0_4 = arith.constant 0 : index
    %c0_5 = arith.constant 0 : index
    %c0_6 = arith.constant 0 : index
    %4 = vector.load %arg3[%c0_4, %c0_5, %c0_6] : memref<1x16x16xf32, #tpu.memory_space<vmem>>, vector<1x16x16xf32>
    %5 = vector.shape_cast %4 : vector<1x16x16xf32> to vector<16x16xf32>
    %6 = vector.extract_strided_slice %3 {offsets = [0, 0], sizes = [16, 1], strides = [1, 1]} : vector<16x2xf32> to vector<16x1xf32>
    %7 = vector.extract_strided_slice %1 {offsets = [0, 0], sizes = [1, 512], strides = [1, 1]} : vector<2x512xf32> to vector<1x512xf32>
    %8 = vector.broadcast %6 : vector<16x1xf32> to vector<16x512xf32>
    %9 = vector.broadcast %7 : vector<1x512xf32> to vector<16x512xf32>
    %10 = arith.mulf %8, %9 : vector<16x512xf32>
    %11 = vector.extract_strided_slice %3 {offsets = [0, 1], sizes = [16, 1], strides = [1, 1]} : vector<16x2xf32> to vector<16x1xf32>
    %12 = vector.extract_strided_slice %1 {offsets = [1, 0], sizes = [1, 512], strides = [1, 1]} : vector<2x512xf32> to vector<1x512xf32>
    %13 = vector.broadcast %11 : vector<16x1xf32> to vector<16x512xf32>
    %14 = vector.broadcast %12 : vector<1x512xf32> to vector<16x512xf32>
    %15 = arith.mulf %13, %14 : vector<16x512xf32>
    %16 = arith.addf %10, %15 : vector<16x512xf32>
    %17 = arith.truncf %5 : vector<16x16xf32> to vector<16x16xbf16>
    %18 = arith.truncf %16 : vector<16x512xf32> to vector<16x512xbf16>
    %cst = arith.constant dense<0.000000e+00> : vector<16x512xf32>
    %19 = tpu.matmul %17, %18, %cst {dimension_numbers = #tpu.dot_dimension_numbers<[1], [0], [0], [1], [0, 0, 1, 1], [], []>} : vector<16x16xbf16>, vector<16x512xbf16>, vector<16x512xf32> -> vector<16x512xf32>
    %cst_7 = arith.constant 0.000000e+00 : f32
    %20 = vector.broadcast %cst_7 : f32 to vector<16x512xf32>
    %21 = arith.maximumf %19, %20 : vector<16x512xf32>
    %c0_8 = arith.constant 0 : index
    %c0_9 = arith.constant 0 : index
    %22 = vector.load %arg6[%c0_8, %c0_9] : memref<512x32xbf16, #tpu.memory_space<vmem>>, vector<512x32xbf16>
    %23 = arith.truncf %21 : vector<16x512xf32> to vector<16x512xbf16>
    %cst_10 = arith.constant dense<0.000000e+00> : vector<16x32xf32>
    %24 = tpu.matmul %23, %22, %cst_10 {dimension_numbers = #tpu.dot_dimension_numbers<[1], [0], [0], [1], [0, 0, 1, 1], [], []>} : vector<16x512xbf16>, vector<512x32xbf16>, vector<16x32xf32> -> vector<16x32xf32>
    %25 = arith.truncf %5 : vector<16x16xf32> to vector<16x16xbf16>
    %26 = arith.truncf %24 : vector<16x32xf32> to vector<16x32xbf16>
    %cst_11 = arith.constant dense<0.000000e+00> : vector<16x32xf32>
    %27 = tpu.matmul %25, %26, %cst_11 {dimension_numbers = #tpu.dot_dimension_numbers<[1], [0], [0], [1], [0, 0, 1, 1], [], []>} : vector<16x16xbf16>, vector<16x32xbf16>, vector<16x32xf32> -> vector<16x32xf32>
    %cst_12 = arith.constant 0.000000e+00 : f32
    %28 = vector.broadcast %cst_12 : f32 to vector<16x32xf32>
    %29 = arith.cmpf ogt, %27, %28 : vector<16x32xf32>
    %cst_13 = arith.constant 2.000000e-01 : f32
    %30 = vector.broadcast %cst_13 : f32 to vector<16x32xf32>
    %31 = arith.mulf %30, %27 : vector<16x32xf32>
    %32 = arith.select %29, %27, %31 : vector<16x32xi1>, vector<16x32xf32>
    %c0_14 = arith.constant 0 : index
    %c0_15 = arith.constant 0 : index
    %33 = vector.load %arg9[%c0_14, %c0_15] : memref<16x32xf32, #tpu.memory_space<vmem>>, vector<16x32xf32>
    tpu.vector_store %arg9[%c0_14, %c0_15], %32 {strides = array<i32>} : memref<16x32xf32, #tpu.memory_space<vmem>>, vector<16x32xf32>,
    %c0_i32 = arith.constant 0 : i32
    %34 = arith.addi %0, %c0_i32 : i32
    %35 = arith.index_cast %34 : i32 to index
    %36 = memref.load %arg1[%35] : memref<2xi32, #tpu.memory_space<smem>>
    %37 = arith.index_cast %36 : i32 to index
    %c0_16 = arith.constant 0 : index
    %38 = vector.load %arg9[%37, %c0_16] : memref<16x32xf32, #tpu.memory_space<vmem>>, vector<1x32xf32>
    %c0_17 = arith.constant 0 : index
    %c0_18 = arith.constant 0 : index
    %c0_19 = arith.constant 0 : index
    %39 = vector.load %arg4[%c0_17, %c0_18, %c0_19] : memref<1x17x32xf32, #tpu.memory_space<vmem>>, vector<1x17x32xf32>
    %40 = vector.shape_cast %39 : vector<1x17x32xf32> to vector<17x32xf32>
    %41 = tpu.iota {dimensions = array<i32: 0>} : vector<17x32xi32>
    %c0_i32_20 = arith.constant 0 : i32
    %42 = vector.broadcast %c0_i32_20 : i32 to vector<17x32xi32>
    %43 = arith.cmpi eq, %41, %42 : vector<17x32xi32>
    %44 = vector.broadcast %38 : vector<1x32xf32> to vector<17x32xf32>
    %45 = arith.addf %40, %44 : vector<17x32xf32>
    %46 = arith.select %43, %45, %40 : vector<17x32xi1>, vector<17x32xf32>
    %cst_21 = arith.constant dense<0.000000e+00> : vector<17xf32>
    %47 = vector.multi_reduction <add>, %46, %cst_21 [1] : vector<17x32xf32> to vector<17xf32>
    %48 = vector.shape_cast %47 : vector<17xf32> to vector<17x1xf32>
    %cst_22 = arith.constant 3.200000e+01 : f32
    %49 = vector.broadcast %cst_22 : f32 to vector<17x1xf32>
    %50 = arith.divf %48, %49 : vector<17x1xf32>
    %51 = vector.broadcast %50 : vector<17x1xf32> to vector<17x32xf32>
    %52 = arith.subf %46, %51 : vector<17x32xf32>
    %53 = arith.mulf %52, %52 : vector<17x32xf32>
    %cst_23 = arith.constant dense<0.000000e+00> : vector<17xf32>
    %54 = vector.multi_reduction <add>, %53, %cst_23 [1] : vector<17x32xf32> to vector<17xf32>
    %55 = vector.shape_cast %54 : vector<17xf32> to vector<17x1xf32>
    %cst_24 = arith.constant 3.200000e+01 : f32
    %56 = vector.broadcast %cst_24 : f32 to vector<17x1xf32>
    %57 = arith.divf %55, %56 : vector<17x1xf32>
    %58 = vector.broadcast %50 : vector<17x1xf32> to vector<17x32xf32>
    %59 = arith.subf %46, %58 : vector<17x32xf32>
    %cst_25 = arith.constant 9.99999997E-7 : f32
    %60 = vector.broadcast %cst_25 : f32 to vector<17x1xf32>
    %61 = arith.addf %57, %60 : vector<17x1xf32>
    %62 = math.rsqrt %61 : vector<17x1xf32>
    %63 = vector.broadcast %62 : vector<17x1xf32> to vector<17x32xf32>
    %64 = arith.mulf %59, %63 : vector<17x32xf32>
    %c0_26 = arith.constant 0 : index
    %c0_27 = arith.constant 0 : index
    %65 = vector.load %arg7[%c0_26, %c0_27] : memref<2x32xf32, #tpu.memory_space<vmem>>, vector<1x32xf32>
    %66 = vector.broadcast %65 : vector<1x32xf32> to vector<17x32xf32>
    %67 = arith.mulf %64, %66 : vector<17x32xf32>
    %c1 = arith.constant 1 : index
    %c0_28 = arith.constant 0 : index
    %68 = vector.load %arg7[%c1, %c0_28] : memref<2x32xf32, #tpu.memory_space<vmem>>, vector<1x32xf32>
    %69 = vector.broadcast %68 : vector<1x32xf32> to vector<17x32xf32>
    %70 = arith.addf %67, %69 : vector<17x32xf32>
    %c0_29 = arith.constant 0 : index
    %c0_30 = arith.constant 0 : index
    %c0_31 = arith.constant 0 : index
    %71 = vector.load %arg8[%c0_29, %c0_30, %c0_31] : memref<1x17x32xf32, #tpu.memory_space<vmem>>, vector<1x17x32xf32>
    %72 = vector.shape_cast %71 : vector<1x17x32xf32> to vector<17x32xf32>
    %73 = vector.shape_cast %70 : vector<17x32xf32> to vector<1x17x32xf32>
    tpu.vector_store %arg8[%c0_29, %c0_30, %c0_31], %73 {strides = array<i32>} : memref<1x17x32xf32, #tpu.memory_space<vmem>>, vector<1x17x32xf32>,
    return
  }
  func.func @transform_0(%arg0: i32, %arg1: memref<2xi32, #tpu.memory_space<smem>>) -> (i32, i32, i32) {
    %c0_i32 = arith.constant 0 : i32
    %c0_i32_0 = arith.constant 0 : i32
    %c0_i32_1 = arith.constant 0 : i32
    return %arg0, %c0_i32, %c0_i32_0 : i32, i32, i32
  }
  func.func @transform_1(%arg0: i32, %arg1: memref<2xi32, #tpu.memory_space<smem>>) -> (i32, i32, i32) {
    %c0_i32 = arith.constant 0 : i32
    %c0_i32_0 = arith.constant 0 : i32
    %c0_i32_1 = arith.constant 0 : i32
    return %arg0, %c0_i32, %c0_i32_0 : i32, i32, i32
  }
  func.func @transform_2(%arg0: i32, %arg1: memref<2xi32, #tpu.memory_space<smem>>) -> (i32, i32, i32) {
    %c0_i32 = arith.constant 0 : i32
    %c0_i32_0 = arith.constant 0 : i32
    %c0_i32_1 = arith.constant 0 : i32
    return %arg0, %c0_i32, %c0_i32_0 : i32, i32, i32
  }
  func.func @transform_3(%arg0: i32, %arg1: memref<2xi32, #tpu.memory_space<smem>>) -> (i32, i32) {
    %c0_i32 = arith.constant 0 : i32
    %c0_i32_0 = arith.constant 0 : i32
    %c0_i32_1 = arith.constant 0 : i32
    return %c0_i32, %c0_i32_0 : i32, i32
  }
  func.func @transform_4(%arg0: i32, %arg1: memref<2xi32, #tpu.memory_space<smem>>) -> (i32, i32) {
    %c0_i32 = arith.constant 0 : i32
    %c0_i32_0 = arith.constant 0 : i32
    %c0_i32_1 = arith.constant 0 : i32
    return %c0_i32, %c0_i32_0 : i32, i32
  }
  func.func @transform_5(%arg0: i32, %arg1: memref<2xi32, #tpu.memory_space<smem>>) -> (i32, i32) {
    %c0_i32 = arith.constant 0 : i32
    %c0_i32_0 = arith.constant 0 : i32
    %c0_i32_1 = arith.constant 0 : i32
    return %c0_i32, %c0_i32_0 : i32, i32
  }
  func.func @transform_6(%arg0: i32, %arg1: memref<2xi32, #tpu.memory_space<smem>>) -> (i32, i32, i32) {
    %c0_i32 = arith.constant 0 : i32
    %c0_i32_0 = arith.constant 0 : i32
    %c0_i32_1 = arith.constant 0 : i32
    return %arg0, %c0_i32, %c0_i32_0 : i32, i32, i32
  }
}

</mosaic_0001>

<bundles_post_ra>
// kernel: transformer_forward.3
= control target key start
LH: loop header
LB: loop body
LE: loop exit
PB: predicated region body
PF: predicated region fallthrough
CT: control target
= control target key end

     0   :  { %s1494_s0 = inlined_call_operand.vmem [shape: s32[2], index: 0, kind: input, shape index: {}]   ;;  %s1495_s1 = inlined_call_operand.vmem [shape: f32[2,16,2], index: 1, kind: input, shape index: {}]   ;;  %s1496_s2 = inlined_call_operand.vmem [shape: f32[2,16,16], index: 2, kind: input, shape index: {}]   ;;  %s1497_s3 = inlined_call_operand.vmem [shape: f32[2,17,32], index: 3, kind: input, shape index: {}]   ;;  %s1498_s4 = inlined_call_operand.vmem [shape: f32[2,512], index: 4, kind: input, shape index: {}]   ;;  %s1499_s5 = inlined_call_operand.vmem [shape: bf16[512,32], index: 5, kind: input, shape index: {}]   ;;  %s1500_s6 = inlined_call_operand.vmem [shape: f32[2,32], index: 6, kind: input, shape index: {}]   ;;  %s1501_s7 = inlined_call_operand.vmem [shape: f32[2,17,32], index: 7, kind: output, shape index: {}]  }
   0x1   :  { %s12_s26 = sshll.u32 %s1494_s0, 4  ;;  %s13_s26 = int_to_ptr.vmem [resolvable:$true] %s12_s26 }
   0x2   :  { %s1239_s27 = scalar_lea.vmem %s13_s26, 16  ;;  %p1244_p1 = scmp.lt.s32.totalorder %s13_s26, %s13_s26 }
   0x3   :  { %p1240_p0 = scmp.ne.s32.totalorder %s13_s26, %s1239_s27  ;;  %p1245_p2 = scmp.lt.s32.totalorder %s1239_s27, %s1239_s27 }
   0x5   :  { %p1246_p3 = por %p1245_p2, %p1244_p1 }
   0x7   :  { %p1247_p4 = pnand %p1246_p3, %p1240_p0 }
   0x9   :  { %1250 = shalt.err (!%p1247_p4)  }
   0xa   :  { %s1261_s28 = smov [#allocation4]  }
   0xb   :  { %15 = dma.vmem_to_smem %s13_s26, 16, %s1261_s28, [#allocation3] }
   0xc   :  { %1255 = dma.done.wait [#allocation3], 16 }
   0xd   :  { %1256 = vsyncadd [#allocation3], 4294967280 }
   0xe   :  { %17 = sfence }
   0xf   :  { %s1309_s29 = smov 0  }
  0x10 LB: > { %s1315_s0 = sadd.s32 4294967295, %s1259_s29   ;;  %p1083_p5 = scmp.ge.s32.totalorder %s1259_s29, 1  ;;  %s1259_s29 = sphi %s1309_s29, %s23_s29  }
  0x11   : > { %p239_p6 = scmp.lt.s32.totalorder %s1259_s29, 3 }
  0x13   : > { %p240_p7 = pnand %p1083_p5, %p239_p6 }
  0x14   : > { %p279_p8 = scmp.lt.s32.totalorder (!%p240_p7), %s1315_s0, 1  ;;  %v1262_v0 = vmov (!%p240_p7), 1   ;;  %v1263_v1 = vmov (!%p240_p7), 0   ;;  %v316_v4 = vlaneseq (!%p240_p7)  ;;  %v300_v10 = vld [vmem:[%s1498_s4] sm:$0xff] (!%p240_p7)  ;;  %vm425_vm0 = vcmask (!%p240_p7), 130048   ;;  %s916_s22 = sld [smem:[#allocation4 + %s1315_s0]] (!%p240_p7) }
  0x15   : > { %243 = sbr.rel (%p240_p7) target bundleno = 1165 (0x48d), region = 44  ;;  %1199 = vset.pattern.permute.xlu1 (!%p240_p7), %v1262_v0  ;;  %1198 = vset.pattern.permute.xlu0 (!%p240_p7), %v1263_v1  ;;  %v1201_v63 = vld [vmem:[%s1499_s5 + $0x40] sm:$0xff] (!%p240_p7)   ;;  %vm1265_vm1 = vmmov (!%p240_p7), 0   ;;  %vm913_vm2 = vcmask (!%p240_p7), 261120   ;;  %vm945_vm6 = vcmask (!%p240_p7), 253952  }
  0x16   : > { %461 = vmatprep.mubr.bf16.mxu0 (!%p240_p7), %v1263_v1  ;;  %504 = vmatprep.mubr.bf16.mxu1 (!%p240_p7), %v1263_v1  ;;  %v1329_v5 = vshrl.u32 (!%p240_p7), %v316_v4, 7  ;;  %v1203_v4 = vld [vmem:[%s1499_s5] sm:$0xff] (!%p240_p7)  }
  0x18   : > { %v322_v6 = vsub.s32 (!%p240_p7), 2, %v1329_v5  ;;  %v374_v7 = vsub.s32 (!%p240_p7), 3, %v1329_v5  ;;  %v330_v8 = vsub.s32 (!%p240_p7), 6, %v1329_v5  ;;  %v382_v9 = vsub.s32 (!%p240_p7), 7, %v1329_v5 }
  0x19   : > { %v318_v11 = vsub.s32 (!%p240_p7), 0, %v1329_v5  ;;  %v370_v12 = vsub.s32 (!%p240_p7), 1, %v1329_v5  ;;  %v326_v13 = vsub.s32 (!%p240_p7), 4, %v1329_v5  ;;  %v378_v14 = vsub.s32 (!%p240_p7), 5, %v1329_v5 }
  0x1a   : > { %v323_v15 = vrot.slane (!%p240_p7), %v300_v10, %v322_v6  ;;  %v375_v16 = vrot.slane (!%p240_p7), %v300_v10, %v374_v7  ;;  %v331_v17 = vrot.slane (!%p240_p7), %v300_v10, %v330_v8  ;;  %v383_v18 = vrot.slane (!%p240_p7), %v300_v10, %v382_v9  ;;  %v1204_v6 = vld [vmem:[%s1499_s5 + $0x80] sm:$0xff] (!%p240_p7)   ;;  %v1205_v7 = vld [vmem:[%s1499_s5 + $0x48] sm:$0xff] (!%p240_p7)   ;;  %s917_s23 = scalar_lea.vmem (!%p240_p7), [#allocation2], %s916_s22 }
  0x1b   : > { %v319_v19 = vrot.slane (!%p240_p7), %v300_v10, %v318_v11  ;;  %v371_v20 = vrot.slane (!%p240_p7), %v300_v10, %v370_v12  ;;  %v327_v21 = vrot.slane (!%p240_p7), %v300_v10, %v326_v13  ;;  %v379_v22 = vrot.slane (!%p240_p7), %v300_v10, %v378_v14  ;;  %v1206_v8 = vld [vmem:[%s1499_s5 + $0xc8] sm:$0xff] (!%p240_p7)   ;;  %v1211_v13 = vld [vmem:[%s1499_s5 + $0x10] sm:$0xff] (!%p240_p7)  }
  0x1c   : > { %s1321_s30 = scalar_select %p279_p8, %s1315_s0, 1  ;;  %v343_v23 = vrot.slane %v323_v15, %v318_v11  ;;  %v395_v24 = vrot.slane %v375_v16, %v370_v12  ;;  %v351_v25 = vrot.slane %v331_v17, %v318_v11  ;;  %v403_v26 = vrot.slane %v383_v18, %v370_v12  ;;  %v1207_v9 = vld [vmem:[%s1499_s5 + $0x8] sm:$0xff]   ;;  %v1212_v14 = vld [vmem:[%s1499_s5 + $0x90] sm:$0xff]   ;;  %v1213_v15 = vld [vmem:[%s1499_s5 + $0x58] sm:$0xff]  }
  0x1d   : > { %v339_v29 = vrot.slane %v319_v19, %v318_v11  ;;  %v391_v30 = vrot.slane %v371_v20, %v370_v12  ;;  %v347_v31 = vrot.slane %v327_v21, %v318_v11  ;;  %v399_v32 = vrot.slane %v379_v22, %v370_v12  ;;  %v1208_v10 = vld [vmem:[%s1499_s5 + $0x88] sm:$0xff]   ;;  %v1209_v11 = vld [vmem:[%s1499_s5 + $0x50] sm:$0xff]   ;;  %v1214_v16 = vld [vmem:[%s1499_s5 + $0xd8] sm:$0xff]  }
  0x1e   : > { %s1130_s8 = sshll.u32 %s1321_s30, 4  ;;  %v1210_v12 = vld [vmem:[%s1499_s5 + $0xd0] sm:$0xff]   ;;  %v1215_v17 = vld [vmem:[%s1499_s5 + $0x18] sm:$0xff]   ;;  %v1217_v19 = vld [vmem:[%s1499_s5 + $0x60] sm:$0xff]   ;;  %s1184_s18 = smul.u32 24, %s1321_s30  ;;  %vm926_vm5 = vcmp.eq.s32.totalorder %v1329_v5, 0 }
  0x1f   : > { %s283_s11 = scalar_lea.vmem %s1495_s1, %s1130_s8  ;;  %s288_s16 = scalar_lea.vmem %s1496_s2, %s1130_s8  ;;  %v1216_v18 = vld [vmem:[%s1499_s5 + $0x98] sm:$0xff]   ;;  %v1218_v20 = vld [vmem:[%s1499_s5 + $0xe0] sm:$0xff]  }
  0x20   : > { %v301_v2 = vld [vmem:[%s283_s11] sm:$0xff]  ;;  %v302_v3 = vld [vmem:[%s283_s11 + $0x8] sm:$0xff]  ;;  %s1455_s21 = scalar_lea.vmem %s1497_s3, %s1184_s18  ;;  %s1481_s8 = scalar_lea.vmem %s1501_s7, %s1184_s18 }
  0x21   : > { %361 = vperm.xlu1 %1199, %v301_v2   ;;  %307 = vperm.xlu0 %1198, %v301_v2   ;;  %v303_v55 = vld [vmem:[%s288_s16] sm:$0xff]  ;;  %v304_v56 = vld [vmem:[%s288_s16 + $0x8] sm:$0xff] }
  0x22   : > { %v1219_v21 = vld [vmem:[%s1499_s5 + $0x20] sm:$0xff]  }
  0x23   : > { %v1220_v22 = vld [vmem:[%s1499_s5 + $0xa0] sm:$0xff]  }
  0x24   : > { %v1126_v5 = vld [vmem:[%s1500_s6] ss:$0 sm:$0xff] }
  0x25   : > { %365 = vperm.xlu1 %1199, %v302_v3   ;;  %312 = vperm.xlu0 %1198, %v302_v3   ;;  %v1353_v3 = vpack.c.bf16 %v304_v56, %v303_v55  ;;  %v1264_v55 = vmov 0.0   ;;  %v920_v56 = vld [vmem:[%s1455_s21 + $0x8] sm:$0xff] }
  0x29   : > { %1200 = vset.pattern.permute.xlu0 %v1262_v0  ;;  %v1202_v0 = vld [vmem:[%s1499_s5 + $0xc0] sm:$0xff]  }
  0xa0   : > { %v362_v27 = vpop.permute.xlu1 %361  ;;  %v308_v28 = vpop.permute.xlu0 %307 }
  0xa1   : > { %v353_v33 = vmul.f32 %v343_v23, %v308_v28  ;;  %v405_v34 = vmul.f32 %v395_v24, %v362_v27  ;;  %v355_v35 = vmul.f32 %v351_v25, %v308_v28  ;;  %v407_v36 = vmul.f32 %v403_v26, %v362_v27 }
  0xa2   : > { %v352_v39 = vmul.f32 %v339_v29, %v308_v28  ;;  %v404_v40 = vmul.f32 %v391_v30, %v362_v27  ;;  %v354_v41 = vmul.f32 %v347_v31, %v308_v28  ;;  %v406_v42 = vmul.f32 %v399_v32, %v362_v27  ;;  %v1225_v27 = vld [vmem:[%s1499_s5 + $0x70] sm:$0xff]  }
  0xa3   : > { %v413_v51 = vadd.f32 %v405_v34, %v353_v33  ;;  %v415_v53 = vadd.f32 %v407_v36, %v355_v35  ;;  %v1226_v28 = vld [vmem:[%s1499_s5 + $0xf0] sm:$0xff]   ;;  %v1231_v33 = vld [vmem:[%s1499_s5 + $0x38] sm:$0xff]  }
  0xa4   : > { %v366_v37 = vpop.permute.xlu1 %365  ;;  %v313_v38 = vpop.permute.xlu0 %312  ;;  %v412_v57 = vadd.f32 %v404_v40, %v352_v39  ;;  %v414_v59 = vadd.f32 %v406_v42, %v354_v41  ;;  %v1232_v34 = vld [vmem:[%s1499_s5 + $0xb8] sm:$0xff]  }
  0xa5   : > { %v357_v43 = vmul.f32 %v343_v23, %v313_v38  ;;  %v409_v44 = vmul.f32 %v395_v24, %v366_v37  ;;  %v359_v45 = vmul.f32 %v351_v25, %v313_v38  ;;  %v411_v46 = vmul.f32 %v403_v26, %v366_v37  ;;  %v1221_v23 = vld [vmem:[%s1499_s5 + $0x68] sm:$0xff]  }
  0xa6   : > { %v356_v47 = vmul.f32 %v339_v29, %v313_v38  ;;  %v408_v48 = vmul.f32 %v391_v30, %v366_v37  ;;  %v358_v49 = vmul.f32 %v347_v31, %v313_v38  ;;  %v410_v50 = vmul.f32 %v399_v32, %v366_v37  ;;  %v1222_v24 = vld [vmem:[%s1499_s5 + $0xe8] sm:$0xff]   ;;  %v1227_v29 = vld [vmem:[%s1499_s5 + $0x30] sm:$0xff]   ;;  %v1229_v31 = vld [vmem:[%s1499_s5 + $0x78] sm:$0xff]  }
  0xa7   : > { %v417_v52 = vadd.f32 %v409_v44, %v357_v43  ;;  %v419_v54 = vadd.f32 %v411_v46, %v359_v45  ;;  %v1223_v25 = vld [vmem:[%s1499_s5 + $0x28] sm:$0xff]   ;;  %v1228_v30 = vld [vmem:[%s1499_s5 + $0xb0] sm:$0xff]   ;;  %v1230_v32 = vld [vmem:[%s1499_s5 + $0xf8] sm:$0xff]  }
  0xa8   : > { %v416_v58 = vadd.f32 %v408_v48, %v356_v47  ;;  %v418_v60 = vadd.f32 %v410_v50, %v358_v49  ;;  %v1224_v26 = vld [vmem:[%s1499_s5 + $0xa8] sm:$0xff]  }
  0xa9   : > { %v422_v61 = vpack.c.bf16 %v417_v52, %v413_v51  ;;  %v424_v62 = vpack.c.bf16 %v419_v54, %v415_v53 }
  0xaa   : > { %v421_v1 = vpack.c.bf16 %v416_v58, %v412_v57  ;;  %v423_v2 = vpack.c.bf16 %v418_v60, %v414_v59  ;;  %v942_v57 = vsel %vm913_vm2, %v920_v56, 0.0 }
  0xab   : > { %429 = vmatprep.subr.bf16.mxu0 %v422_v61  ;;  %472 = vmatprep.subr.bf16.mxu1 %v424_v62 }
  0xac   : > { %430 = vmatpush1.bf16.msra.mxu0 %v421_v1  ;;  %473 = vmatpush1.bf16.msra.mxu1 %v423_v2 }
  0xad   : > { %1132 = vmatprep.subr.bf16.mxu0 %v1201_v63  ;;  %1154 = vmatprep.subr.bf16.mxu1 %v1202_v0 }
  0xae   : > { %943 = vadd.xlane.f32.xlu1 %v942_v57 }
  0xaf   : > { %1090 = vmatmul.mubr.msk.bf16.vlgmr.msra.gmra.mrb[0].mxu0 %vm425_vm0, %v1353_v3  ;;  %1091 = vmatmul.mubr.msk.bf16.vlgmr.msra.gmra.mrb[0].mxu1 %vm425_vm0, %v1353_v3 }
  0xb0   : > { %1133 = vmatpush3.bf16.msra.mxu0 %v1203_v4  ;;  %1155 = vmatpush3.bf16.msra.mxu1 %v1204_v6 }
  0xb1   : > { %1134 = vmatprep.subr.bf16.mxu0 %v1205_v7  ;;  %1156 = vmatprep.subr.bf16.mxu1 %v1206_v8 }
  0xb4   : > { %1135 = vmatpush3.bf16.msra.mxu0 %v1207_v9  ;;  %1157 = vmatpush3.bf16.msra.mxu1 %v1208_v10 }
  0xb5   : > { %1136 = vmatprep.subr.bf16.mxu0 %v1209_v11  ;;  %1158 = vmatprep.subr.bf16.mxu1 %v1210_v12 }
  0xb8   : > { %1137 = vmatpush3.bf16.msra.mxu0 %v1211_v13  ;;  %1159 = vmatpush3.bf16.msra.mxu1 %v1212_v14 }
  0xb9   : > { %1138 = vmatprep.subr.bf16.mxu0 %v1213_v15  ;;  %1160 = vmatprep.subr.bf16.mxu1 %v1214_v16 }
  0xbc   : > { %1139 = vmatpush3.bf16.msra.mxu0 %v1215_v17  ;;  %1161 = vmatpush3.bf16.msra.mxu1 %v1216_v18 }
  0xbd   : > { %1140 = vmatprep.subr.bf16.mxu0 %v1217_v19  ;;  %1162 = vmatprep.subr.bf16.mxu1 %v1218_v20 }
  0xc0   : > { %1141 = vmatpush3.bf16.msra.mxu0 %v1219_v21  ;;  %1163 = vmatpush3.bf16.msra.mxu1 %v1220_v22 }
  0xc1   : > { %1142 = vmatprep.subr.bf16.mxu0 %v1221_v23  ;;  %1164 = vmatprep.subr.bf16.mxu1 %v1222_v24  ;;  %v919_v23 = vld [vmem:[%s1455_s21] sm:$0xff] }
  0xc4   : > { %1143 = vmatpush3.bf16.msra.mxu0 %v1223_v25  ;;  %1165 = vmatpush3.bf16.msra.mxu1 %v1224_v26 }
  0xc5   : > { %1144 = vmatprep.subr.bf16.mxu0 %v1225_v27  ;;  %1166 = vmatprep.subr.bf16.mxu1 %v1226_v28  ;;  %v921_v27 = vld [vmem:[%s1455_s21 + $0x10] sm:$0x1] }
  0xc8   : > { %1145 = vmatpush3.bf16.msra.mxu0 %v1227_v29  ;;  %1167 = vmatpush3.bf16.msra.mxu1 %v1228_v30  ;;  %v946_v29 = vsel %vm945_vm6, %v921_v27, 0.0 }
  0xc9   : > { %1146 = vmatprep.subr.bf16.mxu0 %v1229_v31  ;;  %1168 = vmatprep.subr.bf16.mxu1 %v1230_v32 }
  0xcc   : > { %1147 = vmatpush3.bf16.msra.mxu0 %v1231_v33  ;;  %1169 = vmatpush3.bf16.msra.mxu1 %v1232_v34 }
  0xcd   : > { %1178 = vmatprep.subr.bf16.mxu0 %v1264_v55 }
 0x13b   : > { %v944_v11 = vpop.xlane.xlu1 %943 }
 0x13c   : > { %v951_v12 = vmul.f32 0.03125, %v944_v11 }
 0x13e   : > { %v954_v13 = vsub.f32 %v920_v56, %v951_v12 }
 0x140   : > { %v957_v14 = vmul.f32 %v954_v13, %v954_v13 }
 0x142   : > { %v962_v15 = vsel %vm913_vm2, %v957_v14, 0.0 }
 0x143   : > { %963 = vadd.xlane.f32.xlu1 %v962_v15 }
 0x182   : > { %v463_v35 = vpop.f32.mrb[0].mxu0  ;;  %v506_v36 = vpop.f32.mrb[0].mxu1 }
 0x183   : > { %v465_v37 = vpop.f32.mrb[1].mxu0  ;;  %v508_v38 = vpop.f32.mrb[1].mxu1  ;;  %v515_v41 = vmax.f32 %v463_v35, 0.0  ;;  %v517_v42 = vmax.f32 %v506_v36, 0.0  ;;  %v1127_v35 = vld [vmem:[%s1500_s6 + $0x1] ss:$0 sm:$0xff] }
 0x184   : > { %v467_v39 = vpop.f32.mrb[2].mxu0  ;;  %v510_v40 = vpop.f32.mrb[2].mxu1  ;;  %v516_v47 = vmax.f32 %v465_v37, 0.0  ;;  %v518_v48 = vmax.f32 %v508_v38, 0.0 }
 0x185   : > { %v519_v43 = vmax.f32 %v467_v39, 0.0  ;;  %v521_v44 = vmax.f32 %v510_v40, 0.0  ;;  %v469_v45 = vpop.f32.mrb[3].mxu0  ;;  %v512_v46 = vpop.f32.mrb[3].mxu1 }
 0x186   : > { %v520_v49 = vmax.f32 %v469_v45, 0.0  ;;  %v522_v50 = vmax.f32 %v512_v46, 0.0 }
 0x187   : > { %v587_v51 = vpack.c.bf16 %v519_v43, %v515_v41  ;;  %v589_v52 = vpack.c.bf16 %v521_v44, %v517_v42 }
 0x188   : > { %v588_v53 = vpack.c.bf16 %v520_v49, %v516_v47  ;;  %v590_v54 = vpack.c.bf16 %v522_v50, %v518_v48 }
 0x18a   : > { %815 = vmatprep.mubr.bf16.mxu0 %v588_v53  ;;  %856 = vmatprep.mubr.bf16.mxu1 %v590_v54 }
 0x18b   : > { %816 = vmatmul.mubr.bf16.vlgmr.msra.gmra.mrb[4].mxu0 %v587_v51  ;;  %857 = vmatmul.mubr.bf16.vlgmr.msra.gmra.mrb[4].mxu1 %v589_v52 }
 0x18c   : > { %1180 = vmatprep.mubr.msk.bf16.mxu0 %vm1265_vm1, %v1264_v55 }
 0x1d0   : > { %v964_v30 = vpop.xlane.xlu1 %963 }
 0x1d1   : > { %v969_v31 = vmul.f32 0.03125, %v964_v30 }
 0x1d3   : > { %v972_v32 = vadd.f32 1e-06, %v969_v31 }
 0x1d5   : > { %1233 = vrsqrt.f32 %v972_v32 }
 0x1df   : > { %v1234_v33 = vpop.eup %1233 }
 0x1e0   : > { %v978_v34 = vmul.f32 %v1234_v33, %v954_v13 }
 0x1e2   : > { %v986_v36 = vmul.f32 %v1126_v5, %v978_v34 }
 0x1e4   : > { %v994_v37 = vadd.f32 %v1127_v35, %v986_v36 }
 0x1e6   : > { %997 = vst.msk [vmem:[%s1481_s8 + $0x8] sm:$0xff] %vm913_vm2, %v994_v37 }
 0x25e   : > { %v1148_v58 = vpop.f32.mrb[4].mxu0  ;;  %v1170_v59 = vpop.f32.mrb[4].mxu1 }
 0x25f   : > { %v1149_v60 = vpop.f32.mrb[5].mxu0  ;;  %v1171_v61 = vpop.f32.mrb[5].mxu1 }
 0x260   : > { %v1150_v62 = vadd.f32 %v1149_v60, %v1148_v58  ;;  %v1172_v63 = vadd.f32 %v1171_v61, %v1170_v59  ;;  %v1151_v0 = vpop.f32.mrb[6].mxu0  ;;  %v1173_v1 = vpop.f32.mrb[6].mxu1 }
 0x261   : > { %v1152_v2 = vpop.f32.mrb[7].mxu0  ;;  %v1174_v4 = vpop.f32.mrb[7].mxu1 }
 0x262   : > { %v859_v6 = vadd.f32 %v1172_v63, %v1150_v62  ;;  %v1153_v7 = vadd.f32 %v1152_v2, %v1151_v0  ;;  %v1175_v8 = vadd.f32 %v1174_v4, %v1173_v1 }
 0x264   : > { %v862_v9 = vadd.f32 %v1175_v8, %v1153_v7 }
 0x266   : > { %v865_v10 = vpack.c.bf16 %v862_v9, %v859_v6 }
 0x268   : > { %1179 = vmatpush3.bf16.msra.mxu0 %v865_v10 }
 0x26b   : > { %1181 = vmatmul.mubr.msk.bf16.vlgmr.msra.gmra.mrb[8].mxu0 %vm425_vm0, %v1353_v3 }
 0x33e   : > { %v900_v16 = vpop.f32.mrb[8].mxu0 }
 0x33f   : > { %vm907_vm3 = vcmp.gt.f32.partialorder %v900_v16, 0.0  ;;  %v909_v17 = vmul.f32 0.2, %v900_v16  ;;  %v1182_v18 = vpop.f32.mrb[9].mxu0 }
 0x340   : > { %v903_v19 = vpop.f32.mrb[10].mxu0 }
 0x341   : > { %v911_v20 = vsel %vm907_vm3, %v900_v16, %v909_v17  ;;  %vm908_vm4 = vcmp.gt.f32.partialorder %v903_v19, 0.0  ;;  %v910_v21 = vmul.f32 0.2, %v903_v19  ;;  %v1183_v22 = vpop.f32.mrb[11].mxu0 }
 0x342   : > { %914 = vst.msk [vmem:[#allocation2] sm:$0xff] %vm913_vm2, %v911_v20 }
 0x343   : > { %v912_v3 = vsel %vm908_vm4, %v903_v19, %v910_v21 }
 0x344   : > { %915 = vst.msk [vmem:[#allocation2 + $0x8] sm:$0xff] %vm913_vm2, %v912_v3 }
 0x34b   : > { %v1125_v24 = vld [vmem:[%s917_s23] ss:$0 sm:$0xff] }
 0x34c   : > { %v933_v25 = vadd.f32 %v1125_v24, %v919_v23 }
 0x34e   : > { %v936_v26 = vsel %vm926_vm5, %v933_v25, %v919_v23 }
 0x34f   : > { %v939_v28 = vsel %vm913_vm2, %v936_v26, 0.0 }
 0x350   : > { %940 = vadd.xlane.f32.xlu0 %v939_v28 }
 0x354   : > { %947 = vadd.xlane.f32.xlu0 %v946_v29 }
 0x3dd   : > { %v941_v38 = vpop.xlane.xlu0 %940 }
 0x3de   : > { %v950_v39 = vmul.f32 0.03125, %v941_v38 }
 0x3e0   : > { %v953_v40 = vsub.f32 %v936_v26, %v950_v39 }
 0x3e1   : > { %v948_v41 = vpop.xlane.xlu0 %947 }
 0x3e2   : > { %v952_v42 = vmul.f32 0.03125, %v948_v41  ;;  %v956_v43 = vmul.f32 %v953_v40, %v953_v40 }
 0x3e4   : > { %v955_v44 = vsub.f32 %v921_v27, %v952_v42  ;;  %v959_v45 = vsel %vm913_vm2, %v956_v43, 0.0 }
 0x3e5   : > { %960 = vadd.xlane.f32.xlu0 %v959_v45 }
 0x3e6   : > { %v958_v46 = vmul.f32 %v955_v44, %v955_v44 }
 0x3e8   : > { %v965_v47 = vsel %vm945_vm6, %v958_v46, 0.0 }
 0x3e9   : > { %966 = vadd.xlane.f32.xlu0 %v965_v47 }
 0x472   : > { %v961_v48 = vpop.xlane.xlu0 %960 }
 0x473   : > { %v968_v49 = vmul.f32 0.03125, %v961_v48 }
 0x475   : > { %v971_v50 = vadd.f32 1e-06, %v968_v49 }
 0x476   : > { %v967_v51 = vpop.xlane.xlu0 %966 }
 0x477   : > { %1235 = vrsqrt.f32 %v971_v50  ;;  %v970_v52 = vmul.f32 0.03125, %v967_v51 }
 0x479   : > { %v973_v53 = vadd.f32 1e-06, %v970_v52 }
 0x47b   : > { %1237 = vrsqrt.f32 %v973_v53 }
 0x481   : > { %v1236_v54 = vpop.eup %1235 }
 0x482   : > { %v977_v55 = vmul.f32 %v1236_v54, %v953_v40 }
 0x484   : > { %v985_v56 = vmul.f32 %v1126_v5, %v977_v55 }
 0x485   : > { %v1238_v57 = vpop.eup %1237 }
 0x486   : > { %v993_v58 = vadd.f32 %v1127_v35, %v985_v56  ;;  %v979_v59 = vmul.f32 %v1238_v57, %v955_v44 }
 0x488   : > { %996 = vst.msk [vmem:[%s1481_s8] sm:$0xff] %vm913_vm2, %v993_v58  ;;  %v987_v60 = vmul.f32 %v1126_v5, %v979_v59 }
 0x48a   : > { %v995_v61 = vadd.f32 %v1127_v35, %v987_v60 }
 0x48c   : > { %998 = vst.msk [vmem:[%s1481_s8 + $0x10] sm:$0x1] %vm945_vm6, %v995_v61 }
 0x48d PF: > { %s23_s29 = sadd.s32 1, %s1259_s29  }
 0x48e   : > { %p20_p9 = scmp.ge.s32.totalorder %s23_s29, 4  }
 0x490   :  { %22 = sbr.rel (!%p20_p9) target bundleno = 16 (0x10), region = 81 }

// kernel: transformer_forward.2
= control target key start
LH: loop header
LB: loop body
LE: loop exit
PB: predicated region body
PF: predicated region fallthrough
CT: control target
= control target key end

     0   :  { %s4596_s17 = smov 0   ;;  %s5424_s0 = inlined_call_operand.vmem [shape: f32[2,17,48], index: 0, kind: input, shape index: {}]   ;;  %s5425_s1 = inlined_call_operand.vmem [shape: f32[17,32], index: 1, kind: input, shape index: {}]   ;;  %s5426_s2 = inlined_call_operand.vmem [shape: bf16[48,32], index: 2, kind: input, shape index: {}]   ;;  %s5427_s3 = inlined_call_operand.vmem [shape: bf16[2,32,96], index: 3, kind: input, shape index: {}]   ;;  %s5428_s4 = inlined_call_operand.vmem [shape: f32[2,1,96], index: 4, kind: input, shape index: {}]   ;;  %s5429_s5 = inlined_call_operand.vmem [shape: bf16[2,32,32], index: 5, kind: input, shape index: {}]   ;;  %s5430_s6 = inlined_call_operand.vmem [shape: f32[2,6,32], index: 6, kind: input, shape index: {}]   ;;  %s5431_s7 = inlined_call_operand.vmem [shape: bf16[2,32,64], index: 7, kind: input, shape index: {}]   ;;  %s5432_s8 = inlined_call_operand.vmem [shape: f32[2,1,64], index: 8, kind: input, shape index: {}]   ;;  %s5433_s9 = inlined_call_operand.vmem [shape: bf16[2,64,32], index: 9, kind: input, shape index: {}]   ;;  %s5434_s10 = inlined_call_operand.vmem [shape: f32[2,17,32], index: 10, kind: output, shape index: {0}]   ;;  %s5435_s11 = inlined_call_operand.vmem [shape: f32[2,4,128], index: 11, kind: output, shape index: {1}]  }
   0x1 LB: > { %s3545_s18 = sadd.s32 4294967295, %s4517_s17   ;;  %p3549_p0 = scmp.ge.s32.totalorder %s4517_s17, 1  ;;  %s4517_s17 = sphi %s4596_s17, %s22_s17  }
   0x2   : > { %p340_p1 = scmp.lt.s32.totalorder %s4517_s17, 3 }
   0x4   : > { %p341_p2 = pnand %p3549_p0, %p340_p1 }
   0x5   : > { %v4354_v0 = vld [vmem:[%s5426_s2] sm:$0xff] (!%p341_p2)   ;;  %p384_p3 = scmp.lt.s32.totalorder (!%p341_p2), %s3545_s18, 1  ;;  %v4355_v1 = vld [vmem:[%s5426_s2 + $0x8] sm:$0xff] (!%p341_p2)   ;;  %v4356_v2 = vld [vmem:[%s5426_s2 + $0x10] sm:$0xff] (!%p341_p2)   ;;  %vm431_vm0 = vcmask (!%p341_p2), 392192   ;;  %vm494_vm1 = vcmask (!%p341_p2), 253952   ;;  %v529_v45 = vlaneseq (!%p341_p2) }
   0x6   : > { %344 = sbr.rel (%p341_p2) target bundleno = 6061 (0x17ad), region = 60  ;;  %3840 = vmatprep.subr.bf16.mxu0 (!%p341_p2), %v4354_v0  ;;  %v401_v8 = vld [vmem:[%s5425_s1 + $0x10] sm:$0x1] (!%p341_p2)  ;;  %v399_v9 = vld [vmem:[%s5425_s1] sm:$0xff] (!%p341_p2)  ;;  %v400_v13 = vld [vmem:[%s5425_s1 + $0x8] sm:$0xff] (!%p341_p2)  ;;  %vm487_vm2 = vcmask (!%p341_p2), 261120  }
   0x7   : > { %3841 = vmatpush3.bf16.msra.mxu0 (!%p341_p2), %v4354_v0  ;;  %v4357_v36 = vld [vmem:[%s5427_s3] sm:$0xff] (!%p341_p2)   ;;  %v4358_v37 = vld [vmem:[%s5427_s3 + $0x8] sm:$0xff] (!%p341_p2)   ;;  %v4654_v48 = vshrl.u32 (!%p341_p2), %v529_v45, 7  ;;  %s4520_s27 = smov (!%p341_p2), 96   ;;  %vm4521_vm3 = vmmov (!%p341_p2), 0   ;;  %vm631_vm4 = vcmask (!%p341_p2), 64512  }
   0x8   : > { %3842 = vmatprep.subr.bf16.mxu0 (!%p341_p2), %v4355_v1  ;;  %v4660_v50 = vld [vmem:[%s5430_s6] sm:$0x3f] (!%p341_p2)  ;;  %vm4696_vm5 = vmpackc.low (!%p341_p2), %vm631_vm4, %vm631_vm4  ;;  %vm727_vm6 = vcmask (!%p341_p2), 138240   ;;  %vm734_vm7 = vcmask (!%p341_p2), 131072   ;;  %s4524_s29 = smov (!%p341_p2), 88   ;;  %s4525_s30 = smov (!%p341_p2), 80  }
   0x9   : > { %v531_v49 = vsub.s32 (!%p341_p2), 0, %v4654_v48  ;;  %v538_v54 = vsub.s32 (!%p341_p2), 1, %v4654_v48  ;;  %s4526_s12 = smov (!%p341_p2), 120   ;;  %s4527_s13 = smov (!%p341_p2), 112   ;;  %vm779_vm8 = vcmask (!%p341_p2), 1040384   ;;  %vm1618_vm9 = vcmask (!%p341_p2), 130048  }
   0xa   : > { %s4528_s14 = smov (!%p341_p2), 104   ;;  %s4529_s15 = smov (!%p341_p2), 72   ;;  %vm1622_vm10 = vcmask (!%p341_p2), 195584   ;;  %vm1901_vm11 = vcmask (!%p341_p2), 523264   ;;  %vm3450_vm12 = vcmask (!%p341_p2), 1041408   ;;  %vm3452_vm13 = vcmask (!%p341_p2), 1042432  }
   0xb   : > { %3843 = vmatpush3.bf16.msra.mxu0 (!%p341_p2), %v4355_v1  ;;  %v532_v53 = vrot.slane (!%p341_p2), %v4660_v50, %v531_v49  ;;  %v539_v60 = vrot.slane (!%p341_p2), %v4660_v50, %v538_v54  ;;  %s4530_s16 = smov (!%p341_p2), 56   ;;  %s5445_s19 = smov (!%p341_p2), 48  }
   0xc   : > { %3844 = vmatprep.subr.bf16.mxu0 (!%p341_p2), %v4356_v2  ;;  %s5443_s20 = smov (!%p341_p2), 40   ;;  %s5441_s21 = smov (!%p341_p2), 8  }
   0xd   : > { %s5456_s18 = smov (!%p384_p3, %s3545_s18), 1  ;;  %s5439_s24 = smov 16  }
   0xe   : > { %s5436_s25 = smul.u32 24, %s5456_s18  ;;  %s5437_s22 = smov 24  }
   0xf   : > { %3845 = vmatpush3.bf16.msra.mxu0 %v4356_v2 }
  0x10   : > { %s388_s28 = scalar_lea.vmem %s5424_s0, %s5436_s25  ;;  %3850 = vmatprep.subr.bf16.mxu0 %v4357_v36 }
  0x11   : > { %v402_v3 = vld [vmem:[%s388_s28] sm:$0xff]  ;;  %v403_v4 = vld [vmem:[%s388_s28 + $0x8] sm:$0xff]  ;;  %v404_v5 = vld [vmem:[%s388_s28 + $0x10] sm:$0x1]  ;;  %s4523_s28 = smov 64  }
  0x12   : > { %v411_v6 = vpack.c.bf16 %v403_v4, %v402_v3  ;;  %v412_v7 = vpack.c.bf16 %v404_v5, %v404_v5  ;;  %v4519_v4 = vmov 0.0|0.0   ;;  %v3558_v5 = vld [vmem:[%s5428_s4] ss:$0 sm:$0xff] }
  0x13   : > { %4162 = vmatprep.subr.bf16.mxu1 %v4519_v4 }
  0x14   : > { %3846 = vmatprep.mubr.msk.bf16.mxu0 %vm431_vm0, %v411_v6 }
  0x15   : > { %3847 = vmatmul.mubr.msk.bf16.vlgmr.msra.gmra.mrb[0].mxu0 %vm431_vm0, %v412_v7 }
  0x16   : > { %3851 = vmatpush3.bf16.msra.mxu0 %v4357_v36 }
  0x17   : > { %3852 = vmatprep.subr.bf16.mxu0 %v4358_v37 }
  0x1a   : > { %3853 = vmatpush3.bf16.msra.mxu0 %v4358_v37 }
  0x1b   : > { %4166 = vmatprep.subr.bf16.mxu0 %v4519_v4 }
  0xe8   : > { %v3848_v10 = vpop.f32.mrb[0].mxu0 }
  0xe9   : > { %v4627_v11 = vadd.f32 %v3848_v10, %v401_v8  ;;  %v472_v12 = vpop.f32.mrb[1].mxu0 }
  0xea   : > { %v4632_v14 = vadd.f32 %v472_v12, %v399_v9  ;;  %v3849_v15 = vpop.f32.mrb[2].mxu0 }
  0xeb   : > { %v475_v16 = vpop.f32.mrb[3].mxu0  ;;  %v495_v17 = vsel %vm494_vm1, %v4627_v11, 0.0 }
  0xec   : > { %v4636_v18 = vadd.f32 %v475_v16, %v400_v13  ;;  %496 = vadd.xlane.f32.xlu1 %v495_v17  ;;  %v488_v19 = vsel %vm487_vm2, %v4632_v14, 0.0  ;;  %v4522_v16 = vmov 0.0  }
  0xed   : > { %489 = vadd.xlane.f32.xlu0 %v488_v19  ;;  %3864 = vmatprep.mubr.msk.f32.mxu1 %vm4521_vm3, %v4522_v16 }
  0xee   : > { %v491_v20 = vsel %vm487_vm2, %v4636_v18, 0.0 }
  0xf1   : > { %492 = vadd.xlane.f32.xlu0 %v491_v20 }
 0x179   : > { %v497_v21 = vpop.xlane.xlu1 %496 }
 0x17a   : > { %v501_v22 = vmul.f32 0.03125, %v497_v21  ;;  %v490_v23 = vpop.xlane.xlu0 %489 }
 0x17b   : > { %v499_v24 = vmul.f32 0.03125, %v490_v23 }
 0x17c   : > { %v504_v25 = vsub.f32 %v4627_v11, %v501_v22 }
 0x17d   : > { %v502_v26 = vsub.f32 %v4632_v14, %v499_v24 }
 0x17e   : > { %v493_v27 = vpop.xlane.xlu0 %492  ;;  %v507_v32 = vmul.f32 %v504_v25, %v504_v25 }
 0x17f   : > { %v500_v28 = vmul.f32 0.03125, %v493_v27  ;;  %v505_v29 = vmul.f32 %v502_v26, %v502_v26 }
 0x180   : > { %v514_v34 = vsel %vm494_vm1, %v507_v32, 0.0 }
 0x181   : > { %v503_v30 = vsub.f32 %v4636_v18, %v500_v28  ;;  %v508_v31 = vsel %vm487_vm2, %v505_v29, 0.0 }
 0x182   : > { %509 = vadd.xlane.f32.xlu1 %v508_v31 }
 0x183   : > { %v506_v33 = vmul.f32 %v503_v30, %v503_v30 }
 0x185   : > { %v511_v35 = vsel %vm487_vm2, %v506_v33, 0.0 }
 0x186   : > { %515 = vadd.xlane.f32.xlu1 %v514_v34  ;;  %512 = vadd.xlane.f32.xlu0 %v511_v35 }
 0x20f   : > { %v510_v38 = vpop.xlane.xlu1 %509 }
 0x210   : > { %v517_v39 = vmul.f32 0.03125, %v510_v38 }
 0x212   : > { %v520_v40 = vadd.f32 1e-06, %v517_v39 }
 0x213   : > { %v516_v41 = vpop.xlane.xlu1 %515  ;;  %v513_v42 = vpop.xlane.xlu0 %512 }
 0x214   : > { %4377 = vrsqrt.f32 %v520_v40  ;;  %v519_v43 = vmul.f32 0.03125, %v516_v41  ;;  %v518_v44 = vmul.f32 0.03125, %v513_v42 }
 0x216   : > { %v522_v46 = vadd.f32 1e-06, %v519_v43  ;;  %v521_v47 = vadd.f32 1e-06, %v518_v44 }
 0x218   : > { %4379 = vrsqrt.f32 %v522_v46 }
 0x219   : > { %4381 = vrsqrt.f32 %v521_v47 }
 0x21e   : > { %v4378_v51 = vpop.eup %4377 }
 0x21f   : > { %v526_v52 = vmul.f32 %v4378_v51, %v502_v26 }
 0x221   : > { %v533_v59 = vmul.f32 %v532_v53, %v526_v52 }
 0x222   : > { %v4380_v55 = vpop.eup %4379 }
 0x223   : > { %v4382_v56 = vpop.eup %4381  ;;  %v528_v57 = vmul.f32 %v4380_v55, %v504_v25  ;;  %v540_v0 = vadd.f32 %v539_v60, %v533_v59 }
 0x224   : > { %v527_v58 = vmul.f32 %v4382_v56, %v503_v30 }
 0x225   : > { %v535_v61 = vmul.f32 %v532_v53, %v528_v57 }
 0x226   : > { %v534_v62 = vmul.f32 %v532_v53, %v527_v58 }
 0x227   : > { %v542_v63 = vadd.f32 %v539_v60, %v535_v61 }
 0x228   : > { %v541_v1 = vadd.f32 %v539_v60, %v534_v62 }
 0x229   : > { %v548_v2 = vpack.c.bf16 %v542_v63, %v542_v63 }
 0x22a   : > { %v547_v3 = vpack.c.bf16 %v541_v1, %v540_v0 }
 0x22c   : > { %3854 = vmatprep.mubr.msk.bf16.mxu0 %vm487_vm2, %v547_v3 }
 0x22d   : > { %3855 = vmatmul.mubr.msk.bf16.vlgmr.msra.gmra.mrb[4].mxu0 %vm487_vm2, %v548_v2 }
 0x22e   : > { %3879 = vmatprep.mubr.msk.f32.mxu0 %vm4521_vm3, %v4522_v16 }
 0x300   : > { %v3856_v6 = vpop.f32.mrb[4].mxu0 }
 0x301   : > { %v4676_v7 = vadd.f32 %v3856_v6, %v3558_v5  ;;  %v608_v8 = vpop.f32.mrb[5].mxu0 }
 0x302   : > { %v3857_v9 = vpop.f32.mrb[6].mxu0  ;;  %v4680_v12 = vadd.f32 %v3558_v5, %v608_v8 }
 0x303   : > { %629 = vrot.lane.b32.xlu1 %v4676_v7, %s4520_s27  ;;  %v611_v10 = vpop.f32.mrb[7].mxu0 }
 0x304   : > { %v4682_v13 = vadd.f32 %v3558_v5, %v611_v10 }
 0x306   : > { %v4686_v15 = vpack.i.bf16 %v4682_v13, %v4680_v12 }
 0x308   : > { %4245 = vrot.lane.b32.xlu0 %v4686_v15, %s4520_s27 }
 0x375   : > { %v630_v23 = vpop.permute.xlu1 %629 }
 0x37a   : > { %v4246_v17 = vpop.permute.xlu0 %4245 }
 0x37b   : > { %v4248_v19 = vunpack.i.h.bf16 %v4246_v17  ;;  %v4247_v20 = vunpack.i.l.bf16 %v4246_v17 }
 0x37d   : > { %v4163_v22 = vpack.c.bf16 %v4248_v19, %v4247_v20 }
 0x37f   : > { %4165 = vmatpush3.bf16.xpose.msk.msra.mxu1 %vm4696_vm5, %v4163_v22 }
 0x380   : > { %3862 = vmatprep.subr.mxu1 %v4522_v16 }
 0x387   : > { %3863 = vmatpush3.xpose.msk.msra.mxu1 %vm631_vm4, %v630_v23 }
 0x388   : > { %4173 = vmatprep.subr.bf16.mxu1 %v4519_v4 }
 0x38a   : > { %3865 = vmatmul.mubr.msk.f32.vlgmr.msra.gmra.mrb[0].mxu1 %vm631_vm4, %v4680_v12 }
 0x38b   : > { %3867 = vmatprep.mubr.msk.f32.mxu1 %vm4521_vm3, %v4522_v16 }
 0x38e   : > { %3868 = vmatmul.mubr.msk.f32.gmra.mrb[2].mxu1 %vm631_vm4, %v4682_v13 }
 0x38f   : > { %3870 = vmatprep.mubr.msk.f32.mxu1 %vm4521_vm3, %v4522_v16 }
 0x392   : > { %3871 = vmatmul.mubr.msk.f32.gmra.mrb[4].mxu1 %vm631_vm4, %v4676_v7 }
 0x393   : > { %3909 = vmatprep.mubr.msk.f32.mxu1 %vm4521_vm3, %v4522_v16 }
 0x45d   : > { %v710_v24 = vpop.f32.mrb[0].mxu1 }
 0x45e   : > { %v724_v25 = vmul.f32 0.35355338, %v710_v24  ;;  %v3866_v26 = vpop.f32.mrb[1].mxu1 }
 0x460   : > { %v728_v27 = vsel %vm727_vm6, %v724_v25, -inf }
 0x461   : > { %729 = vmax.xlane.f32.xlu1 %v728_v27  ;;  %v715_v28 = vpop.f32.mrb[2].mxu1 }
 0x462   : > { %v725_v29 = vmul.f32 0.35355338, %v715_v28  ;;  %v3869_v30 = vpop.f32.mrb[3].mxu1 }
 0x464   : > { %v731_v31 = vsel %vm727_vm6, %v725_v29, -inf }
 0x465   : > { %732 = vmax.xlane.f32.xlu0 %v731_v31  ;;  %v720_v32 = vpop.f32.mrb[4].mxu1 }
 0x466   : > { %v726_v33 = vmul.f32 0.35355338, %v720_v32  ;;  %v3872_v34 = vpop.f32.mrb[5].mxu1 }
 0x468   : > { %v735_v35 = vsel %vm734_vm7, %v726_v33, -inf }
 0x469   : > { %736 = vmax.xlane.f32.xlu0 %v735_v35 }
 0x4ee   : > { %v730_v36 = vpop.xlane.xlu1 %729 }
 0x4ef   : > { %v738_v37 = vsub.f32 %v724_v25, %v730_v36 }
 0x4f1   : > { %v741_v38 = vmul.f32 1.442695, %v738_v37 }
 0x4f2   : > { %v733_v39 = vpop.xlane.xlu0 %732 }
 0x4f3   : > { %4383 = vpow2.f32 %v741_v38  ;;  %v739_v40 = vsub.f32 %v725_v29, %v733_v39 }
 0x4f5   : > { %v743_v41 = vmul.f32 1.442695, %v739_v40 }
 0x4f6   : > { %v737_v46 = vpop.xlane.xlu0 %736 }
 0x4f7   : > { %4385 = vpow2.f32 %v743_v41  ;;  %v740_v47 = vsub.f32 %v726_v33, %v737_v46 }
 0x4f9   : > { %v745_v51 = vmul.f32 1.442695, %v740_v47 }
 0x4fb   : > { %4387 = vpow2.f32 %v745_v51 }
 0x4fd   : > { %v4384_v42 = vpop.eup %4383 }
 0x4fe   : > { %v747_v43 = vsel %vm727_vm6, %v4384_v42, 0.0 }
 0x4ff   : > { %748 = vadd.xlane.f32.xlu1 %v747_v43 }
 0x501   : > { %v4386_v44 = vpop.eup %4385 }
 0x502   : > { %v750_v45 = vsel %vm727_vm6, %v4386_v44, 0.0 }
 0x503   : > { %751 = vadd.xlane.f32.xlu0 %v750_v45 }
 0x505   : > { %v4388_v52 = vpop.eup %4387 }
 0x506   : > { %v753_v53 = vsel %vm734_vm7, %v4388_v52, 0.0 }
 0x510   : > { %766 = vrot.lane.b32.xlu1 %v4676_v7, %s4523_s28 }
 0x514   : > { %4255 = vrot.lane.b32.xlu1 %v4686_v15, %s4524_s29 }
 0x518   : > { %872 = vrot.lane.b32.xlu1 %v4676_v7, %s4524_s29 }
 0x519   : > { %4250 = vrot.lane.b32.xlu0 %v4686_v15, %s4523_s28 }
 0x51d   : > { %4260 = vrot.lane.b32.xlu0 %v4686_v15, %s4525_s30 }
 0x521   : > { %864 = vrot.lane.b32.xlu0 %v4682_v13, %s4526_s12 }
 0x525   : > { %1111 = vrot.lane.b32.xlu0 %v4676_v7, %s4525_s30 }
 0x529   : > { %1101 = vrot.lane.b32.xlu0 %v4680_v12, %s4527_s13 }
 0x52d   : > { %1105 = vrot.lane.b32.xlu0 %v4676_v7, %s4527_s13 }
 0x531   : > { %1340 = vrot.lane.b32.xlu0 %v4680_v12, %s4528_s14 }
 0x535   : > { %1344 = vrot.lane.b32.xlu0 %v4676_v7, %s4528_s14 }
 0x53c   : > { %754 = vadd.xlane.f32.xlu1 %v753_v53 }
 0x54d   : > { %862 = vrot.lane.b32.xlu1 %v4680_v12, %s4526_s12 }
 0x551   : > { %866 = vrot.lane.b32.xlu1 %v4676_v7, %s4526_s12 }
 0x555   : > { %4265 = vrot.lane.b32.xlu1 %v4686_v15, %s4529_s15 }
 0x559   : > { %1103 = vrot.lane.b32.xlu1 %v4682_v13, %s4527_s13 }
 0x55d   : > { %1350 = vrot.lane.b32.xlu1 %v4676_v7, %s4529_s15 }
 0x561   : > { %1342 = vrot.lane.b32.xlu1 %v4682_v13, %s4528_s14 }
 0x58c   : > { %v749_v55 = vpop.xlane.xlu1 %748 }
 0x58d   : > { %4389 = vrcp.f32 %v749_v55 }
 0x590   : > { %v752_v56 = vpop.xlane.xlu0 %751  ;;  %v767_v58 = vpop.permute.xlu1 %766 }
 0x591   : > { %4391 = vrcp.f32 %v752_v56 }
 0x594   : > { %v4251_v57 = vpop.permute.xlu0 %4250  ;;  %v4256_v63 = vpop.permute.xlu1 %4255 }
 0x595   : > { %v4253_v59 = vunpack.i.h.bf16 %v4251_v57  ;;  %v4252_v60 = vunpack.i.l.bf16 %v4251_v57  ;;  %v4258_v2 = vunpack.i.h.bf16 %v4256_v63  ;;  %v4257_v3 = vunpack.i.l.bf16 %v4256_v63 }
 0x597   : > { %v4167_v61 = vpack.c.bf16 %v4253_v59, %v4252_v60  ;;  %v4390_v62 = vpop.eup %4389  ;;  %v4170_v6 = vpack.c.bf16 %v4258_v2, %v4257_v3 }
 0x598   : > { %v757_v0 = vmul.f32 %v4390_v62, %v4384_v42  ;;  %v873_v8 = vpop.permute.xlu1 %872  ;;  %v4261_v10 = vpop.permute.xlu0 %4260 }
 0x599   : > { %4168 = vmatpush3.bf16.msra.mxu0 %v4167_v61  ;;  %v4263_v19 = vunpack.i.h.bf16 %v4261_v10  ;;  %v4262_v20 = vunpack.i.l.bf16 %v4261_v10 }
 0x59a   : > { %3877 = vmatprep.subr.mxu0 %v4522_v16 }
 0x59b   : > { %v4392_v1 = vpop.eup %4391  ;;  %v4177_v23 = vpack.c.bf16 %v4263_v19, %v4262_v20 }
 0x59c   : > { %v759_v5 = vmul.f32 %v4392_v1, %v4386_v44  ;;  %v865_v24 = vpop.permute.xlu0 %864 }
 0x59d   : > { %3878 = vmatpush3.msk.msra.mxu0 %vm779_vm8, %v767_v58 }
 0x59e   : > { %3880 = vmatmul.mubr.msk.f32.vlgmr.msra.gmra.mrb[8].mxu0 %vm727_vm6, %v757_v0  ;;  %4169 = vmatprep.subr.bf16.mxu0 %v4519_v4 }
 0x59f   : > { %3882 = vmatprep.mubr.msk.f32.mxu0 %vm4521_vm3, %v4522_v16 }
 0x5a0   : > { %v1112_v26 = vpop.permute.xlu0 %1111 }
 0x5a2   : > { %3883 = vmatmul.mubr.msk.f32.gmra.mrb[10].mxu0 %vm727_vm6, %v759_v5 }
 0x5a3   : > { %3885 = vmatprep.mubr.msk.f32.mxu0 %vm4521_vm3, %v4522_v16 }
 0x5a4   : > { %4172 = vmatpush3.bf16.xpose.msk.msra.mxu0 %vm4696_vm5, %v4170_v6  ;;  %v1102_v29 = vpop.permute.xlu0 %1101 }
 0x5a5   : > { %3892 = vmatprep.subr.mxu0 %v4522_v16 }
 0x5a8   : > { %v1106_v32 = vpop.permute.xlu0 %1105 }
 0x5ac   : > { %3893 = vmatpush3.xpose.msk.msra.mxu0 %vm631_vm4, %v873_v8  ;;  %v1341_v34 = vpop.permute.xlu0 %1340 }
 0x5ad   : > { %4176 = vmatprep.subr.bf16.mxu0 %v4519_v4 }
 0x5b0   : > { %v1345_v36 = vpop.permute.xlu0 %1344 }
 0x5c9   : > { %v755_v9 = vpop.xlane.xlu1 %754 }
 0x5ca   : > { %4393 = vrcp.f32 %v755_v9 }
 0x5cd   : > { %v863_v12 = vpop.permute.xlu1 %862 }
 0x5d1   : > { %v867_v22 = vpop.permute.xlu1 %866 }
 0x5d4   : > { %v4394_v13 = vpop.eup %4393 }
 0x5d5   : > { %v761_v17 = vmul.f32 %v4394_v13, %v4388_v52  ;;  %v4266_v25 = vpop.permute.xlu1 %4265 }
 0x5d6   : > { %v4268_v27 = vunpack.i.h.bf16 %v4266_v25  ;;  %v4267_v28 = vunpack.i.l.bf16 %v4266_v25 }
 0x5d7   : > { %3886 = vmatmul.mubr.msk.f32.gmra.mrb[12].mxu0 %vm727_vm6, %v761_v17 }
 0x5d8   : > { %3894 = vmatprep.mubr.msk.f32.mxu0 %vm4521_vm3, %v4522_v16  ;;  %v4184_v30 = vpack.c.bf16 %v4268_v27, %v4267_v28 }
 0x5d9   : > { %v1104_v31 = vpop.permute.xlu1 %1103 }
 0x5db   : > { %3895 = vmatmul.mubr.msk.f32.vlgmr.msra.gmra.mrb[14].mxu0 %vm631_vm4, %v863_v12 }
 0x5dc   : > { %4179 = vmatpush3.bf16.xpose.msk.msra.mxu0 %vm4696_vm5, %v4177_v23  ;;  %3897 = vmatprep.mubr.msk.f32.mxu0 %vm4521_vm3, %v4522_v16 }
 0x5dd   : > { %3922 = vmatprep.subr.mxu0 %v4522_v16  ;;  %v1351_v33 = vpop.permute.xlu1 %1350 }
 0x5df   : > { %3898 = vmatmul.mubr.msk.f32.gmra.mrb[16].mxu0 %vm631_vm4, %v865_v24 }
 0x5e0   : > { %3900 = vmatprep.mubr.msk.f32.mxu0 %vm4521_vm3, %v4522_v16 }
 0x5e1   : > { %v1343_v35 = vpop.permute.xlu1 %1342 }
 0x5e3   : > { %3901 = vmatmul.mubr.msk.f32.gmra.mrb[18].mxu0 %vm631_vm4, %v867_v22 }
 0x5e4   : > { %3923 = vmatpush3.xpose.msk.msra.mxu0 %vm631_vm4, %v1112_v26  ;;  %3924 = vmatprep.mubr.msk.f32.mxu0 %vm4521_vm3, %v4522_v16 }
 0x5e5   : > { %4183 = vmatprep.subr.bf16.mxu0 %v4519_v4 }
 0x5e7   : > { %3925 = vmatmul.mubr.msk.f32.vlgmr.msra.gmra.mrb[20].mxu0 %vm631_vm4, %v1102_v29 }
 0x5e8   : > { %4186 = vmatpush3.bf16.xpose.msk.msra.mxu0 %vm4696_vm5, %v4184_v30  ;;  %3927 = vmatprep.mubr.msk.f32.mxu0 %vm4521_vm3, %v4522_v16 }
 0x5e9   : > { %3952 = vmatprep.subr.mxu0 %v4522_v16 }
 0x5eb   : > { %3928 = vmatmul.mubr.msk.f32.gmra.mrb[22].mxu0 %vm631_vm4, %v1104_v31 }
 0x5ec   : > { %3930 = vmatprep.mubr.msk.f32.mxu0 %vm4521_vm3, %v4522_v16 }
 0x5ef   : > { %3931 = vmatmul.mubr.msk.f32.gmra.mrb[24].mxu0 %vm631_vm4, %v1106_v32 }
 0x5f0   : > { %3953 = vmatpush3.xpose.msk.msra.mxu0 %vm631_vm4, %v1351_v33  ;;  %3954 = vmatprep.mubr.msk.f32.mxu0 %vm4521_vm3, %v4522_v16 }
 0x5f3   : > { %3955 = vmatmul.mubr.msk.f32.vlgmr.msra.gmra.mrb[26].mxu0 %vm631_vm4, %v1341_v34 }
 0x5f4   : > { %3957 = vmatprep.mubr.msk.f32.mxu0 %vm4521_vm3, %v4522_v16 }
 0x5f7   : > { %3958 = vmatmul.mubr.msk.f32.gmra.mrb[28].mxu0 %vm631_vm4, %v1343_v35 }
 0x5f8   : > { %3960 = vmatprep.mubr.msk.f32.mxu0 %vm4521_vm3, %v4522_v16 }
 0x5fb   : > { %3961 = vmatmul.mubr.msk.f32.gmra.mrb[30].mxu0 %vm631_vm4, %v1345_v36 }
 0x671   : > { %v4808_v37 = vpop.f32.mrb[8].mxu0 }
 0x672   : > { %v3881_v38 = vpop.f32.mrb[9].mxu0 }
 0x675   : > { %v4810_v39 = vpop.f32.mrb[10].mxu0 }
 0x676   : > { %v3884_v40 = vpop.f32.mrb[11].mxu0 }
 0x6aa   : > { %v4812_v41 = vpop.f32.mrb[12].mxu0 }
 0x6ab   : > { %v3887_v42 = vpop.f32.mrb[13].mxu0 }
 0x6ae   : > { %v952_v43 = vpop.f32.mrb[14].mxu0 }
 0x6af   : > { %v966_v44 = vmul.f32 0.35355338, %v952_v43  ;;  %v3896_v45 = vpop.f32.mrb[15].mxu0 }
 0x6b1   : > { %v969_v46 = vsel %vm727_vm6, %v966_v44, -inf }
 0x6b2   : > { %970 = vmax.xlane.f32.xlu1 %v969_v46  ;;  %v957_v47 = vpop.f32.mrb[16].mxu0 }
 0x6b3   : > { %v967_v51 = vmul.f32 0.35355338, %v957_v47  ;;  %v3899_v52 = vpop.f32.mrb[17].mxu0 }
 0x6b5   : > { %v972_v53 = vsel %vm727_vm6, %v967_v51, -inf }
 0x6b6   : > { %973 = vmax.xlane.f32.xlu0 %v972_v53  ;;  %v962_v55 = vpop.f32.mrb[18].mxu0 }
 0x6b7   : > { %v968_v56 = vmul.f32 0.35355338, %v962_v55  ;;  %v3902_v57 = vpop.f32.mrb[19].mxu0 }
 0x6b9   : > { %v975_v58 = vsel %vm734_vm7, %v968_v56, -inf }
 0x6ba   : > { %976 = vmax.xlane.f32.xlu0 %v975_v58  ;;  %v1191_v59 = vpop.f32.mrb[20].mxu0 }
 0x6bb   : > { %v4817_v60 = vmul.f32 0.35355338, %v1191_v59  ;;  %v3926_v61 = vpop.f32.mrb[21].mxu0 }
 0x6bd   : > { %v1208_v62 = vsel %vm727_vm6, %v4817_v60, -inf }
 0x6be   : > { %1209 = vmax.xlane.f32.xlu0 %v1208_v62  ;;  %v1196_v63 = vpop.f32.mrb[22].mxu0 }
 0x6bf   : > { %v1206_v0 = vmul.f32 0.35355338, %v1196_v63  ;;  %v3929_v1 = vpop.f32.mrb[23].mxu0 }
 0x6c1   : > { %v1211_v2 = vsel %vm727_vm6, %v1206_v0, -inf }
 0x6c2   : > { %1212 = vmax.xlane.f32.xlu1 %v1211_v2  ;;  %v1201_v3 = vpop.f32.mrb[24].mxu0 }
 0x6c3   : > { %v1207_v5 = vmul.f32 0.35355338, %v1201_v3  ;;  %v3932_v6 = vpop.f32.mrb[25].mxu0 }
 0x6c5   : > { %v1214_v8 = vsel %vm734_vm7, %v1207_v5, -inf }
 0x6c6   : > { %1215 = vmax.xlane.f32.xlu0 %v1214_v8  ;;  %v1430_v9 = vpop.f32.mrb[26].mxu0 }
 0x6c7   : > { %v1444_v10 = vmul.f32 0.35355338, %v1430_v9  ;;  %v3956_v12 = vpop.f32.mrb[27].mxu0 }
 0x6c9   : > { %v1447_v13 = vsel %vm727_vm6, %v1444_v10, -inf }
 0x6ca   : > { %1448 = vmax.xlane.f32.xlu1 %v1447_v13  ;;  %v1435_v17 = vpop.f32.mrb[28].mxu0 }
 0x6cb   : > { %v4824_v19 = vmul.f32 0.35355338, %v1435_v17  ;;  %v3959_v20 = vpop.f32.mrb[29].mxu0 }
 0x6cd   : > { %v1450_v22 = vsel %vm727_vm6, %v4824_v19, -inf }
 0x6ce   : > { %1451 = vmax.xlane.f32.xlu0 %v1450_v22  ;;  %v1440_v23 = vpop.f32.mrb[30].mxu0 }
 0x6cf   : > { %v1446_v24 = vmul.f32 0.35355338, %v1440_v23  ;;  %v3962_v25 = vpop.f32.mrb[31].mxu0 }
 0x6d1   : > { %v1453_v26 = vsel %vm734_vm7, %v1446_v24, -inf }
 0x6d2   : > { %1454 = vmax.xlane.f32.xlu1 %v1453_v26 }
 0x6e3   : > { %4270 = vrot.lane.b32.xlu1 %v4686_v15, %s4530_s16 }
 0x6e4   : > { %1006 = vrot.lane.b32.xlu0 %v4676_v7, %s4530_s16 }
 0x6e8   : > { %4275 = vrot.lane.b32.xlu0 %v4686_v15, %s5445_s19 }
 0x73f   : > { %v971_v27 = vpop.xlane.xlu1 %970 }
 0x740   : > { %v978_v28 = vsub.f32 %v966_v44, %v971_v27 }
 0x742   : > { %v981_v29 = vmul.f32 1.442695, %v978_v28 }
 0x743   : > { %v974_v30 = vpop.xlane.xlu0 %973 }
 0x744   : > { %4395 = vpow2.f32 %v981_v29  ;;  %v979_v31 = vsub.f32 %v967_v51, %v974_v30 }
 0x746   : > { %v983_v32 = vmul.f32 1.442695, %v979_v31 }
 0x747   : > { %v977_v33 = vpop.xlane.xlu0 %976 }
 0x748   : > { %4397 = vpow2.f32 %v983_v32  ;;  %v980_v34 = vsub.f32 %v968_v56, %v977_v33 }
 0x74a   : > { %v985_v35 = vmul.f32 1.442695, %v980_v34 }
 0x74b   : > { %v1210_v38 = vpop.xlane.xlu0 %1209 }
 0x74c   : > { %4399 = vpow2.f32 %v985_v35  ;;  %v1217_v22 = vsub.f32 %v4817_v60, %v1210_v38 }
 0x74e   : > { %v4835_v36 = vpop.eup %4395  ;;  %v1220_v23 = vmul.f32 1.442695, %v1217_v22 }
 0x74f   : > { %v1213_v40 = vpop.xlane.xlu1 %1212  ;;  %v987_v42 = vsel %vm727_vm6, %v4835_v36, 0.0 }
 0x750   : > { %v1218_v43 = vsub.f32 %v1206_v0, %v1213_v40  ;;  %988 = vadd.xlane.f32.xlu0 %v987_v42 }
 0x752   : > { %v4839_v44 = vpop.eup %4397  ;;  %v1222_v45 = vmul.f32 1.442695, %v1218_v43 }
 0x753   : > { %v1216_v46 = vpop.xlane.xlu0 %1215  ;;  %v990_v47 = vsel %vm727_vm6, %v4839_v44, 0.0 }
 0x754   : > { %4401 = vpow2.f32 %v1222_v45  ;;  %v1219_v51 = vsub.f32 %v1207_v5, %v1216_v46  ;;  %991 = vadd.xlane.f32.xlu1 %v990_v47 }
 0x756   : > { %v4843_v52 = vpop.eup %4399  ;;  %v1224_v53 = vmul.f32 1.442695, %v1219_v51 }
 0x757   : > { %v1449_v55 = vpop.xlane.xlu1 %1448  ;;  %v993_v56 = vsel %vm734_vm7, %v4843_v52, 0.0 }
 0x758   : > { %4403 = vpow2.f32 %v1224_v53  ;;  %v1456_v57 = vsub.f32 %v1444_v10, %v1449_v55  ;;  %994 = vadd.xlane.f32.xlu0 %v993_v56 }
 0x75a   : > { %v1459_v58 = vmul.f32 1.442695, %v1456_v57 }
 0x75b   : > { %v1452_v9 = vpop.xlane.xlu0 %1451 }
 0x75c   : > { %4405 = vpow2.f32 %v1459_v58 }
 0x75e   : > { %v4847_v59 = vpop.eup %4401 }
 0x75f   : > { %v1455_v61 = vpop.xlane.xlu1 %1454  ;;  %v1229_v62 = vsel %vm727_vm6, %v4847_v59, 0.0  ;;  %v1007_v13 = vpop.permute.xlu0 %1006 }
 0x760   : > { %v1458_v63 = vsub.f32 %v1446_v24, %v1455_v61  ;;  %1230 = vadd.xlane.f32.xlu0 %v1229_v62  ;;  %v1457_v24 = vsub.f32 %v4824_v19, %v1452_v9 }
 0x762   : > { %v4851_v0 = vpop.eup %4403  ;;  %v1463_v1 = vmul.f32 1.442695, %v1458_v63  ;;  %v1461_v25 = vmul.f32 1.442695, %v1457_v24  ;;  %v4359_v24 = vld [vmem:[%s5429_s5] sm:$0xff]  }
 0x763   : > { %v4271_v2 = vpop.permute.xlu1 %4270  ;;  %v1232_v3 = vsel %vm734_vm7, %v4851_v0, 0.0  ;;  %v4276_v60 = vpop.permute.xlu0 %4275  ;;  %3978 = vmatprep.subr.bf16.mxu0 %v4359_v24 }
 0x764   : > { %4407 = vpow2.f32 %v1463_v1  ;;  %v4273_v5 = vunpack.i.h.bf16 %v4271_v2  ;;  %1233 = vadd.xlane.f32.xlu0 %v1232_v3  ;;  %v4272_v6 = vunpack.i.l.bf16 %v4271_v2  ;;  %v4278_v32 = vunpack.i.h.bf16 %v4276_v60  ;;  %3979 = vmatpush3.bf16.msra.mxu0 %v4359_v24 }
 0x765   : > { %1245 = vrot.lane.b32.xlu1 %v4676_v7, %s5445_s19  ;;  %4409 = vpow2.f32 %v1220_v23  ;;  %s5452_s19 = smov 16  }
 0x766   : > { %v4857_v8 = vpop.eup %4405  ;;  %v4174_v10 = vpack.c.bf16 %v4273_v5, %v4272_v6  ;;  %4411 = vpow2.f32 %v1461_v25 }
 0x767   : > { %v1465_v12 = vsel %vm727_vm6, %v4857_v8, 0.0 }
 0x768   : > { %1466 = vadd.xlane.f32.xlu0 %v1465_v12  ;;  %4175 = vmatpush3.bf16.msra.mxu1 %v4174_v10 }
 0x769   : > { %3907 = vmatprep.subr.mxu1 %v4522_v16 }
 0x76c   : > { %3908 = vmatpush3.msk.msra.mxu1 %vm779_vm8, %v1007_v13 }
 0x76d   : > { %4180 = vmatprep.subr.bf16.mxu1 %v4519_v4 }
 0x76e   : > { %v4863_v17 = vpop.eup %4407 }
 0x76f   : > { %v1471_v20 = vsel %vm734_vm7, %v4863_v17, 0.0  ;;  %v4410_v26 = vpop.eup %4409 }
 0x770   : > { %1472 = vadd.xlane.f32.xlu0 %v1471_v20  ;;  %v1226_v27 = vsel %vm727_vm6, %v4410_v26, 0.0  ;;  %v4873_v28 = vpop.eup %4411 }
 0x771   : > { %v1468_v29 = vsel %vm727_vm6, %v4873_v28, 0.0 }
 0x786   : > { %4280 = vrot.lane.b32.xlu0 %v4686_v15, %s5443_s20  ;;  %v4277_v15 = vunpack.i.l.bf16 %v4276_v60  ;;  %v4360_v60 = vld [vmem:[%s5429_s5 + $0x8] sm:$0xff]  }
 0x787   : > { %3980 = vmatprep.subr.bf16.mxu0 %v4360_v60 }
 0x788   : > { %v4181_v35 = vpack.c.bf16 %v4278_v32, %v4277_v15  ;;  %3981 = vmatpush3.bf16.msra.mxu0 %v4360_v60 }
 0x789   : > { %1227 = vadd.xlane.f32.xlu1 %v1226_v27 }
 0x78d   : > { %1469 = vadd.xlane.f32.xlu1 %v1468_v29 }
 0x79e   : > { %1484 = vrot.lane.b32.xlu1 %v4676_v7, %s5443_s20 }
 0x7dd   : > { %v989_v19 = vpop.xlane.xlu0 %988 }
 0x7de   : > { %4413 = vrcp.f32 %v989_v19 }
 0x7e1   : > { %v992_v30 = vpop.xlane.xlu1 %991 }
 0x7e2   : > { %4415 = vrcp.f32 %v992_v30 }
 0x7e5   : > { %v995_v31 = vpop.xlane.xlu0 %994  ;;  %v1246_v40 = vpop.permute.xlu1 %1245 }
 0x7e6   : > { %4417 = vrcp.f32 %v995_v31 }
 0x7e8   : > { %v4414_v33 = vpop.eup %4413 }
 0x7e9   : > { %v997_v34 = vmul.f32 %v4414_v33, %v4835_v36 }
 0x7eb   : > { %3910 = vmatmul.mubr.msk.f32.vlgmr.msra.gmra.mrb[6].mxu1 %vm727_vm6, %v997_v34 }
 0x7ec   : > { %v4416_v38 = vpop.eup %4415  ;;  %4182 = vmatpush3.bf16.msra.mxu1 %v4181_v35  ;;  %3912 = vmatprep.mubr.msk.f32.mxu1 %vm4521_vm3, %v4522_v16 }
 0x7ed   : > { %3937 = vmatprep.subr.mxu1 %v4522_v16  ;;  %v999_v7 = vmul.f32 %v4416_v38, %v4839_v44  ;;  %v1231_v43 = vpop.xlane.xlu0 %1230 }
 0x7ef   : > { %3913 = vmatmul.mubr.msk.f32.gmra.mrb[8].mxu1 %vm727_vm6, %v999_v7 }
 0x7f0   : > { %v4418_v42 = vpop.eup %4417  ;;  %3938 = vmatpush3.msk.msra.mxu1 %vm779_vm8, %v1246_v40  ;;  %3915 = vmatprep.mubr.msk.f32.mxu1 %vm4521_vm3, %v4522_v16 }
 0x7f1   : > { %v1001_v36 = vmul.f32 %v4418_v42, %v4843_v52  ;;  %4187 = vmatprep.subr.bf16.mxu1 %v4519_v4  ;;  %v1234_v44 = vpop.xlane.xlu0 %1233 }
 0x7f3   : > { %3916 = vmatmul.mubr.msk.f32.gmra.mrb[10].mxu1 %vm727_vm6, %v1001_v36 }
 0x7f4   : > { %3939 = vmatprep.mubr.msk.f32.mxu1 %vm4521_vm3, %v4522_v16 }
 0x7f5   : > { %v1467_v45 = vpop.xlane.xlu0 %1466 }
 0x7fd   : > { %v1473_v46 = vpop.xlane.xlu0 %1472 }
 0x801   : > { %v4281_v51 = vpop.permute.xlu0 %4280 }
 0x802   : > { %v4283_v53 = vunpack.i.h.bf16 %v4281_v51  ;;  %v4282_v55 = vunpack.i.l.bf16 %v4281_v51 }
 0x804   : > { %v4188_v61 = vpack.c.bf16 %v4283_v53, %v4282_v55 }
 0x816   : > { %v1228_v47 = vpop.xlane.xlu1 %1227 }
 0x817   : > { %4419 = vrcp.f32 %v1228_v47 }
 0x818   : > { %4421 = vrcp.f32 %v1231_v43 }
 0x819   : > { %4423 = vrcp.f32 %v1234_v44 }
 0x81a   : > { %4425 = vrcp.f32 %v1467_v45  ;;  %v1470_v57 = vpop.xlane.xlu1 %1469 }
 0x81b   : > { %4427 = vrcp.f32 %v1470_v57 }
 0x81c   : > { %4429 = vrcp.f32 %v1473_v46 }
 0x81e   : > { %v1485_v1 = vpop.permute.xlu1 %1484 }
 0x821   : > { %v4420_v56 = vpop.eup %4419 }
 0x822   : > { %v1236_v52 = vmul.f32 %v4420_v56, %v4410_v26  ;;  %v4422_v58 = vpop.eup %4421 }
 0x823   : > { %v1238_v62 = vmul.f32 %v4422_v58, %v4847_v59  ;;  %v4424_v63 = vpop.eup %4423 }
 0x824   : > { %3940 = vmatmul.mubr.msk.f32.vlgmr.msra.gmra.mrb[12].mxu1 %vm727_vm6, %v1236_v52  ;;  %v1240_v2 = vmul.f32 %v4424_v63, %v4851_v0  ;;  %v4426_v3 = vpop.eup %4425 }
 0x825   : > { %4189 = vmatpush3.bf16.msra.mxu1 %v4188_v61  ;;  %3942 = vmatprep.mubr.msk.f32.mxu1 %vm4521_vm3, %v4522_v16  ;;  %v1475_v59 = vmul.f32 %v4426_v3, %v4857_v8  ;;  %v4428_v5 = vpop.eup %4427 }
 0x826   : > { %3967 = vmatprep.subr.mxu1 %v4522_v16  ;;  %v1477_v6 = vmul.f32 %v4428_v5, %v4873_v28  ;;  %v4430_v9 = vpop.eup %4429 }
 0x827   : > { %v1479_v0 = vmul.f32 %v4430_v9, %v4863_v17 }
 0x828   : > { %3943 = vmatmul.mubr.msk.f32.gmra.mrb[14].mxu1 %vm727_vm6, %v1238_v62 }
 0x829   : > { %3968 = vmatpush3.msk.msra.mxu1 %vm779_vm8, %v1485_v1  ;;  %3945 = vmatprep.mubr.msk.f32.mxu1 %vm4521_vm3, %v4522_v16 }
 0x82c   : > { %3946 = vmatmul.mubr.msk.f32.gmra.mrb[16].mxu1 %vm727_vm6, %v1240_v2 }
 0x82d   : > { %3969 = vmatprep.mubr.msk.f32.mxu1 %vm4521_vm3, %v4522_v16 }
 0x830   : > { %3970 = vmatmul.mubr.msk.f32.vlgmr.msra.gmra.mrb[18].mxu1 %vm727_vm6, %v1475_v59 }
 0x831   : > { %3972 = vmatprep.mubr.msk.f32.mxu1 %vm4521_vm3, %v4522_v16 }
 0x834   : > { %3973 = vmatmul.mubr.msk.f32.gmra.mrb[20].mxu1 %vm727_vm6, %v1477_v6 }
 0x835   : > { %3975 = vmatprep.mubr.msk.f32.mxu1 %vm4521_vm3, %v4522_v16 }
 0x838   : > { %3976 = vmatmul.mubr.msk.f32.gmra.mrb[22].mxu1 %vm727_vm6, %v1479_v0 }
 0x8be   : > { %v1087_v10 = vpop.f32.mrb[6].mxu1 }
 0x8bf   : > { %v3911_v8 = vpop.f32.mrb[7].mxu1 }
 0x8c2   : > { %v1092_v12 = vpop.f32.mrb[8].mxu1 }
 0x8c3   : > { %v4284_v13 = vpack.i.bf16 %v1092_v12, %v1087_v10  ;;  %v3914_v20 = vpop.f32.mrb[9].mxu1 }
 0x8c5   : > { %4285 = vrot.lane.b32.xlu1 %v4284_v13, %s5441_s21 }
 0x8c6   : > { %v1097_v22 = vpop.f32.mrb[10].mxu1 }
 0x8c7   : > { %v3917_v23 = vpop.f32.mrb[11].mxu1 }
 0x8c9   : > { %1586 = vrot.lane.b32.xlu1 %v1097_v22, %s5441_s21 }
 0x8f7   : > { %v1326_v25 = vpop.f32.mrb[12].mxu1 }
 0x8f8   : > { %v3941_v17 = vpop.f32.mrb[13].mxu1 }
 0x8fb   : > { %v1331_v26 = vpop.f32.mrb[14].mxu1 }
 0x8fc   : > { %v4289_v27 = vpack.i.bf16 %v1331_v26, %v1326_v25  ;;  %v3944_v28 = vpop.f32.mrb[15].mxu1 }
 0x8fe   : > { %4290 = vrot.lane.b32.xlu1 %v4289_v27, %s5439_s24 }
 0x8ff   : > { %v1336_v29 = vpop.f32.mrb[16].mxu1 }
 0x900   : > { %v3947_v19 = vpop.f32.mrb[17].mxu1 }
 0x902   : > { %1598 = vrot.lane.b32.xlu1 %v1336_v29, %s5439_s24  ;;  %s5453_s24 = smov 24  }
 0x903   : > { %v1565_v30 = vpop.f32.mrb[18].mxu1 }
 0x904   : > { %v3971_v31 = vpop.f32.mrb[19].mxu1 }
 0x907   : > { %v1570_v32 = vpop.f32.mrb[20].mxu1 }
 0x908   : > { %v4294_v15 = vpack.i.bf16 %v1570_v32, %v1565_v30  ;;  %v3974_v33 = vpop.f32.mrb[21].mxu1  ;;  %v4361_v32 = vld [vmem:[%s5431_s7] sm:$0xff]  }
 0x909   : > { %3986 = vmatprep.subr.bf16.mxu1 %v4361_v32 }
 0x90a   : > { %4295 = vrot.lane.b32.xlu1 %v4294_v15, %s5437_s22  ;;  %v4362_v15 = vld [vmem:[%s5431_s7 + $0x8] sm:$0xff]   ;;  %3987 = vmatpush3.bf16.msra.mxu1 %v4361_v32 }
 0x90b   : > { %v1575_v34 = vpop.f32.mrb[22].mxu1  ;;  %3988 = vmatprep.subr.bf16.mxu1 %v4362_v15 }
 0x90c   : > { %1610 = vrot.lane.b32.xlu0 %v1575_v34, %s5437_s22  ;;  %v3977_v35 = vpop.f32.mrb[23].mxu1 }
 0x90e   : > { %3989 = vmatpush3.bf16.msra.mxu1 %v4362_v15 }
 0x937   : > { %v4286_v38 = vpop.permute.xlu1 %4285 }
 0x938   : > { %v4288_v42 = vunpack.i.h.bf16 %v4286_v38  ;;  %v4287_v43 = vunpack.i.l.bf16 %v4286_v38 }
 0x93a   : > { %v1616_v46 = vsel %vm631_vm4, %v4810_v39, %v4288_v42  ;;  %v1615_v51 = vsel %vm631_vm4, %v4808_v37, %v4287_v43 }
 0x93b   : > { %v1587_v7 = vpop.permute.xlu1 %1586 }
 0x93c   : > { %v1617_v53 = vsel %vm631_vm4, %v4812_v41, %v1587_v7  ;;  %v1703_v41 = vsub.s32 2, %v4654_v48 }
 0x93e   : > { %v1704_v3 = vrot.slane %v4660_v50, %v1703_v41 }
 0x970   : > { %v4291_v40 = vpop.permute.xlu1 %4290 }
 0x971   : > { %v4293_v44 = vunpack.i.h.bf16 %v4291_v40  ;;  %v4292_v45 = vunpack.i.l.bf16 %v4291_v40 }
 0x973   : > { %v1620_v52 = vsel %vm1618_vm9, %v1616_v46, %v4293_v44  ;;  %v1619_v57 = vsel %vm1618_vm9, %v1615_v51, %v4292_v45  ;;  %v1749_v44 = vsub.s32 3, %v4654_v48  ;;  %v4978_v45 = vld [vmem:[%s5430_s6] sm:$0x3f] }
 0x974   : > { %v1599_v36 = vpop.permute.xlu1 %1598 }
 0x975   : > { %v1621_v58 = vsel %vm1618_vm9, %v1617_v53, %v1599_v36  ;;  %v1750_v46 = vrot.slane %v4978_v45, %v1749_v44 }
 0x97c   : > { %v4296_v47 = vpop.permute.xlu1 %4295 }
 0x97d   : > { %v4298_v55 = vunpack.i.h.bf16 %v4296_v47  ;;  %v4297_v56 = vunpack.i.l.bf16 %v4296_v47  ;;  %v1756_v47 = vsub.s32 4, %v4654_v48 }
 0x97e   : > { %v1611_v61 = vpop.permute.xlu0 %1610 }
 0x97f   : > { %v1624_v62 = vsel %vm1622_vm10, %v1620_v52, %v4298_v55  ;;  %v1623_v39 = vsel %vm1622_vm10, %v1619_v57, %v4297_v56  ;;  %v1625_v63 = vsel %vm1622_vm10, %v1621_v58, %v1611_v61  ;;  %v1757_v57 = vrot.slane %v4978_v45, %v1756_v47 }
 0x980   : > { %v1630_v1 = vpack.c.bf16 %v1624_v62, %v1623_v39  ;;  %v1631_v37 = vpack.c.bf16 %v1625_v63, %v1625_v63 }
 0x982   : > { %3982 = vmatprep.mubr.msk.bf16.mxu0 %vm487_vm2, %v1630_v1 }
 0x983   : > { %3983 = vmatmul.mubr.msk.bf16.vlgmr.msra.gmra.mrb[32].mxu0 %vm487_vm2, %v1631_v37 }
 0xa56   : > { %v3984_v2 = vpop.f32.mrb[32].mxu0 }
 0xa57   : > { %v1684_v59 = vpop.f32.mrb[33].mxu0  ;;  %v1700_v0 = vadd.f32 %v3984_v2, %v4627_v11 }
 0xa58   : > { %v1698_v5 = vadd.f32 %v1684_v59, %v4632_v14  ;;  %v3985_v6 = vpop.f32.mrb[34].mxu0  ;;  %v4363_v59 = vld [vmem:[%s5433_s9] sm:$0xff]  }
 0xa59   : > { %v1687_v9 = vpop.f32.mrb[35].mxu0  ;;  %v4956_v20 = vadd.f32 %v1704_v3, %v1700_v0  ;;  %3994 = vmatprep.subr.bf16.mxu0 %v4363_v59  ;;  %v4365_v6 = vld [vmem:[%s5433_s9 + $0x10] sm:$0xff]   ;;  %v3607_v0 = vld [vmem:[%s5432_s8] ss:$0 sm:$0xff] }
 0xa5a   : > { %v4949_v10 = vadd.f32 %v1704_v3, %v1698_v5  ;;  %v1699_v8 = vadd.f32 %v1687_v9, %v4636_v18  ;;  %v4364_v5 = vld [vmem:[%s5433_s9 + $0x8] sm:$0xff]   ;;  %3995 = vmatpush3.bf16.msra.mxu0 %v4363_v59  ;;  %v4366_v9 = vld [vmem:[%s5433_s9 + $0x18] sm:$0xff]  }
 0xa5b   : > { %v1714_v14 = vsel %vm494_vm1, %v4956_v20, 0.0  ;;  %3996 = vmatprep.subr.bf16.mxu0 %v4364_v5 }
 0xa5c   : > { %v4952_v12 = vadd.f32 %v1704_v3, %v1699_v8  ;;  %v1708_v13 = vsel %vm487_vm2, %v4949_v10, 0.0 }
 0xa5d   : > { %1709 = vadd.xlane.f32.xlu1 %v1708_v13 }
 0xa5e   : > { %v1711_v50 = vsel %vm487_vm2, %v4952_v12, 0.0  ;;  %3997 = vmatpush3.bf16.msra.mxu0 %v4364_v5 }
 0xa5f   : > { %1712 = vadd.xlane.f32.xlu0 %v1711_v50  ;;  %3998 = vmatprep.subr.bf16.mxu0 %v4365_v6 }
 0xa62   : > { %3999 = vmatpush3.bf16.msra.mxu0 %v4365_v6 }
 0xa63   : > { %1715 = vadd.xlane.f32.xlu0 %v1714_v14  ;;  %4000 = vmatprep.subr.bf16.mxu0 %v4366_v9 }
 0xa66   : > { %4001 = vmatpush3.bf16.msra.mxu0 %v4366_v9 }
 0xa67   : > { %4194 = vmatprep.subr.bf16.mxu0 %v4519_v4 }
 0xaea   : > { %v1710_v11 = vpop.xlane.xlu1 %1709 }
 0xaeb   : > { %v1717_v22 = vmul.f32 0.03125, %v1710_v11 }
 0xaec   : > { %v1713_v23 = vpop.xlane.xlu0 %1712 }
 0xaed   : > { %v1720_v18 = vsub.f32 %v4949_v10, %v1717_v22  ;;  %v1718_v24 = vmul.f32 0.03125, %v1713_v23 }
 0xaef   : > { %v1721_v25 = vsub.f32 %v4952_v12, %v1718_v24  ;;  %v1723_v17 = vmul.f32 %v1720_v18, %v1720_v18 }
 0xaf0   : > { %v1716_v26 = vpop.xlane.xlu0 %1715 }
 0xaf1   : > { %v1719_v27 = vmul.f32 0.03125, %v1716_v26  ;;  %v1726_v28 = vsel %vm487_vm2, %v1723_v17, 0.0  ;;  %v1724_v29 = vmul.f32 %v1721_v25, %v1721_v25 }
 0xaf2   : > { %1727 = vadd.xlane.f32.xlu0 %v1726_v28 }
 0xaf3   : > { %v1722_v60 = vsub.f32 %v4956_v20, %v1719_v27  ;;  %v1729_v19 = vsel %vm487_vm2, %v1724_v29, 0.0 }
 0xaf4   : > { %1730 = vadd.xlane.f32.xlu1 %v1729_v19 }
 0xaf5   : > { %v1725_v30 = vmul.f32 %v1722_v60, %v1722_v60 }
 0xaf7   : > { %v1732_v31 = vsel %vm494_vm1, %v1725_v30, 0.0 }
 0xaf8   : > { %1733 = vadd.xlane.f32.xlu0 %v1732_v31 }
 0xb7f   : > { %v1728_v33 = vpop.xlane.xlu0 %1727 }
 0xb80   : > { %v1735_v34 = vmul.f32 0.03125, %v1728_v33 }
 0xb81   : > { %v1731_v35 = vpop.xlane.xlu1 %1730 }
 0xb82   : > { %v1738_v38 = vadd.f32 1e-06, %v1735_v34  ;;  %v1736_v7 = vmul.f32 0.03125, %v1731_v35 }
 0xb84   : > { %4431 = vrsqrt.f32 %v1738_v38  ;;  %v1739_v40 = vadd.f32 1e-06, %v1736_v7 }
 0xb85   : > { %v1734_v42 = vpop.xlane.xlu0 %1733 }
 0xb86   : > { %4433 = vrsqrt.f32 %v1739_v40  ;;  %v1737_v36 = vmul.f32 0.03125, %v1734_v42 }
 0xb88   : > { %v1740_v43 = vadd.f32 1e-06, %v1737_v36 }
 0xb8a   : > { %4435 = vrsqrt.f32 %v1740_v43 }
 0xb8e   : > { %v4432_v51 = vpop.eup %4431 }
 0xb8f   : > { %v1744_v53 = vmul.f32 %v4432_v51, %v1720_v18 }
 0xb90   : > { %v4434_v55 = vpop.eup %4433 }
 0xb91   : > { %v1745_v56 = vmul.f32 %v4434_v55, %v1721_v25  ;;  %v1751_v52 = vmul.f32 %v1750_v46, %v1744_v53 }
 0xb93   : > { %v1752_v58 = vmul.f32 %v1750_v46, %v1745_v56  ;;  %v1758_v39 = vadd.f32 %v1757_v57, %v1751_v52 }
 0xb94   : > { %v4436_v61 = vpop.eup %4435 }
 0xb95   : > { %v1746_v62 = vmul.f32 %v4436_v61, %v1722_v60  ;;  %v1759_v63 = vadd.f32 %v1757_v57, %v1752_v58 }
 0xb97   : > { %v1753_v1 = vmul.f32 %v1750_v46, %v1746_v62  ;;  %v1765_v37 = vpack.c.bf16 %v1759_v63, %v1758_v39 }
 0xb99   : > { %3990 = vmatprep.mubr.msk.bf16.mxu1 %vm487_vm2, %v1765_v37  ;;  %v1760_v2 = vadd.f32 %v1757_v57, %v1753_v1  ;;  %v1961_v57 = vsub.s32 5, %v4654_v48 }
 0xb9b   : > { %v1766_v3 = vpack.c.bf16 %v1760_v2, %v1760_v2  ;;  %v1962_v61 = vrot.slane %v4978_v45, %v1961_v57 }
 0xb9d   : > { %3991 = vmatmul.mubr.msk.bf16.vlgmr.msra.gmra.mrb[24].mxu1 %vm487_vm2, %v1766_v3 }
 0xc70   : > { %v3992_v8 = vpop.f32.mrb[24].mxu1 }
 0xc71   : > { %v1835_v13 = vadd.f32 %v3992_v8, %v3607_v0  ;;  %v1826_v50 = vpop.f32.mrb[25].mxu1 }
 0xc72   : > { %v1827_v14 = vadd.f32 %v3607_v0, %v1826_v50  ;;  %v3993_v11 = vpop.f32.mrb[26].mxu1 }
 0xc73   : > { %v1845_v22 = vmul.f32 0.044715, %v1835_v13  ;;  %v1829_v23 = vpop.f32.mrb[27].mxu1  ;;  %v1842_v42 = vmul.f32 0.5, %v1835_v13 }
 0xc74   : > { %v1843_v18 = vmul.f32 0.044715, %v1827_v14  ;;  %v1830_v24 = vadd.f32 %v3607_v0, %v1829_v23  ;;  %v1840_v36 = vmul.f32 0.5, %v1827_v14 }
 0xc75   : > { %v1848_v25 = vmul.f32 %v1845_v22, %v1835_v13 }
 0xc76   : > { %v1846_v17 = vmul.f32 %v1843_v18, %v1827_v14  ;;  %v1844_v26 = vmul.f32 0.044715, %v1830_v24  ;;  %v1841_v43 = vmul.f32 0.5, %v1830_v24 }
 0xc77   : > { %v1851_v27 = vmul.f32 %v1848_v25, %v1835_v13 }
 0xc78   : > { %v1849_v28 = vmul.f32 %v1846_v17, %v1827_v14  ;;  %v1847_v29 = vmul.f32 %v1844_v26, %v1830_v24  ;;  %v4367_v26 = vld [vmem:[%s5427_s3 + $0x10] sm:$0xff]  }
 0xc79   : > { %v1854_v60 = vadd.f32 %v1851_v27, %v1835_v13  ;;  %v4368_v27 = vld [vmem:[%s5427_s3 + $0x18] sm:$0xff]   ;;  %4006 = vmatprep.subr.bf16.mxu1 %v4367_v26 }
 0xc7a   : > { %v1852_v19 = vadd.f32 %v1849_v28, %v1827_v14  ;;  %v1850_v30 = vmul.f32 %v1847_v29, %v1830_v24  ;;  %4007 = vmatpush3.bf16.msra.mxu1 %v4367_v26 }
 0xc7b   : > { %v1857_v31 = vmul.f32 0.7978846, %v1854_v60  ;;  %4008 = vmatprep.subr.bf16.mxu1 %v4368_v27 }
 0xc7c   : > { %v1855_v32 = vmul.f32 0.7978846, %v1852_v19  ;;  %v1853_v15 = vadd.f32 %v1850_v30, %v1830_v24 }
 0xc7d   : > { %4437 = vtanh.f32 %v1857_v31 }
 0xc7e   : > { %4439 = vtanh.f32 %v1855_v32  ;;  %v1856_v33 = vmul.f32 0.7978846, %v1853_v15  ;;  %4009 = vmatpush3.bf16.msra.mxu1 %v4368_v27 }
 0xc7f   : > { %4190 = vmatprep.subr.bf16.mxu1 %v4519_v4 }
 0xc80   : > { %4441 = vtanh.f32 %v1856_v33 }
 0xc87   : > { %v4438_v34 = vpop.eup %4437 }
 0xc88   : > { %v4440_v35 = vpop.eup %4439  ;;  %v1863_v38 = vadd.f32 1.0, %v4438_v34  ;;  %v5044_v34 = vld [vmem:[%s5430_s6 + $0x8] sm:$0x3f] }
 0xc89   : > { %v1861_v7 = vadd.f32 1.0, %v4440_v35  ;;  %v2010_v35 = vrot.slane %v5044_v34, %v531_v49 }
 0xc8a   : > { %v4442_v40 = vpop.eup %4441  ;;  %v1866_v51 = vmul.f32 %v1863_v38, %v1842_v42 }
 0xc8b   : > { %v1862_v46 = vadd.f32 1.0, %v4442_v40  ;;  %v1864_v53 = vmul.f32 %v1861_v7, %v1840_v36 }
 0xc8c   : > { %v1876_v52 = vpack.c.bf16 %v1866_v51, %v1866_v51 }
 0xc8d   : > { %v1865_v55 = vmul.f32 %v1862_v46, %v1841_v43  ;;  %v2017_v43 = vrot.slane %v5044_v34, %v538_v54  ;;  %v3624_v54 = vld [vmem:[%s5428_s4 + $0x1] ss:$0 sm:$0xff] }
 0xc8f   : > { %v1875_v56 = vpack.c.bf16 %v1865_v55, %v1864_v53 }
 0xc91   : > { %4002 = vmatprep.mubr.msk.bf16.mxu0 %vm1901_vm11, %v1875_v56 }
 0xc92   : > { %4003 = vmatmul.mubr.msk.bf16.vlgmr.msra.gmra.mrb[36].mxu0 %vm1901_vm11, %v1876_v52 }
 0xc93   : > { %4035 = vmatprep.mubr.msk.f32.mxu0 %vm4521_vm3, %v4522_v16 }
 0xd65   : > { %v4004_v58 = vpop.f32.mrb[36].mxu0 }
 0xd66   : > { %v1942_v62 = vpop.f32.mrb[37].mxu0  ;;  %v1958_v39 = vadd.f32 %v4004_v58, %v4956_v20 }
 0xd67   : > { %v1956_v63 = vadd.f32 %v1942_v62, %v4949_v10  ;;  %v4005_v1 = vpop.f32.mrb[38].mxu0 }
 0xd68   : > { %v1945_v37 = vpop.f32.mrb[39].mxu0  ;;  %v5018_v59 = vadd.f32 %v1962_v61, %v1958_v39 }
 0xd69   : > { %v5015_v2 = vadd.f32 %v1962_v61, %v1956_v63  ;;  %v1957_v3 = vadd.f32 %v1945_v37, %v4952_v12 }
 0xd6a   : > { %v1974_v10 = vsel %vm494_vm1, %v5018_v59, 0.0 }
 0xd6b   : > { %v5020_v5 = vadd.f32 %v1962_v61, %v1957_v3  ;;  %v1968_v6 = vsel %vm487_vm2, %v5015_v2, 0.0 }
 0xd6c   : > { %1969 = vadd.xlane.f32.xlu1 %v1968_v6 }
 0xd6d   : > { %v1971_v45 = vsel %vm487_vm2, %v5020_v5, 0.0 }
 0xd6e   : > { %1972 = vadd.xlane.f32.xlu0 %v1971_v45 }
 0xd70   : > { %1975 = vadd.xlane.f32.xlu1 %v1974_v10 }
 0xdf9   : > { %v1970_v20 = vpop.xlane.xlu1 %1969 }
 0xdfa   : > { %v1977_v9 = vmul.f32 0.03125, %v1970_v20 }
 0xdfb   : > { %v1973_v0 = vpop.xlane.xlu0 %1972 }
 0xdfc   : > { %v1980_v12 = vsub.f32 %v5015_v2, %v1977_v9  ;;  %v1978_v8 = vmul.f32 0.03125, %v1973_v0 }
 0xdfd   : > { %v1976_v13 = vpop.xlane.xlu1 %1975 }
 0xdfe   : > { %v1981_v50 = vsub.f32 %v5020_v5, %v1978_v8  ;;  %v1979_v14 = vmul.f32 0.03125, %v1976_v13  ;;  %v1983_v11 = vmul.f32 %v1980_v12, %v1980_v12 }
 0xe00   : > { %v1982_v22 = vsub.f32 %v5018_v59, %v1979_v14  ;;  %v1986_v23 = vsel %vm487_vm2, %v1983_v11, 0.0  ;;  %v1984_v18 = vmul.f32 %v1981_v50, %v1981_v50 }
 0xe01   : > { %1987 = vadd.xlane.f32.xlu0 %v1986_v23 }
 0xe02   : > { %v1989_v24 = vsel %vm487_vm2, %v1984_v18, 0.0  ;;  %v1985_v25 = vmul.f32 %v1982_v22, %v1982_v22 }
 0xe03   : > { %1990 = vadd.xlane.f32.xlu1 %v1989_v24 }
 0xe04   : > { %v1992_v17 = vsel %vm494_vm1, %v1985_v25, 0.0 }
 0xe05   : > { %1993 = vadd.xlane.f32.xlu0 %v1992_v17 }
 0xe8e   : > { %v1988_v28 = vpop.xlane.xlu0 %1987 }
 0xe8f   : > { %v1995_v29 = vmul.f32 0.03125, %v1988_v28 }
 0xe90   : > { %v1991_v60 = vpop.xlane.xlu1 %1990 }
 0xe91   : > { %v1998_v19 = vadd.f32 1e-06, %v1995_v29  ;;  %v1996_v30 = vmul.f32 0.03125, %v1991_v60 }
 0xe92   : > { %v1994_v31 = vpop.xlane.xlu0 %1993 }
 0xe93   : > { %4443 = vrsqrt.f32 %v1998_v19  ;;  %v1999_v32 = vadd.f32 1e-06, %v1996_v30  ;;  %v1997_v15 = vmul.f32 0.03125, %v1994_v31 }
 0xe95   : > { %4445 = vrsqrt.f32 %v1999_v32  ;;  %v2000_v33 = vadd.f32 1e-06, %v1997_v15 }
 0xe97   : > { %4447 = vrsqrt.f32 %v2000_v33 }
 0xe9d   : > { %v4444_v38 = vpop.eup %4443 }
 0xe9e   : > { %v2004_v7 = vmul.f32 %v4444_v38, %v1980_v12 }
 0xe9f   : > { %v4446_v40 = vpop.eup %4445 }
 0xea0   : > { %v2005_v42 = vmul.f32 %v4446_v40, %v1981_v50  ;;  %v2011_v36 = vmul.f32 %v2010_v35, %v2004_v7 }
 0xea1   : > { %v4448_v46 = vpop.eup %4447 }
 0xea2   : > { %v2006_v51 = vmul.f32 %v4448_v46, %v1982_v22  ;;  %v2012_v53 = vmul.f32 %v2010_v35, %v2005_v42  ;;  %v2018_v55 = vadd.f32 %v2017_v43, %v2011_v36 }
 0xea4   : > { %v2019_v56 = vadd.f32 %v2017_v43, %v2012_v53  ;;  %v2013_v52 = vmul.f32 %v2010_v35, %v2006_v51 }
 0xea6   : > { %v2026_v58 = vpack.c.bf16 %v2019_v56, %v2018_v55  ;;  %v2020_v61 = vadd.f32 %v2017_v43, %v2013_v52 }
 0xea8   : > { %4010 = vmatprep.mubr.msk.bf16.mxu1 %vm487_vm2, %v2026_v58  ;;  %v2027_v49 = vpack.c.bf16 %v2020_v61, %v2020_v61 }
 0xeaa   : > { %4011 = vmatmul.mubr.msk.bf16.vlgmr.msra.gmra.mrb[28].mxu1 %vm487_vm2, %v2027_v49 }
 0xeab   : > { %4020 = vmatprep.mubr.msk.f32.mxu1 %vm4521_vm3, %v4522_v16 }
 0xf7d   : > { %v4012_v62 = vpop.f32.mrb[28].mxu1 }
 0xf7e   : > { %v5059_v39 = vadd.f32 %v4012_v62, %v3624_v54  ;;  %v2088_v63 = vpop.f32.mrb[29].mxu1 }
 0xf7f   : > { %v4013_v1 = vpop.f32.mrb[30].mxu1  ;;  %v2089_v3 = vadd.f32 %v3624_v54, %v2088_v63 }
 0xf80   : > { %2109 = vrot.lane.b32.xlu0 %v5059_v39, %s4520_s27  ;;  %v2091_v37 = vpop.f32.mrb[31].mxu1 }
 0xf81   : > { %v2092_v6 = vadd.f32 %v3624_v54, %v2091_v37 }
 0xf83   : > { %v5063_v45 = vpack.i.bf16 %v2092_v6, %v2089_v3 }
 0xf84   : > { %2338 = vrot.lane.b32.xlu0 %v2089_v3, %s4526_s12 }
 0xf85   : > { %4300 = vrot.lane.b32.xlu1 %v5063_v45, %s4520_s27  ;;  %s5449_s27 = smov 48  }
 0xf88   : > { %2342 = vrot.lane.b32.xlu0 %v5059_v39, %s4526_s12 }
 0xf89   : > { %4305 = vrot.lane.b32.xlu1 %v5063_v45, %s4524_s29 }
 0xf8c   : > { %4315 = vrot.lane.b32.xlu0 %v5063_v45, %s4529_s15 }
 0xf8d   : > { %2348 = vrot.lane.b32.xlu1 %v5059_v39, %s4524_s29  ;;  %s3552_s29 = sshll.u32 %s5456_s18, 2 }
 0xf90   : > { %2579 = vrot.lane.b32.xlu0 %v2092_v6, %s4527_s13 }
 0xf91   : > { %4310 = vrot.lane.b32.xlu1 %v5063_v45, %s4525_s30 }
 0xf94   : > { %2826 = vrot.lane.b32.xlu0 %v5059_v39, %s4529_s15 }
 0xf95   : > { %2340 = vrot.lane.b32.xlu1 %v2092_v6, %s4526_s12 }
 0xf98   : > { %2818 = vrot.lane.b32.xlu0 %v2092_v6, %s4528_s14 }
 0xf99   : > { %2587 = vrot.lane.b32.xlu1 %v5059_v39, %s4525_s30 }
 0xf9d   : > { %2577 = vrot.lane.b32.xlu1 %v2089_v3, %s4527_s13 }
 0xfa1   : > { %2581 = vrot.lane.b32.xlu1 %v5059_v39, %s4527_s13  ;;  %s397_s13 = scalar_lea.vmem %s5435_s11, %s3552_s29 }
 0xfa5   : > { %2816 = vrot.lane.b32.xlu1 %v2089_v3, %s4528_s14 }
 0xfa9   : > { %2820 = vrot.lane.b32.xlu1 %v5059_v39, %s4528_s14  ;;  %s5451_s14 = smov 8  }
 0xff2   : > { %v2110_v50 = vpop.permute.xlu0 %2109 }
 0xff6   : > { %v2339_v22 = vpop.permute.xlu0 %2338 }
 0xff7   : > { %v4301_v10 = vpop.permute.xlu1 %4300 }
 0xff8   : > { %v4303_v20 = vunpack.i.h.bf16 %v4301_v10  ;;  %v4302_v9 = vunpack.i.l.bf16 %v4301_v10 }
 0xffa   : > { %v4191_v0 = vpack.c.bf16 %v4303_v20, %v4302_v9  ;;  %v2343_v25 = vpop.permute.xlu0 %2342 }
 0xffb   : > { %v4306_v12 = vpop.permute.xlu1 %4305 }
 0xffc   : > { %4193 = vmatpush3.bf16.xpose.msk.msra.mxu1 %vm4696_vm5, %v4191_v0  ;;  %v4308_v8 = vunpack.i.h.bf16 %v4306_v12  ;;  %v4307_v13 = vunpack.i.l.bf16 %v4306_v12 }
 0xffd   : > { %4018 = vmatprep.subr.mxu1 %v4522_v16 }
 0xffe   : > { %v4198_v11 = vpack.c.bf16 %v4308_v8, %v4307_v13  ;;  %v4316_v27 = vpop.permute.xlu0 %4315 }
 0xfff   : > { %v2349_v14 = vpop.permute.xlu1 %2348  ;;  %v4318_v29 = vunpack.i.h.bf16 %v4316_v27  ;;  %v4317_v60 = vunpack.i.l.bf16 %v4316_v27 }
0x1001   : > { %v4212_v19 = vpack.c.bf16 %v4318_v29, %v4317_v60 }
0x1002   : > { %v2580_v31 = vpop.permute.xlu0 %2579 }
0x1003   : > { %v4311_v23 = vpop.permute.xlu1 %4310 }
0x1004   : > { %4019 = vmatpush3.xpose.msk.msra.mxu1 %vm631_vm4, %v2110_v50  ;;  %v4313_v18 = vunpack.i.h.bf16 %v4311_v23  ;;  %v4312_v24 = vunpack.i.l.bf16 %v4311_v23 }
0x1005   : > { %4197 = vmatprep.subr.bf16.mxu1 %v4519_v4 }
0x1006   : > { %v4205_v17 = vpack.c.bf16 %v4313_v18, %v4312_v24  ;;  %v2827_v15 = vpop.permute.xlu0 %2826 }
0x1007   : > { %4021 = vmatmul.mubr.msk.f32.vlgmr.msra.gmra.mrb[32].mxu1 %vm631_vm4, %v2089_v3  ;;  %v2341_v26 = vpop.permute.xlu1 %2340 }
0x1008   : > { %4200 = vmatpush3.bf16.xpose.msk.msra.mxu1 %vm4696_vm5, %v4198_v11  ;;  %4023 = vmatprep.mubr.msk.f32.mxu1 %vm4521_vm3, %v4522_v16 }
0x1009   : > { %4048 = vmatprep.subr.mxu1 %v4522_v16 }
0x100a   : > { %v2819_v33 = vpop.permute.xlu0 %2818 }
0x100b   : > { %4024 = vmatmul.mubr.msk.f32.gmra.mrb[34].mxu1 %vm631_vm4, %v2092_v6  ;;  %v2588_v28 = vpop.permute.xlu1 %2587 }
0x100c   : > { %4026 = vmatprep.mubr.msk.f32.mxu1 %vm4521_vm3, %v4522_v16 }
0x100f   : > { %4027 = vmatmul.mubr.msk.f32.gmra.mrb[36].mxu1 %vm631_vm4, %v5059_v39  ;;  %v2578_v30 = vpop.permute.xlu1 %2577 }
0x1010   : > { %4049 = vmatpush3.xpose.msk.msra.mxu1 %vm631_vm4, %v2349_v14  ;;  %4050 = vmatprep.mubr.msk.f32.mxu1 %vm4521_vm3, %v4522_v16 }
0x1011   : > { %4204 = vmatprep.subr.bf16.mxu1 %v4519_v4 }
0x1013   : > { %4051 = vmatmul.mubr.msk.f32.vlgmr.msra.gmra.mrb[38].mxu1 %vm631_vm4, %v2339_v22  ;;  %v2582_v32 = vpop.permute.xlu1 %2581 }
0x1014   : > { %4207 = vmatpush3.bf16.xpose.msk.msra.mxu1 %vm4696_vm5, %v4205_v17  ;;  %4053 = vmatprep.mubr.msk.f32.mxu1 %vm4521_vm3, %v4522_v16 }
0x1015   : > { %4078 = vmatprep.subr.mxu1 %v4522_v16 }
0x1017   : > { %4054 = vmatmul.mubr.msk.f32.gmra.mrb[40].mxu1 %vm631_vm4, %v2341_v26  ;;  %v2817_v21 = vpop.permute.xlu1 %2816 }
0x1018   : > { %4056 = vmatprep.mubr.msk.f32.mxu1 %vm4521_vm3, %v4522_v16 }
0x101b   : > { %4057 = vmatmul.mubr.msk.f32.gmra.mrb[42].mxu1 %vm631_vm4, %v2343_v25  ;;  %v2821_v35 = vpop.permute.xlu1 %2820 }
0x101c   : > { %4079 = vmatpush3.xpose.msk.msra.mxu1 %vm631_vm4, %v2588_v28  ;;  %4080 = vmatprep.mubr.msk.f32.mxu1 %vm4521_vm3, %v4522_v16 }
0x101d   : > { %4211 = vmatprep.subr.bf16.mxu1 %v4519_v4 }
0x101f   : > { %4081 = vmatmul.mubr.msk.f32.vlgmr.msra.gmra.mrb[44].mxu1 %vm631_vm4, %v2578_v30 }
0x1020   : > { %4214 = vmatpush3.bf16.xpose.msk.msra.mxu1 %vm4696_vm5, %v4212_v19  ;;  %4083 = vmatprep.mubr.msk.f32.mxu1 %vm4521_vm3, %v4522_v16 }
0x1021   : > { %4108 = vmatprep.subr.mxu1 %v4522_v16 }
0x1023   : > { %4084 = vmatmul.mubr.msk.f32.gmra.mrb[46].mxu1 %vm631_vm4, %v2580_v31 }
0x1024   : > { %4086 = vmatprep.mubr.msk.f32.mxu1 %vm4521_vm3, %v4522_v16 }
0x1027   : > { %4087 = vmatmul.mubr.msk.f32.gmra.mrb[48].mxu1 %vm631_vm4, %v2582_v32 }
0x1028   : > { %4109 = vmatpush3.xpose.msk.msra.mxu1 %vm631_vm4, %v2827_v15  ;;  %4110 = vmatprep.mubr.msk.f32.mxu1 %vm4521_vm3, %v4522_v16 }
0x102b   : > { %4111 = vmatmul.mubr.msk.f32.vlgmr.msra.gmra.mrb[50].mxu1 %vm631_vm4, %v2817_v21 }
0x102c   : > { %4113 = vmatprep.mubr.msk.f32.mxu1 %vm4521_vm3, %v4522_v16 }
0x102f   : > { %4114 = vmatmul.mubr.msk.f32.gmra.mrb[52].mxu1 %vm631_vm4, %v2819_v33 }
0x1030   : > { %4116 = vmatprep.mubr.msk.f32.mxu1 %vm4521_vm3, %v4522_v16 }
0x1033   : > { %4117 = vmatmul.mubr.msk.f32.gmra.mrb[54].mxu1 %vm631_vm4, %v2821_v35 }
0x10da   : > { %v2189_v38 = vpop.f32.mrb[32].mxu1 }
0x10db   : > { %v5145_v7 = vmul.f32 0.35355338, %v2189_v38  ;;  %v4022_v40 = vpop.f32.mrb[33].mxu1 }
0x10dd   : > { %v2206_v42 = vsel %vm727_vm6, %v5145_v7, -inf }
0x10de   : > { %2207 = vmax.xlane.f32.xlu0 %v2206_v42  ;;  %v2194_v36 = vpop.f32.mrb[34].mxu1 }
0x10df   : > { %v5149_v43 = vmul.f32 0.35355338, %v2194_v36  ;;  %v4025_v46 = vpop.f32.mrb[35].mxu1 }
0x10e1   : > { %v2209_v51 = vsel %vm727_vm6, %v5149_v43, -inf }
0x10e2   : > { %2210 = vmax.xlane.f32.xlu1 %v2209_v51  ;;  %v2199_v53 = vpop.f32.mrb[36].mxu1 }
0x10e3   : > { %v2205_v55 = vmul.f32 0.35355338, %v2199_v53  ;;  %v4028_v56 = vpop.f32.mrb[37].mxu1 }
0x10e5   : > { %v2212_v52 = vsel %vm734_vm7, %v2205_v55, -inf }
0x10e6   : > { %2213 = vmax.xlane.f32.xlu0 %v2212_v52  ;;  %v2428_v58 = vpop.f32.mrb[38].mxu1 }
0x10e7   : > { %v2442_v61 = vmul.f32 0.35355338, %v2428_v58  ;;  %v4052_v49 = vpop.f32.mrb[39].mxu1 }
0x10e9   : > { %v2445_v54 = vsel %vm727_vm6, %v2442_v61, -inf }
0x10ea   : > { %2446 = vmax.xlane.f32.xlu0 %v2445_v54  ;;  %v2433_v62 = vpop.f32.mrb[40].mxu1 }
0x10eb   : > { %v5155_v63 = vmul.f32 0.35355338, %v2433_v62  ;;  %v4055_v1 = vpop.f32.mrb[41].mxu1 }
0x10ed   : > { %v2448_v37 = vsel %vm727_vm6, %v5155_v63, -inf }
0x10ee   : > { %2449 = vmax.xlane.f32.xlu0 %v2448_v37  ;;  %v2438_v3 = vpop.f32.mrb[42].mxu1 }
0x10ef   : > { %v5159_v6 = vmul.f32 0.35355338, %v2438_v3  ;;  %v4058_v10 = vpop.f32.mrb[43].mxu1 }
0x10f1   : > { %v2451_v20 = vsel %vm734_vm7, %v5159_v6, -inf }
0x10f2   : > { %2452 = vmax.xlane.f32.xlu1 %v2451_v20  ;;  %v2667_v9 = vpop.f32.mrb[44].mxu1 }
0x10f3   : > { %v5163_v0 = vmul.f32 0.35355338, %v2667_v9  ;;  %v4082_v12 = vpop.f32.mrb[45].mxu1 }
0x10f5   : > { %v2684_v8 = vsel %vm727_vm6, %v5163_v0, -inf }
0x10f6   : > { %2685 = vmax.xlane.f32.xlu0 %v2684_v8  ;;  %v2672_v13 = vpop.f32.mrb[46].mxu1 }
0x10f7   : > { %v5167_v50 = vmul.f32 0.35355338, %v2672_v13  ;;  %v4085_v14 = vpop.f32.mrb[47].mxu1 }
0x10f9   : > { %v2687_v11 = vsel %vm727_vm6, %v5167_v50, -inf }
0x10fa   : > { %2688 = vmax.xlane.f32.xlu1 %v2687_v11  ;;  %v2677_v22 = vpop.f32.mrb[48].mxu1 }
0x10fb   : > { %v5171_v23 = vmul.f32 0.35355338, %v2677_v22  ;;  %v4088_v18 = vpop.f32.mrb[49].mxu1 }
0x10fd   : > { %v2690_v24 = vsel %vm734_vm7, %v5171_v23, -inf }
0x10fe   : > { %2691 = vmax.xlane.f32.xlu0 %v2690_v24  ;;  %v2906_v25 = vpop.f32.mrb[50].mxu1 }
0x10ff   : > { %v5175_v17 = vmul.f32 0.35355338, %v2906_v25  ;;  %v4112_v26 = vpop.f32.mrb[51].mxu1 }
0x1101   : > { %v2923_v27 = vsel %vm727_vm6, %v5175_v17, -inf }
0x1102   : > { %2924 = vmax.xlane.f32.xlu1 %v2923_v27  ;;  %v2911_v28 = vpop.f32.mrb[52].mxu1 }
0x1103   : > { %v5179_v29 = vmul.f32 0.35355338, %v2911_v28  ;;  %v4115_v60 = vpop.f32.mrb[53].mxu1 }
0x1105   : > { %v2926_v19 = vsel %vm727_vm6, %v5179_v29, -inf }
0x1106   : > { %2927 = vmax.xlane.f32.xlu0 %v2926_v19  ;;  %v2916_v30 = vpop.f32.mrb[54].mxu1 }
0x1107   : > { %v5183_v31 = vmul.f32 0.35355338, %v2916_v30  ;;  %v4118_v32 = vpop.f32.mrb[55].mxu1 }
0x1109   : > { %v2929_v15 = vsel %vm734_vm7, %v5183_v31, -inf }
0x110a   : > { %2930 = vmax.xlane.f32.xlu1 %v2929_v15 }
0x111b   : > { %4320 = vrot.lane.b32.xlu1 %v5063_v45, %s4523_s28 }
0x111c   : > { %2243 = vrot.lane.b32.xlu0 %v5059_v39, %s4523_s28  ;;  %s5450_s28 = smov 40  }
0x1120   : > { %4325 = vrot.lane.b32.xlu0 %v5063_v45, %s4530_s16 }
0x116b   : > { %v2208_v21 = vpop.xlane.xlu0 %2207 }
0x116c   : > { %v2215_v33 = vsub.f32 %v5145_v7, %v2208_v21 }
0x116e   : > { %v2218_v35 = vmul.f32 1.442695, %v2215_v33 }
0x116f   : > { %v2211_v38 = vpop.xlane.xlu1 %2210 }
0x1170   : > { %4449 = vpow2.f32 %v2218_v35  ;;  %v2216_v40 = vsub.f32 %v5149_v43, %v2211_v38 }
0x1172   : > { %v2220_v42 = vmul.f32 1.442695, %v2216_v40 }
0x1173   : > { %v2214_v36 = vpop.xlane.xlu0 %2213 }
0x1174   : > { %4451 = vpow2.f32 %v2220_v42  ;;  %v2217_v46 = vsub.f32 %v2205_v55, %v2214_v36 }
0x1176   : > { %v2222_v51 = vmul.f32 1.442695, %v2217_v46 }
0x1177   : > { %v2447_v53 = vpop.xlane.xlu0 %2446 }
0x1178   : > { %4453 = vpow2.f32 %v2222_v51  ;;  %v2454_v56 = vsub.f32 %v2442_v61, %v2447_v53 }
0x117a   : > { %v5195_v52 = vpop.eup %4449  ;;  %v2457_v58 = vmul.f32 1.442695, %v2454_v56 }
0x117b   : > { %v2450_v49 = vpop.xlane.xlu0 %2449  ;;  %v2224_v7 = vsel %vm727_vm6, %v5195_v52, 0.0 }
0x117c   : > { %4455 = vpow2.f32 %v2457_v58  ;;  %v2455_v54 = vsub.f32 %v5155_v63, %v2450_v49  ;;  %2225 = vadd.xlane.f32.xlu0 %v2224_v7 }
0x117e   : > { %v5200_v43 = vpop.eup %4451  ;;  %v2459_v62 = vmul.f32 1.442695, %v2455_v54 }
0x117f   : > { %v2453_v1 = vpop.xlane.xlu1 %2452  ;;  %v2227_v55 = vsel %vm727_vm6, %v5200_v43, 0.0 }
0x1180   : > { %4457 = vpow2.f32 %v2459_v62  ;;  %v2456_v61 = vsub.f32 %v5159_v6, %v2453_v1  ;;  %2228 = vadd.xlane.f32.xlu1 %v2227_v55 }
0x1182   : > { %v5205_v37 = vpop.eup %4453  ;;  %v2461_v3 = vmul.f32 1.442695, %v2456_v61 }
0x1183   : > { %v2686_v10 = vpop.xlane.xlu0 %2685  ;;  %v2230_v20 = vsel %vm734_vm7, %v5205_v37, 0.0 }
0x1184   : > { %4459 = vpow2.f32 %v2461_v3  ;;  %v2693_v63 = vsub.f32 %v5163_v0, %v2686_v10  ;;  %2231 = vadd.xlane.f32.xlu0 %v2230_v20 }
0x1186   : > { %v5210_v9 = vpop.eup %4455  ;;  %v2696_v12 = vmul.f32 1.442695, %v2693_v63 }
0x1187   : > { %v2689_v8 = vpop.xlane.xlu1 %2688  ;;  %v2463_v13 = vsel %vm727_vm6, %v5210_v9, 0.0 }
0x1188   : > { %4461 = vpow2.f32 %v2696_v12  ;;  %v2694_v6 = vsub.f32 %v5167_v50, %v2689_v8  ;;  %2464 = vadd.xlane.f32.xlu1 %v2463_v13 }
0x118a   : > { %v5215_v14 = vpop.eup %4457  ;;  %v2698_v11 = vmul.f32 1.442695, %v2694_v6 }
0x118b   : > { %v2692_v22 = vpop.xlane.xlu0 %2691  ;;  %v2466_v18 = vsel %vm727_vm6, %v5215_v14, 0.0 }
0x118c   : > { %4463 = vpow2.f32 %v2698_v11  ;;  %v2695_v0 = vsub.f32 %v5171_v23, %v2692_v22  ;;  %2467 = vadd.xlane.f32.xlu0 %v2466_v18 }
0x118e   : > { %v5220_v24 = vpop.eup %4459  ;;  %v2700_v25 = vmul.f32 1.442695, %v2695_v0 }
0x118f   : > { %v2925_v26 = vpop.xlane.xlu1 %2924  ;;  %v2469_v27 = vsel %vm734_vm7, %v5220_v24, 0.0 }
0x1190   : > { %4465 = vpow2.f32 %v2700_v25  ;;  %v2932_v50 = vsub.f32 %v5175_v17, %v2925_v26  ;;  %2470 = vadd.xlane.f32.xlu0 %v2469_v27 }
0x1192   : > { %v5225_v28 = vpop.eup %4461  ;;  %v2935_v60 = vmul.f32 1.442695, %v2932_v50 }
0x1193   : > { %v2702_v19 = vsel %vm727_vm6, %v5225_v28, 0.0  ;;  %v2928_v40 = vpop.xlane.xlu0 %2927 }
0x1194   : > { %4467 = vpow2.f32 %v2935_v60  ;;  %2703 = vadd.xlane.f32.xlu0 %v2702_v19  ;;  %v2933_v51 = vsub.f32 %v5179_v29, %v2928_v40 }
0x1196   : > { %v5229_v23 = vpop.eup %4463  ;;  %v2937_v53 = vmul.f32 1.442695, %v2933_v51 }
0x1197   : > { %v2931_v30 = vpop.xlane.xlu1 %2930  ;;  %v2705_v32 = vsel %vm727_vm6, %v5229_v23, 0.0  ;;  %v2244_v46 = vpop.permute.xlu0 %2243 }
0x1198   : > { %2706 = vadd.xlane.f32.xlu1 %v2705_v32  ;;  %v2934_v56 = vsub.f32 %v5183_v31, %v2931_v30  ;;  %4469 = vpow2.f32 %v2937_v53 }
0x119a   : > { %v5233_v15 = vpop.eup %4465  ;;  %v2939_v58 = vmul.f32 1.442695, %v2934_v56 }
0x119b   : > { %v4321_v21 = vpop.permute.xlu1 %4320  ;;  %v2708_v17 = vsel %vm734_vm7, %v5233_v15, 0.0  ;;  %v4326_v29 = vpop.permute.xlu0 %4325 }
0x119c   : > { %v4323_v33 = vunpack.i.h.bf16 %v4321_v21  ;;  %2709 = vadd.xlane.f32.xlu0 %v2708_v17  ;;  %v4322_v35 = vunpack.i.l.bf16 %v4321_v21  ;;  %4471 = vpow2.f32 %v2939_v58  ;;  %v4328_v61 = vunpack.i.h.bf16 %v4326_v29 }
0x119d   : > { %v4327_v3 = vunpack.i.l.bf16 %v4326_v29 }
0x119e   : > { %v5237_v38 = vpop.eup %4467  ;;  %v4195_v42 = vpack.c.bf16 %v4323_v33, %v4322_v35 }
0x119f   : > { %v2941_v36 = vsel %vm727_vm6, %v5237_v38, 0.0  ;;  %v4202_v63 = vpack.c.bf16 %v4328_v61, %v4327_v3 }
0x11a0   : > { %2942 = vadd.xlane.f32.xlu1 %v2941_v36  ;;  %4196 = vmatpush3.bf16.msra.mxu0 %v4195_v42 }
0x11a1   : > { %4033 = vmatprep.subr.mxu0 %v4522_v16 }
0x11a2   : > { %v5250_v49 = vpop.eup %4469 }
0x11a3   : > { %v2944_v7 = vsel %vm727_vm6, %v5250_v49, 0.0 }
0x11a4   : > { %4034 = vmatpush3.msk.msra.mxu0 %vm779_vm8, %v2244_v46 }
0x11a5   : > { %4201 = vmatprep.subr.bf16.mxu0 %v4519_v4 }
0x11a6   : > { %v5254_v54 = vpop.eup %4471 }
0x11a7   : > { %v2947_v62 = vsel %vm734_vm7, %v5254_v54, 0.0 }
0x11b1   : > { %2482 = vrot.lane.b32.xlu1 %v5059_v39, %s4530_s16 }
0x11b2   : > { %4330 = vrot.lane.b32.xlu0 %v5063_v45, %s5449_s27 }
0x11d1   : > { %2945 = vadd.xlane.f32.xlu0 %v2944_v7 }
0x11d5   : > { %2948 = vadd.xlane.f32.xlu1 %v2947_v62 }
0x11e7   : > { %2721 = vrot.lane.b32.xlu0 %v5059_v39, %s5449_s27 }
0x11eb   : > { %4335 = vrot.lane.b32.xlu0 %v5063_v45, %s5450_s28 }
0x11ef   : > { %2960 = vrot.lane.b32.xlu0 %v5059_v39, %s5450_s28 }
0x1209   : > { %v2226_v31 = vpop.xlane.xlu0 %2225 }
0x120a   : > { %4473 = vrcp.f32 %v2226_v31 }
0x120d   : > { %v2229_v1 = vpop.xlane.xlu1 %2228 }
0x120e   : > { %4475 = vrcp.f32 %v2229_v1 }
0x1211   : > { %v2232_v55 = vpop.xlane.xlu0 %2231 }
0x1212   : > { %4477 = vrcp.f32 %v2232_v55 }
0x1214   : > { %v4474_v10 = vpop.eup %4473 }
0x1215   : > { %v2234_v20 = vmul.f32 %v4474_v10, %v5195_v52  ;;  %v2465_v6 = vpop.xlane.xlu1 %2464 }
0x1216   : > { %4479 = vrcp.f32 %v2465_v6 }
0x1217   : > { %4036 = vmatmul.mubr.msk.f32.vlgmr.msra.gmra.mrb[40].mxu0 %vm727_vm6, %v2234_v20 }
0x1218   : > { %v4476_v12 = vpop.eup %4475  ;;  %4203 = vmatpush3.bf16.msra.mxu0 %v4202_v63  ;;  %4038 = vmatprep.mubr.msk.f32.mxu0 %vm4521_vm3, %v4522_v16 }
0x1219   : > { %v2468_v39 = vpop.xlane.xlu0 %2467  ;;  %v2236_v45 = vmul.f32 %v4476_v12, %v5200_v43  ;;  %4063 = vmatprep.subr.mxu0 %v4522_v16 }
0x121b   : > { %4039 = vmatmul.mubr.msk.f32.gmra.mrb[42].mxu0 %vm727_vm6, %v2236_v45 }
0x121c   : > { %v4478_v8 = vpop.eup %4477  ;;  %4041 = vmatprep.mubr.msk.f32.mxu0 %vm4521_vm3, %v4522_v16 }
0x121d   : > { %v2238_v52 = vmul.f32 %v4478_v8, %v5205_v37  ;;  %v2471_v13 = vpop.xlane.xlu0 %2470 }
0x121f   : > { %4042 = vmatmul.mubr.msk.f32.gmra.mrb[44].mxu0 %vm727_vm6, %v2238_v52 }
0x1220   : > { %4065 = vmatprep.mubr.msk.f32.mxu0 %vm4521_vm3, %v4522_v16  ;;  %v4480_v25 = vpop.eup %4479 }
0x1221   : > { %v2704_v11 = vpop.xlane.xlu0 %2703  ;;  %v2473_v50 = vmul.f32 %v4480_v25, %v5210_v9 }
0x1222   : > { %4481 = vrcp.f32 %v2704_v11 }
0x1223   : > { %4483 = vrcp.f32 %v2468_v39  ;;  %v3443_v17 = vrot.slane %v2473_v50, 7 }
0x1224   : > { %4485 = vrcp.f32 %v2471_v13 }
0x1225   : > { %v2707_v43 = vpop.xlane.xlu1 %2706 }
0x1229   : > { %v2710_v22 = vpop.xlane.xlu0 %2709 }
0x122c   : > { %v4482_v37 = vpop.eup %4481 }
0x122d   : > { %v4331_v18 = vpop.permute.xlu0 %4330  ;;  %v2943_v0 = vpop.xlane.xlu1 %2942  ;;  %v2712_v32 = vmul.f32 %v4482_v37, %v5225_v28  ;;  %v4370_v37 = vld [vmem:[%s5429_s5 + $0x18] sm:$0xff]  }
0x122e   : > { %v4333_v26 = vunpack.i.h.bf16 %v4331_v18  ;;  %v4332_v27 = vunpack.i.l.bf16 %v4331_v18  ;;  %4487 = vrcp.f32 %v2943_v0  ;;  %v4484_v19 = vpop.eup %4483 }
0x122f   : > { %v2475_v21 = vmul.f32 %v4484_v19, %v5215_v14  ;;  %v4486_v9 = vpop.eup %4485  ;;  %v3445_v35 = vrot.slane %v2712_v32, 6  ;;  %v3449_v14 = vsel %vm779_vm8, %v2234_v20, %v3443_v17  ;;  %4489 = vrcp.f32 %v2707_v43 }
0x1230   : > { %v4209_v30 = vpack.c.bf16 %v4333_v26, %v4332_v27  ;;  %v2477_v40 = vmul.f32 %v4486_v9, %v5220_v24  ;;  %4491 = vrcp.f32 %v2710_v22 }
0x1231   : > { %v2483_v60 = vpop.permute.xlu1 %2482  ;;  %v3451_v36 = vsel %vm3450_vm12, %v3449_v14, %v3445_v35 }
0x1232   : > { %4064 = vmatpush3.msk.msra.mxu0 %vm779_vm8, %v2483_v60 }
0x1233   : > { %4066 = vmatmul.mubr.msk.f32.vlgmr.msra.gmra.mrb[46].mxu0 %vm727_vm6, %v2473_v50  ;;  %4208 = vmatprep.subr.bf16.mxu0 %v4519_v4 }
0x1234   : > { %4210 = vmatpush3.bf16.msra.mxu0 %v4209_v30  ;;  %4068 = vmatprep.mubr.msk.f32.mxu0 %vm4521_vm3, %v4522_v16 }
0x1235   : > { %4093 = vmatprep.subr.mxu0 %v4522_v16 }
0x1237   : > { %4069 = vmatmul.mubr.msk.f32.gmra.mrb[48].mxu0 %vm727_vm6, %v2475_v21 }
0x1238   : > { %v4488_v33 = vpop.eup %4487  ;;  %4071 = vmatprep.mubr.msk.f32.mxu0 %vm4521_vm3, %v4522_v16 }
0x1239   : > { %v2951_v28 = vmul.f32 %v4488_v33, %v5237_v38  ;;  %v4490_v53 = vpop.eup %4489 }
0x123a   : > { %v2714_v7 = vmul.f32 %v4490_v53, %v5229_v23  ;;  %v4492_v62 = vpop.eup %4491 }
0x123b   : > { %v3447_v42 = vrot.slane %v2951_v28, 5  ;;  %4072 = vmatmul.mubr.msk.f32.gmra.mrb[50].mxu0 %vm727_vm6, %v2477_v40 }
0x123c   : > { %4095 = vmatprep.mubr.msk.f32.mxu0 %vm4521_vm3, %v4522_v16 }
0x123d   : > { %v3453_v46 = vsel %vm3452_vm13, %v3451_v36, %v3447_v42 }
0x123e   : > { %v3457_v51 = vsel %vm727_vm6, %v3453_v46, 0.0 }
0x123f   : > { %3458 = vst [vmem:[%s397_s13] sm:$0xf] %v3457_v51 }
0x125e   : > { %v2946_v24 = vpop.xlane.xlu0 %2945 }
0x125f   : > { %4493 = vrcp.f32 %v2946_v24 }
0x1262   : > { %v2722_v38 = vpop.permute.xlu0 %2721  ;;  %v2949_v56 = vpop.xlane.xlu1 %2948 }
0x1263   : > { %4094 = vmatpush3.msk.msra.mxu0 %vm779_vm8, %v2722_v38  ;;  %4495 = vrcp.f32 %v2949_v56 }
0x1264   : > { %4096 = vmatmul.mubr.msk.f32.vlgmr.msra.gmra.mrb[52].mxu0 %vm727_vm6, %v2712_v32  ;;  %4215 = vmatprep.subr.bf16.mxu0 %v4519_v4  ;;  %v2716_v4 = vmul.f32 %v4492_v62, %v5233_v15 }
0x1265   : > { %4098 = vmatprep.mubr.msk.f32.mxu0 %vm4521_vm3, %v4522_v16 }
0x1266   : > { %v4336_v58 = vpop.permute.xlu0 %4335 }
0x1267   : > { %v4338_v29 = vunpack.i.h.bf16 %v4336_v58  ;;  %v4337_v31 = vunpack.i.l.bf16 %v4336_v58 }
0x1268   : > { %4099 = vmatmul.mubr.msk.f32.gmra.mrb[54].mxu0 %vm727_vm6, %v2714_v7 }
0x1269   : > { %v4216_v1 = vpack.c.bf16 %v4338_v29, %v4337_v31  ;;  %4101 = vmatprep.mubr.msk.f32.mxu0 %vm4521_vm3, %v4522_v16  ;;  %v4494_v55 = vpop.eup %4493 }
0x126a   : > { %v2961_v23 = vpop.permute.xlu0 %2960  ;;  %v2953_v61 = vmul.f32 %v4494_v55, %v5250_v49 }
0x126b   : > { %4217 = vmatpush3.bf16.msra.mxu0 %v4216_v1 }
0x126c   : > { %4102 = vmatmul.mubr.msk.f32.gmra.mrb[56].mxu0 %vm727_vm6, %v2716_v4  ;;  %4123 = vmatprep.subr.mxu0 %v4522_v16 }
0x126d   : > { %4125 = vmatprep.mubr.msk.f32.mxu0 %vm4521_vm3, %v4522_v16  ;;  %v4496_v15 = vpop.eup %4495 }
0x126e   : > { %v2955_v3 = vmul.f32 %v4496_v15, %v5254_v54  ;;  %v4369_v54 = vld [vmem:[%s5429_s5 + $0x10] sm:$0xff]   ;;  %v3179_v15 = vrot.slane %v5044_v34, %v1703_v41 }
0x126f   : > { %4124 = vmatpush3.msk.msra.mxu0 %vm779_vm8, %v2961_v23  ;;  %4134 = vmatprep.subr.bf16.mxu1 %v4369_v54 }
0x1270   : > { %4126 = vmatmul.mubr.msk.f32.vlgmr.msra.gmra.mrb[58].mxu0 %vm727_vm6, %v2951_v28  ;;  %4135 = vmatpush3.bf16.msra.mxu1 %v4369_v54 }
0x1271   : > { %4128 = vmatprep.mubr.msk.f32.mxu0 %vm4521_vm3, %v4522_v16  ;;  %4136 = vmatprep.subr.bf16.mxu1 %v4370_v37 }
0x1274   : > { %4129 = vmatmul.mubr.msk.f32.gmra.mrb[60].mxu0 %vm727_vm6, %v2953_v61  ;;  %4137 = vmatpush3.bf16.msra.mxu1 %v4370_v37 }
0x1275   : > { %4131 = vmatprep.mubr.msk.f32.mxu0 %vm4521_vm3, %v4522_v16 }
0x1278   : > { %4132 = vmatmul.mubr.msk.f32.gmra.mrb[62].mxu0 %vm727_vm6, %v2955_v3 }
0x12ea   : > { %v2324_v10 = vpop.f32.mrb[40].mxu0 }
0x12eb   : > { %v4037_v20 = vpop.f32.mrb[41].mxu0 }
0x12ee   : > { %v2329_v63 = vpop.f32.mrb[42].mxu0 }
0x12ef   : > { %v4040_v12 = vpop.f32.mrb[43].mxu0 }
0x12f2   : > { %v2334_v39 = vpop.f32.mrb[44].mxu0 }
0x12f3   : > { %v4043_v45 = vpop.f32.mrb[45].mxu0 }
0x1306   : > { %v2563_v8 = vpop.f32.mrb[46].mxu0 }
0x1307   : > { %v4067_v52 = vpop.f32.mrb[47].mxu0 }
0x130a   : > { %v2568_v13 = vpop.f32.mrb[48].mxu0 }
0x130b   : > { %v4339_v49 = vpack.i.bf16 %v2568_v13, %v2563_v8  ;;  %v4070_v6 = vpop.f32.mrb[49].mxu0 }
0x130d   : > { %4340 = vrot.lane.b32.xlu0 %v4339_v49, %s5451_s14 }
0x130e   : > { %v2573_v11 = vpop.f32.mrb[50].mxu0 }
0x130f   : > { %3062 = vrot.lane.b32.xlu1 %v2573_v11, %s5451_s14  ;;  %v4073_v16 = vpop.f32.mrb[51].mxu0 }
0x1337   : > { %v2802_v43 = vpop.f32.mrb[52].mxu0 }
0x1338   : > { %v4097_v22 = vpop.f32.mrb[53].mxu0 }
0x133b   : > { %v2807_v18 = vpop.f32.mrb[54].mxu0 }
0x133c   : > { %v4344_v0 = vpack.i.bf16 %v2807_v18, %v2802_v43  ;;  %v4100_v25 = vpop.f32.mrb[55].mxu0 }
0x133e   : > { %4345 = vrot.lane.b32.xlu0 %v4344_v0, %s5452_s19 }
0x133f   : > { %v2812_v26 = vpop.f32.mrb[56].mxu0 }
0x1340   : > { %v4103_v27 = vpop.f32.mrb[57].mxu0 }
0x1342   : > { %3074 = vrot.lane.b32.xlu0 %v2812_v26, %s5452_s19 }
0x1343   : > { %v3041_v50 = vpop.f32.mrb[58].mxu0 }
0x1344   : > { %v4127_v60 = vpop.f32.mrb[59].mxu0 }
0x1345   : > { %v4372_v60 = vld [vmem:[%s5431_s7 + $0x18] sm:$0xff]  }
0x1347   : > { %v3046_v19 = vpop.f32.mrb[60].mxu0 }
0x1348   : > { %v4349_v30 = vpack.i.bf16 %v3046_v19, %v3041_v50  ;;  %v4130_v32 = vpop.f32.mrb[61].mxu0  ;;  %v4371_v50 = vld [vmem:[%s5431_s7 + $0x10] sm:$0xff]  }
0x1349   : > { %4142 = vmatprep.subr.bf16.mxu0 %v4371_v50 }
0x134a   : > { %4350 = vrot.lane.b32.xlu0 %v4349_v30, %s5453_s24  ;;  %4143 = vmatpush3.bf16.msra.mxu0 %v4371_v50 }
0x134b   : > { %v3051_v21 = vpop.f32.mrb[62].mxu0  ;;  %4144 = vmatprep.subr.bf16.mxu0 %v4372_v60 }
0x134c   : > { %v4133_v9 = vpop.f32.mrb[63].mxu0 }
0x134e   : > { %3086 = vrot.lane.b32.xlu0 %v3051_v21, %s5453_s24  ;;  %4145 = vmatpush3.bf16.msra.mxu0 %v4372_v60  ;;  %s5454_s24 = smul.u32 24, %s5456_s18 }
0x1350   : > { %s393_s23 = scalar_lea.vmem %s5434_s10, %s5454_s24 }
0x137f   : > { %v4341_v17 = vpop.permute.xlu0 %4340 }
0x1380   : > { %v4343_v28 = vunpack.i.h.bf16 %v4341_v17  ;;  %v4342_v40 = vunpack.i.l.bf16 %v4341_v17 }
0x1381   : > { %v3063_v36 = vpop.permute.xlu1 %3062 }
0x1382   : > { %v3092_v51 = vsel %vm631_vm4, %v2329_v63, %v4343_v28  ;;  %v3091_v24 = vsel %vm631_vm4, %v2324_v10, %v4342_v40  ;;  %v3093_v7 = vsel %vm631_vm4, %v2334_v39, %v3063_v36  ;;  %v3225_v40 = vrot.slane %v5044_v34, %v1749_v44 }
0x13b0   : > { %v4346_v33 = vpop.permute.xlu0 %4345 }
0x13b1   : > { %v4348_v14 = vunpack.i.h.bf16 %v4346_v33  ;;  %v4347_v42 = vunpack.i.l.bf16 %v4346_v33 }
0x13b3   : > { %v3095_v56 = vsel %vm1618_vm9, %v3092_v51, %v4348_v14  ;;  %v3094_v58 = vsel %vm1618_vm9, %v3091_v24, %v4347_v42  ;;  %v5383_v24 = vld [vmem:[%s5430_s6 + $0x8] sm:$0x3f] }
0x13b4   : > { %v3075_v35 = vpop.permute.xlu0 %3074 }
0x13b5   : > { %v3096_v31 = vsel %vm1618_vm9, %v3093_v7, %v3075_v35 }
0x13bc   : > { %v4351_v46 = vpop.permute.xlu0 %4350 }
0x13bd   : > { %v4353_v38 = vunpack.i.h.bf16 %v4351_v46  ;;  %v4352_v53 = vunpack.i.l.bf16 %v4351_v46 }
0x13bf   : > { %v3098_v62 = vsel %vm1622_vm10, %v3095_v56, %v4353_v38  ;;  %v3097_v29 = vsel %vm1622_vm10, %v3094_v58, %v4352_v53  ;;  %v3232_v38 = vrot.slane %v5383_v24, %v1756_v47  ;;  %v4374_v47 = vld [vmem:[%s5433_s9 + $0x28] sm:$0xff]  }
0x13c0   : > { %v3105_v1 = vpack.c.bf16 %v3098_v62, %v3097_v29  ;;  %v3087_v4 = vpop.permute.xlu0 %3086 }
0x13c1   : > { %v3099_v23 = vsel %vm1622_vm10, %v3096_v31, %v3087_v4  ;;  %v4375_v4 = vld [vmem:[%s5433_s9 + $0x30] sm:$0xff]  }
0x13c2   : > { %v3106_v55 = vpack.c.bf16 %v3099_v23, %v3099_v23  ;;  %4138 = vmatprep.mubr.msk.bf16.mxu1 %vm487_vm2, %v3105_v1  ;;  %v4373_v1 = vld [vmem:[%s5433_s9 + $0x20] sm:$0xff]   ;;  %v4376_v23 = vld [vmem:[%s5433_s9 + $0x38] sm:$0xff]  }
0x13c3   : > { %4150 = vmatprep.subr.bf16.mxu1 %v4373_v1 }
0x13c4   : > { %4139 = vmatmul.mubr.msk.bf16.vlgmr.msra.gmra.mrb[56].mxu1 %vm487_vm2, %v3106_v55  ;;  %v3682_v55 = vld [vmem:[%s5432_s8 + $0x1] ss:$0 sm:$0xff] }
0x13c5   : > { %4151 = vmatpush3.bf16.msra.mxu1 %v4373_v1 }
0x13c6   : > { %4152 = vmatprep.subr.bf16.mxu1 %v4374_v47 }
0x13c9   : > { %4153 = vmatpush3.bf16.msra.mxu1 %v4374_v47 }
0x13ca   : > { %4154 = vmatprep.subr.bf16.mxu1 %v4375_v4 }
0x13cd   : > { %4155 = vmatpush3.bf16.msra.mxu1 %v4375_v4 }
0x13ce   : > { %4156 = vmatprep.subr.bf16.mxu1 %v4376_v23 }
0x13d1   : > { %4157 = vmatpush3.bf16.msra.mxu1 %v4376_v23 }
0x1497   : > { %v4140_v61 = vpop.f32.mrb[56].mxu1 }
0x1498   : > { %v3159_v3 = vpop.f32.mrb[57].mxu1  ;;  %v3175_v10 = vadd.f32 %v4140_v61, %v5018_v59 }
0x1499   : > { %v3173_v20 = vadd.f32 %v3159_v3, %v5015_v2  ;;  %v4141_v63 = vpop.f32.mrb[58].mxu1 }
0x149a   : > { %v3162_v12 = vpop.f32.mrb[59].mxu1  ;;  %v5355_v8 = vadd.f32 %v3179_v15, %v3175_v10 }
0x149b   : > { %v5352_v39 = vadd.f32 %v3179_v15, %v3173_v20  ;;  %v3174_v45 = vadd.f32 %v3162_v12, %v5020_v5 }
0x149c   : > { %v3189_v2 = vsel %vm494_vm1, %v5355_v8, 0.0 }
0x149d   : > { %v5357_v52 = vadd.f32 %v3179_v15, %v3174_v45  ;;  %v3183_v13 = vsel %vm487_vm2, %v5352_v39, 0.0 }
0x149e   : > { %3184 = vadd.xlane.f32.xlu0 %v3183_v13 }
0x149f   : > { %v3186_v41 = vsel %vm487_vm2, %v5357_v52, 0.0 }
0x14a0   : > { %3187 = vadd.xlane.f32.xlu1 %v3186_v41 }
0x14a2   : > { %3190 = vadd.xlane.f32.xlu0 %v3189_v2 }
0x152b   : > { %v3185_v59 = vpop.xlane.xlu0 %3184 }
0x152c   : > { %v3192_v49 = vmul.f32 0.03125, %v3185_v59 }
0x152d   : > { %v3188_v6 = vpop.xlane.xlu1 %3187 }
0x152e   : > { %v3195_v5 = vsub.f32 %v5352_v39, %v3192_v49  ;;  %v3193_v11 = vmul.f32 0.03125, %v3188_v6 }
0x152f   : > { %v3191_v16 = vpop.xlane.xlu0 %3190 }
0x1530   : > { %v3196_v54 = vsub.f32 %v5357_v52, %v3193_v11  ;;  %v3194_v43 = vmul.f32 0.03125, %v3191_v16  ;;  %v3198_v22 = vmul.f32 %v3195_v5, %v3195_v5 }
0x1532   : > { %v3197_v18 = vsub.f32 %v5355_v8, %v3194_v43  ;;  %v3201_v0 = vsel %vm487_vm2, %v3198_v22, 0.0  ;;  %v3199_v25 = vmul.f32 %v3196_v54, %v3196_v54 }
0x1533   : > { %3202 = vadd.xlane.f32.xlu0 %v3201_v0 }
0x1534   : > { %v3204_v26 = vsel %vm487_vm2, %v3199_v25, 0.0  ;;  %v3200_v27 = vmul.f32 %v3197_v18, %v3197_v18 }
0x1535   : > { %3205 = vadd.xlane.f32.xlu1 %v3204_v26 }
0x1536   : > { %v3207_v37 = vsel %vm494_vm1, %v3200_v27, 0.0 }
0x1537   : > { %3208 = vadd.xlane.f32.xlu0 %v3207_v37 }
0x15c0   : > { %v3203_v19 = vpop.xlane.xlu0 %3202 }
0x15c1   : > { %v3210_v30 = vmul.f32 0.03125, %v3203_v19 }
0x15c2   : > { %v3206_v32 = vpop.xlane.xlu1 %3205 }
0x15c3   : > { %v3213_v21 = vadd.f32 1e-06, %v3210_v30  ;;  %v3211_v9 = vmul.f32 0.03125, %v3206_v32 }
0x15c4   : > { %v3209_v17 = vpop.xlane.xlu0 %3208 }
0x15c5   : > { %4497 = vrsqrt.f32 %v3213_v21  ;;  %v3214_v33 = vadd.f32 1e-06, %v3211_v9  ;;  %v3212_v35 = vmul.f32 0.03125, %v3209_v17 }
0x15c7   : > { %4499 = vrsqrt.f32 %v3214_v33  ;;  %v3215_v28 = vadd.f32 1e-06, %v3212_v35 }
0x15c9   : > { %4501 = vrsqrt.f32 %v3215_v28  ;;  %v3439_v28 = vrot.slane %v5383_v24, %v1961_v57 }
0x15cf   : > { %v4498_v14 = vpop.eup %4497 }
0x15d0   : > { %v3219_v42 = vmul.f32 %v4498_v14, %v3195_v5 }
0x15d1   : > { %v4500_v36 = vpop.eup %4499 }
0x15d2   : > { %v3220_v46 = vmul.f32 %v4500_v36, %v3196_v54  ;;  %v3226_v51 = vmul.f32 %v3225_v40, %v3219_v42 }
0x15d3   : > { %v4502_v53 = vpop.eup %4501 }
0x15d4   : > { %v3221_v56 = vmul.f32 %v4502_v53, %v3197_v18  ;;  %v3227_v58 = vmul.f32 %v3225_v40, %v3220_v46  ;;  %v3233_v62 = vadd.f32 %v3232_v38, %v3226_v51 }
0x15d6   : > { %v3228_v7 = vmul.f32 %v3225_v40, %v3221_v56  ;;  %v3234_v44 = vadd.f32 %v3232_v38, %v3227_v58 }
0x15d8   : > { %v3241_v34 = vpack.c.bf16 %v3234_v44, %v3233_v62  ;;  %v3235_v29 = vadd.f32 %v3232_v38, %v3228_v7 }
0x15da   : > { %4146 = vmatprep.mubr.msk.bf16.mxu0 %vm487_vm2, %v3241_v34  ;;  %v3242_v31 = vpack.c.bf16 %v3235_v29, %v3235_v29 }
0x15dc   : > { %4147 = vmatmul.mubr.msk.bf16.vlgmr.msra.gmra.mrb[64].mxu0 %vm487_vm2, %v3242_v31 }
0x16af   : > { %v4148_v61 = vpop.f32.mrb[64].mxu0 }
0x16b0   : > { %v3312_v15 = vadd.f32 %v4148_v61, %v3682_v55  ;;  %v3303_v3 = vpop.f32.mrb[65].mxu0 }
0x16b1   : > { %v3304_v10 = vadd.f32 %v3682_v55, %v3303_v3  ;;  %v4149_v20 = vpop.f32.mrb[66].mxu0 }
0x16b2   : > { %v3322_v63 = vmul.f32 0.044715, %v3312_v15  ;;  %v3306_v12 = vpop.f32.mrb[67].mxu0  ;;  %v3319_v60 = vmul.f32 0.5, %v3312_v15 }
0x16b3   : > { %v3320_v45 = vmul.f32 0.044715, %v3304_v10  ;;  %v3307_v13 = vadd.f32 %v3682_v55, %v3306_v12  ;;  %v3317_v19 = vmul.f32 0.5, %v3304_v10 }
0x16b4   : > { %v3325_v41 = vmul.f32 %v3322_v63, %v3312_v15 }
0x16b5   : > { %v3323_v2 = vmul.f32 %v3320_v45, %v3304_v10  ;;  %v3321_v59 = vmul.f32 0.044715, %v3307_v13  ;;  %v3318_v30 = vmul.f32 0.5, %v3307_v13 }
0x16b6   : > { %v3328_v49 = vmul.f32 %v3325_v41, %v3312_v15 }
0x16b7   : > { %v3326_v6 = vmul.f32 %v3323_v2, %v3304_v10  ;;  %v3324_v5 = vmul.f32 %v3321_v59, %v3307_v13 }
0x16b8   : > { %v3331_v11 = vadd.f32 %v3328_v49, %v3312_v15 }
0x16b9   : > { %v3329_v16 = vadd.f32 %v3326_v6, %v3304_v10  ;;  %v3327_v54 = vmul.f32 %v3324_v5, %v3307_v13 }
0x16ba   : > { %v3334_v43 = vmul.f32 0.7978846, %v3331_v11 }
0x16bb   : > { %v3332_v22 = vmul.f32 0.7978846, %v3329_v16  ;;  %v3330_v18 = vadd.f32 %v3327_v54, %v3307_v13 }
0x16bc   : > { %4503 = vtanh.f32 %v3334_v43 }
0x16bd   : > { %4505 = vtanh.f32 %v3332_v22  ;;  %v3333_v0 = vmul.f32 0.7978846, %v3330_v18 }
0x16bf   : > { %4507 = vtanh.f32 %v3333_v0 }
0x16c6   : > { %v4504_v25 = vpop.eup %4503 }
0x16c7   : > { %v4506_v26 = vpop.eup %4505  ;;  %v3340_v27 = vadd.f32 1.0, %v4504_v25 }
0x16c8   : > { %v3338_v37 = vadd.f32 1.0, %v4506_v26 }
0x16c9   : > { %v4508_v50 = vpop.eup %4507  ;;  %v3343_v21 = vmul.f32 %v3340_v27, %v3319_v60 }
0x16ca   : > { %v3339_v32 = vadd.f32 1.0, %v4508_v50  ;;  %v3341_v9 = vmul.f32 %v3338_v37, %v3317_v19 }
0x16cb   : > { %v3354_v35 = vpack.c.bf16 %v3343_v21, %v3343_v21 }
0x16cc   : > { %v3342_v17 = vmul.f32 %v3339_v32, %v3318_v30 }
0x16ce   : > { %v3353_v33 = vpack.c.bf16 %v3342_v17, %v3341_v9 }
0x16d0   : > { %4158 = vmatprep.mubr.msk.bf16.mxu1 %vm1901_vm11, %v3353_v33 }
0x16d1   : > { %4159 = vmatmul.mubr.msk.bf16.vlgmr.msra.gmra.mrb[60].mxu1 %vm1901_vm11, %v3354_v35 }
0x17a4   : > { %v4160_v40 = vpop.f32.mrb[60].mxu1 }
0x17a5   : > { %v3435_v14 = vadd.f32 %v4160_v40, %v5355_v8  ;;  %v3419_v42 = vpop.f32.mrb[61].mxu1 }
0x17a6   : > { %v3433_v36 = vadd.f32 %v3419_v42, %v5352_v39  ;;  %v4161_v46 = vpop.f32.mrb[62].mxu1 }
0x17a7   : > { %v3442_v51 = vadd.f32 %v3439_v28, %v3435_v14  ;;  %v3422_v38 = vpop.f32.mrb[63].mxu1 }
0x17a8   : > { %v3440_v53 = vadd.f32 %v3439_v28, %v3433_v36  ;;  %v3434_v56 = vadd.f32 %v3422_v38, %v5357_v52 }
0x17a9   : > { %3456 = vst.msk [vmem:[%s393_s23 + $0x10] sm:$0x1] %vm494_vm1, %v3442_v51 }
0x17aa   : > { %3454 = vst.msk [vmem:[%s393_s23] sm:$0xff] %vm487_vm2, %v3440_v53  ;;  %v3441_v48 = vadd.f32 %v3439_v28, %v3434_v56 }
0x17ac   : > { %3455 = vst.msk [vmem:[%s393_s23 + $0x8] sm:$0xff] %vm487_vm2, %v3441_v48 }
0x17ad PF: > { %s22_s17 = sadd.s32 1, %s4517_s17  }
0x17ae   : > { %p19_p4 = scmp.ge.s32.totalorder %s22_s17, 4  }
0x17b0   :  { %21 = sbr.rel (!%p19_p4) target bundleno = 1 (0x1), region = 109 }

</bundles_post_ra>
